<compile_context>
chip_gen: v7x
topology: tpu7x:2x2x1
jax: 0.10.0
libtpu: 0.0.40
codegen_flags: <defaults>
</compile_context>

<pallas_src>
import functools

import jax
import jax.numpy as jnp
from jax import lax
from jax.experimental import pallas as pl
from jax.experimental.pallas import tpu as pltpu

F32 = jnp.float32
MXU_DTYPE = jnp.bfloat16      # matmul operand / activation storage dtype
_PAD = 16                     # spatial halo = max dilation of the ESP branches


# --------------------------------------------------------------------------
# VMEM budgeting (generation-aware)
# --------------------------------------------------------------------------
def _vmem_limit_bytes():
    """Scoped-VMEM limit: ~96 MiB on v5e/v6e (128 MiB phys), ~48 MiB on v7x
    (64 MiB phys).  Falls back to the conservative v7x value."""
    cap = 64 * 1024 * 1024
    try:
        cap = int(getattr(pltpu.get_tpu_info(), "vmem_capacity_bytes", cap))
    except Exception:  # query unsupported on this runtime -> conservative
        pass
    return max(32 * 1024 * 1024, min(cap * 3 // 4, 100 * 1024 * 1024))


def _cparams(vmem_limit):
    return pltpu.CompilerParams(
        dimension_semantics=("parallel", "parallel"),
        vmem_limit_bytes=int(vmem_limit),
    )


def _pick_row_tile(Ho, cost_fn, budget):
    """Largest row tile dividing Ho whose estimated per-step VMEM use fits."""
    best = 1
    for tr in range(1, Ho + 1):
        if Ho % tr == 0 and cost_fn(tr) <= budget:
            best = tr
    return best


# --------------------------------------------------------------------------
# Kernel 1: stride-2 3x3 conv (c1) -- scratch-staged im2col + one MXU matmul
# --------------------------------------------------------------------------
def _c1_kernel(xph_ref, w_ref, o_ref, *scratch, tr, wo, cin, cout, resident):
    # xph_ref: phase-split, 1-padded bf16 input
    #   resident: (1, 4, Ho+1, Wo+1, cin) VMEM block (whole image per batch)
    #   slab:     (N, 4, Ho+1, Wo+1, cin) HBM ref (memory_space=pl.ANY)
    # w_ref: (9*cin, cout) bf16   /   o_ref: (1, tr, wo, cout) bf16
    if resident:
        (a_buf,) = scratch
        t = pl.program_id(1)
        row0 = pl.multiple_of(t * tr, tr)

        def tap(ph, dh, dw):
            return xph_ref[0, ph, pl.ds(row0 + dh, tr), pl.ds(dw, wo), :]
    else:
        xslab, a_buf, sem = scratch
        t = pl.program_id(0)
        b = pl.program_id(1)
        row0 = pl.multiple_of(t * tr, tr)
        cp = pltpu.make_async_copy(
            xph_ref.at[b, :, pl.ds(row0, tr + 1), :, :], xslab, sem)
        cp.start()
        cp.wait()

        def tap(ph, dh, dw):
            return xslab[ph, pl.ds(dh, tr), pl.ds(dw, wo), :]

    # Stage the 9-tap im2col block in VMEM scratch (bf16), then one matmul.
    for kh in range(3):
        for kw in range(3):
            ph = (kh % 2) * 2 + (kw % 2)
            idx = kh * 3 + kw
            sl = tap(ph, kh // 2, kw // 2)                        # (tr, wo, cin)
            a_buf[:, idx * cin:(idx + 1) * cin] = sl.reshape(tr * wo, cin)
    o = jnp.dot(a_buf[...], w_ref[...], preferred_element_type=jnp.float32)
    o_ref[...] = o.reshape(1, tr, wo, cout).astype(o_ref.dtype)


def _conv3x3_s2(x_bf16, w_hwio, vmem_limit, row_tile=None, input_mode=None):
    """3x3 conv, stride 2, padding 1, no bias (NHWC bf16 -> NHWC bf16)."""
    N, H, W, Cin = x_bf16.shape
    assert H % 2 == 0 and W % 2 == 0, "StrideESP stride-2 conv assumes even H, W"
    Cout = w_hwio.shape[-1]
    Ho, Wo = H // 2, W // 2

    # 1-px zero pad + even/odd phase split (at bf16) so each of the 9 stride-2
    # taps is a dense window gathered in-kernel with plain slices.
    # TODO(synk): replace this XLA-side phase split with strided pl.ds loads
    # straight from the padded input to drop the HBM materialization entirely.
    xp = jnp.pad(x_bf16, ((0, 0), (1, 1), (1, 1), (0, 0)))
    xph = (xp.reshape(N, Ho + 1, 2, Wo + 1, 2, Cin)
             .transpose(0, 2, 4, 1, 3, 5)
             .reshape(N, 4, Ho + 1, Wo + 1, Cin))
    w = w_hwio.reshape(9 * Cin, Cout).astype(MXU_DTYPE)

    img_bytes = 4 * (Ho + 1) * (Wo + 1) * Cin * 2                # one batch, bf16
    budget = int(vmem_limit * 0.7)
    if input_mode is None:
        resident = 2 * img_bytes <= budget // 2
    else:
        resident = input_mode == "resident"

    def cost(t):
        c = (t * Wo * 9 * Cin * 2            # A staging scratch (bf16)
             + 2 * t * Wo * Cout * 2         # double-buffered bf16 output blocks
             + t * Wo * Cout * 4             # f32 matmul result value
             + 2 * 9 * Cin * Cout * 2)       # weight block (double-buffered)
        c += 2 * img_bytes if resident else 4 * (t + 1) * (Wo + 1) * Cin * 2
        return c

    tr = row_tile or _pick_row_tile(Ho, cost, budget)
    assert Ho % tr == 0

    kern = functools.partial(_c1_kernel, tr=tr, wo=Wo, cin=Cin, cout=Cout,
                             resident=resident)
    if resident:
        # Batch-leading grid: the whole-image block is DMA'd once per batch.
        grid = (N, Ho // tr)
        in0 = pl.BlockSpec((1, 4, Ho + 1, Wo + 1, Cin),
                           lambda b, t: (b, 0, 0, 0, 0))
        w_spec = pl.BlockSpec((9 * Cin, Cout), lambda b, t: (0, 0))
        out_spec = pl.BlockSpec((1, tr, Wo, Cout), lambda b, t: (b, t, 0, 0))
        scratch = [pltpu.VMEM((tr * Wo, 9 * Cin), MXU_DTYPE)]
    else:
        # Row-tile-leading grid: v7x megacore can shard spatial tiles at N=1.
        grid = (Ho // tr, N)
        in0 = pl.BlockSpec(memory_space=pl.ANY)
        w_spec = pl.BlockSpec((9 * Cin, Cout), lambda t, b: (0, 0))
        out_spec = pl.BlockSpec((1, tr, Wo, Cout), lambda t, b: (b, t, 0, 0))
        scratch = [pltpu.VMEM((4, tr + 1, Wo + 1, Cin), MXU_DTYPE),
                   pltpu.VMEM((tr * Wo, 9 * Cin), MXU_DTYPE),
                   pltpu.SemaphoreType.DMA]

    return pl.pallas_call(
        kern,
        out_shape=jax.ShapeDtypeStruct((N, Ho, Wo, Cout), MXU_DTYPE),
        grid=grid,
        in_specs=[in0, w_spec],
        out_specs=out_spec,
        scratch_shapes=scratch,
        compiler_params=_cparams(vmem_limit),
    )(xph, w)


# --------------------------------------------------------------------------
# Kernel 2: fused dilated-conv pyramid + adds + concat (one matmul per tile)
#           + BatchNorm phase-1 centred partial moments
# --------------------------------------------------------------------------
def _esp_conv_kernel(xpad_ref, w_ref, comb_ref, stats_ref, *scratch,
                     tr, wo, cin, nout, resident):
    # xpad_ref: halo-padded (by _PAD) bf16 c1 output
    #   resident: (1, Ho+2P, Wo+2P, cin) VMEM block
    #   slab:     (N, Ho+2P, Wo+2P, cin) HBM ref (memory_space=pl.ANY)
    # w_ref:     (45*cin, nout) bf16  -- five dilated convs + adds + concat folded
    # comb_ref:  (1, tr, wo, nout) bf16 pre-BN "combine" tile
    # stats_ref: (1, 1, 2, nout) f32; row0 = sum, row1 = centred 2nd moment
    if resident:
        (a_buf,) = scratch
        t = pl.program_id(1)
        row0 = pl.multiple_of(t * tr, tr)

        def tap(h0, w0):
            return xpad_ref[0, pl.ds(row0 + h0, tr), pl.ds(w0, wo), :]
    else:
        xslab, a_buf, sem = scratch
        t = pl.program_id(0)
        b = pl.program_id(1)
        row0 = pl.multiple_of(t * tr, tr)
        cp = pltpu.make_async_copy(
            xpad_ref.at[b, pl.ds(row0, tr + 2 * _PAD), :, :], xslab, sem)
        cp.start()
        cp.wait()

        def tap(h0, w0):
            return xslab[pl.ds(h0, tr), pl.ds(w0, wo), :]

    col = 0
    for d in (1, 2, 4, 8, 16):
        for kh in range(3):
            for kw in range(3):
                h0 = _PAD + (kh - 1) * d          # static offsets in [0, 2*_PAD]
                w0 = _PAD + (kw - 1) * d
                sl = tap(h0, w0)                  # (tr, wo, cin) bf16
                a_buf[:, col:col + cin] = sl.reshape(tr * wo, cin)
                col += cin
    comb = jnp.dot(a_buf[...], w_ref[...],
                   preferred_element_type=jnp.float32)           # (tr*wo, nout) f32
    comb_ref[...] = comb.reshape(1, tr, wo, nout).astype(comb_ref.dtype)

    # BatchNorm phase 1: per-tile centred partial moments (merged Welford-style
    # in the wrapper -> global, numerically stable batch statistics).
    s = jnp.sum(comb, axis=0, keepdims=True)                     # (1, nout)
    mu = s * (1.0 / (tr * wo))
    m2 = jnp.sum(jnp.square(comb - mu), axis=0, keepdims=True)   # (1, nout)
    stats_ref[0, 0, 0:1, :] = s
    stats_ref[0, 0, 1:2, :] = m2


def _build_esp_weight(params):
    """Fold the five dilated 3x3 convs + hierarchical adds + channel concat of
    StrideESP into one (45*n, nOut) bf16 block matrix (everything after c1 is
    linear), so each tile needs exactly one MXU matmul."""
    w1, w2, w4, w8, w16 = (params["w_d1"], params["w_d2"], params["w_d4"],
                           params["w_d8"], params["w_d16"])
    n = w2.shape[2]
    n1 = w1.shape[3]
    f1, f2, f4, f8, f16 = (w.reshape(9 * n, -1).astype(F32)
                           for w in (w1, w2, w4, w8, w16))
    z_n = jnp.zeros((9 * n, n), F32)
    z_n1 = jnp.zeros((9 * n, n1), F32)
    # comb columns: [ d1 | add1=d2 | add2=d2+d4 | add3=d2+d4+d8 | add4=+d16 ]
    rows = [
        jnp.concatenate([f1,   z_n, z_n, z_n, z_n], axis=1),
        jnp.concatenate([z_n1, f2,  f2,  f2,  f2 ], axis=1),
        jnp.concatenate([z_n1, z_n, f4,  f4,  f4 ], axis=1),
        jnp.concatenate([z_n1, z_n, z_n, f8,  f8 ], axis=1),
        jnp.concatenate([z_n1, z_n, z_n, z_n, f16], axis=1),
    ]
    return jnp.concatenate(rows, axis=0).astype(MXU_DTYPE)       # (45*n, nOut)


# --------------------------------------------------------------------------
# Kernel 3: BatchNorm normalize (train-mode batch stats) + per-channel PReLU
# --------------------------------------------------------------------------
def _bn_prelu_kernel(c_ref, scale_ref, shift_ref, alpha_ref, o_ref):
    c = c_ref[...].astype(jnp.float32)               # bf16 comb -> f32 math
    scale = scale_ref[...].reshape(1, 1, 1, -1)
    shift = shift_ref[...].reshape(1, 1, 1, -1)
    alpha = alpha_ref[...].reshape(1, 1, 1, -1)
    y = c * scale + shift
    o_ref[...] = jnp.where(y > 0, y, alpha * y)


# --------------------------------------------------------------------------
# Wrapper
# --------------------------------------------------------------------------
def stride_esp_forward(x_nchw, params, eps=1e-3, row_tile=None, input_mode=None):
    """StrideESP forward: (N, nIn, H, W) f32 -> (N, nOut, H//2, W//2) f32.

    input_mode: None (auto), "resident" (whole padded image per batch kept in
    VMEM, auto-pipelined, fetched once per batch) or "slab" (per-tile halo'd
    row slab is manually DMA'd from HBM -- the path for images too large for
    v7x's 64 MiB VMEM)."""
    vmem_limit = _vmem_limit_bytes()

    # NCHW -> NHWC (channels on TPU lanes), pre-cast to bf16 so every HBM
    # materialization / DMA moves half the bytes; accumulation stays f32.
    x = jnp.transpose(x_nchw.astype(MXU_DTYPE), (0, 2, 3, 1))

    out1 = _conv3x3_s2(x, params["w_c1"], vmem_limit,
                       row_tile=row_tile, input_mode=input_mode)  # (N,Ho,Wo,n) bf16
    N, Ho, Wo, n = out1.shape
    nOut = params["gamma"].shape[0]

    # Halo-pad c1's bf16 output once (all five dilated branches share the halo).
    xpad = jnp.pad(out1, ((0, 0), (_PAD, _PAD), (_PAD, _PAD), (0, 0)))
    w_big = _build_esp_weight(params)                             # (45*n, nOut) bf16

    img_bytes = (Ho + 2 * _PAD) * (Wo + 2 * _PAD) * n * 2
    budget = int(vmem_limit * 0.7)
    if input_mode is None:
        resident = 2 * img_bytes <= budget // 2
    else:
        resident = input_mode == "resident"

    def cost(t):
        c = (t * Wo * 45 * n * 2             # A staging scratch (bf16)
             + 2 * t * Wo * nOut * 2         # double-buffered bf16 comb blocks
             + t * Wo * nOut * 4             # f32 matmul result value
             + 2 * 45 * n * nOut * 2         # weight block
             + 2 * 2 * nOut * 4)             # stats blocks
        c += 2 * img_bytes if resident else (t + 2 * _PAD) * (Wo + 2 * _PAD) * n * 2
        return c

    tr = row_tile or _pick_row_tile(Ho, cost, budget)
    assert Ho % tr == 0
    ntiles = Ho // tr

    kern = functools.partial(_esp_conv_kernel, tr=tr, wo=Wo, cin=n, nout=nOut,
                             resident=resident)
    if resident:
        grid = (N, ntiles)
        in0 = pl.BlockSpec((1, Ho + 2 * _PAD, Wo + 2 * _PAD, n),
                           lambda b, t: (b, 0, 0, 0))
        w_spec = pl.BlockSpec((45 * n, nOut), lambda b, t: (0, 0))
        comb_spec = pl.BlockSpec((1, tr, Wo, nOut), lambda b, t: (b, t, 0, 0))
        stats_spec = pl.BlockSpec((1, 1, 2, nOut), lambda b, t: (b, t, 0, 0))
        scratch = [pltpu.VMEM((tr * Wo, 45 * n), MXU_DTYPE)]
    else:
        grid = (ntiles, N)
        in0 = pl.BlockSpec(memory_space=pl.ANY)
        w_spec = pl.BlockSpec((45 * n, nOut), lambda t, b: (0, 0))
        comb_spec = pl.BlockSpec((1, tr, Wo, nOut), lambda t, b: (b, t, 0, 0))
        stats_spec = pl.BlockSpec((1, 1, 2, nOut), lambda t, b: (b, t, 0, 0))
        scratch = [pltpu.VMEM((tr + 2 * _PAD, Wo + 2 * _PAD, n), MXU_DTYPE),
                   pltpu.VMEM((tr * Wo, 45 * n), MXU_DTYPE),
                   pltpu.SemaphoreType.DMA]

    comb, stats = pl.pallas_call(
        kern,
        out_shape=(
            jax.ShapeDtypeStruct((N, Ho, Wo, nOut), MXU_DTYPE),
            jax.ShapeDtypeStruct((N, ntiles, 2, nOut), F32),
        ),
        grid=grid,
        in_specs=[in0, w_spec],
        out_specs=(comb_spec, stats_spec),
        scratch_shapes=scratch,
        compiler_params=_cparams(vmem_limit),
    )(xpad, w_big)

    # BatchNorm phase 2: merge per-tile centred moments into GLOBAL batch
    # statistics (biased variance, train mode).  Tiny XLA reduction; both conv
    # grid axes stay "parallel" and no E[x^2]-E[x]^2 cancellation.
    count_t = jnp.float32(tr * Wo)
    count = jnp.float32(N * Ho * Wo)
    sums = stats[:, :, 0, :]                                      # (N, ntiles, nOut)
    m2s = stats[:, :, 1, :]
    mean = jnp.sum(sums, axis=(0, 1)) / count
    tile_mean = sums / count_t
    var = (jnp.sum(m2s, axis=(0, 1))
           + count_t * jnp.sum(jnp.square(tile_mean - mean), axis=(0, 1))) / count
    var = jnp.maximum(var, 0.0)
    scale = params["gamma"] * lax.rsqrt(var + eps)
    shift = params["beta"] - mean * scale

    # K3: BN normalize + PReLU.  Purely HBM-bound: bf16 comb halves the read
    # traffic; its row tile is decoupled from (and larger than) the conv tile.
    tr_bn = _pick_row_tile(Ho, lambda t: 2 * t * Wo * nOut * (2 + 4),
                           int(vmem_limit * 0.5))
    y = pl.pallas_call(
        _bn_prelu_kernel,
        out_shape=jax.ShapeDtypeStruct((N, Ho, Wo, nOut), F32),
        grid=(Ho // tr_bn, N),
        in_specs=[
            pl.BlockSpec((1, tr_bn, Wo, nOut), lambda t, b: (b, t, 0, 0)),
            pl.BlockSpec((1, nOut), lambda t, b: (0, 0)),
            pl.BlockSpec((1, nOut), lambda t, b: (0, 0)),
            pl.BlockSpec((1, nOut), lambda t, b: (0, 0)),
        ],
        out_specs=pl.BlockSpec((1, tr_bn, Wo, nOut), lambda t, b: (b, t, 0, 0)),
        compiler_params=_cparams(vmem_limit),
    )(comb, scale.reshape(1, nOut), shift.reshape(1, nOut),
      params["alpha"].reshape(1, nOut))

    # NHWC -> NCHW at the module boundary (see TODO in header).
    return jnp.transpose(y, (0, 3, 1, 2))


# --------------------------------------------------------------------------
# Pure-JAX reference (correctness checking only)
# --------------------------------------------------------------------------
def _conv_ref(x, w, stride=1, dilation=1):
    pad = dilation  # ((k-1)/2)*d for k=3
    return lax.conv_general_dilated(
        x, w, window_strides=(stride, stride),
        padding=((pad, pad), (pad, pad)),
        rhs_dilation=(dilation, dilation),
        dimension_numbers=("NHWC", "HWIO", "NHWC"),
        precision=lax.Precision.HIGHEST)


def stride_esp_reference(x_nchw, params, eps=1e-3):
    x = jnp.transpose(x_nchw, (0, 2, 3, 1)).astype(F32)
    o1 = _conv_ref(x, params["w_c1"], stride=2, dilation=1)
    d1 = _conv_ref(o1, params["w_d1"], dilation=1)
    d2 = _conv_ref(o1, params["w_d2"], dilation=2)
    d4 = _conv_ref(o1, params["w_d4"], dilation=4)
    d8 = _conv_ref(o1, params["w_d8"], dilation=8)
    d16 = _conv_ref(o1, params["w_d16"], dilation=16)
    add1 = d2
    add2 = add1 + d4
    add3 = add2 + d8
    add4 = add3 + d16
    comb = jnp.concatenate([d1, add1, add2, add3, add4], axis=-1)
    mean = jnp.mean(comb, axis=(0, 1, 2))
    var = jnp.var(comb, axis=(0, 1, 2))
    y = (comb - mean) / jnp.sqrt(var + eps) * params["gamma"] + params["beta"]
    y = jnp.where(y > 0, y, params["alpha"] * y)
    return jnp.transpose(y, (0, 3, 1, 2))


if __name__ == "__main__":
    # StrideESP(nIn=4, nOut=10): n = 2, n1 = 2
    nIn, nOut = 4, 10
    n = nOut // 5
    n1 = nOut - 4 * n
    N, H, W = 2, 16, 16

    key = jax.random.PRNGKey(0)
    ks = jax.random.split(key, 10)
    params = {
        # conv weights stored HWIO (kh, kw, in, out)
        "w_c1":  0.3 * jax.random.normal(ks[0], (3, 3, nIn, n), F32),
        "w_d1":  0.3 * jax.random.normal(ks[1], (3, 3, n, n1), F32),
        "w_d2":  0.3 * jax.random.normal(ks[2], (3, 3, n, n), F32),
        "w_d4":  0.3 * jax.random.normal(ks[3], (3, 3, n, n), F32),
        "w_d8":  0.3 * jax.random.normal(ks[4], (3, 3, n, n), F32),
        "w_d16": 0.3 * jax.random.normal(ks[5], (3, 3, n, n), F32),
        # BatchNorm2d affine params (eps=1e-3 matches the module)
        "gamma": 1.0 + 0.1 * jax.random.normal(ks[6], (nOut,), F32),
        "beta":  0.1 * jax.random.normal(ks[7], (nOut,), F32),
        # PReLU per-channel slopes (PyTorch default init is 0.25)
        "alpha": 0.25 + 0.05 * jax.random.normal(ks[8], (nOut,), F32),
    }
    x = jax.random.normal(ks[9], (N, nIn, H, W), F32)  # NCHW input

    ref = jax.block_until_ready(stride_esp_reference(x, params))

    # row_tile=4 -> 2 spatial tiles per batch: exercises the multi-tile grid,
    # the dynamic pl.ds / halo'd slab-DMA offsets, and the cross-tile two-phase
    # BatchNorm merge.  Both input modes are exercised: "resident"
    # (auto-pipelined whole-image block) and "slab" (manual halo'd row-slab
    # DMA -- the v7x / large-image path).
    for mode in ("resident", "slab"):
        fwd = jax.jit(functools.partial(stride_esp_forward,
                                        row_tile=4, input_mode=mode))
        out = jax.block_until_ready(fwd(x, params))
        assert out.shape == (N, nOut, H // 2, W // 2), out.shape
        err = float(jnp.max(jnp.abs(out - ref)))
        # bf16 MXU operands / bf16 comb storage vs the f32 HIGHEST reference.
        if not err < 6e-2:
            raise AssertionError(
                f"[{mode}] mismatch vs reference: max abs err = {err}")
    print("KERNEL_OK")
</pallas_src>

<mosaic_0001>
module attributes {stable_mosaic.version = 11 : i64} {
  func.func @_c1_kernel(%arg0: i32, %arg1: i32, %arg2: memref<1x4x9x9x4xbf16, #tpu.memory_space<vmem>>, %arg3: memref<36x2xbf16, #tpu.memory_space<vmem>>, %arg4: memref<1x4x8x2xbf16, #tpu.memory_space<vmem>>, %arg5: memref<32x36xbf16, #tpu.memory_space<vmem>>) attributes {dimension_semantics = [#tpu.dimension_semantics<parallel>, #tpu.dimension_semantics<parallel>], iteration_bounds = array<i64: 2, 2>, scalar_prefetch = 0 : i64, scratch_operands = 1 : i64, tpu.core_type = #tpu.core_type<tc>, window_params = [{transform_indices = @transform_0, window_bounds = array<i64: 1, 4, 9, 9, 4>}, {pipeline_mode = #tpu.pipeline_mode<synchronous>, transform_indices = @transform_1, window_bounds = array<i64: 36, 2>}, {transform_indices = @transform_2, window_bounds = array<i64: 1, 4, 8, 2>}]} {
    %c4_i32 = arith.constant 4 : i32
    %0 = arith.muli %arg1, %c4_i32 : i32
    %1 = tpu.assume_multiple %0, 4 : i32
    %c0_i32 = arith.constant 0 : i32
    %2 = arith.addi %1, %c0_i32 : i32
    %c0 = arith.constant 0 : index
    %c0_0 = arith.constant 0 : index
    %3 = arith.index_cast %2 : i32 to index
    %c0_1 = arith.constant 0 : index
    %c0_2 = arith.constant 0 : index
    %4 = vector.load %arg2[%c0, %c0_0, %3, %c0_1, %c0_2] : memref<1x4x9x9x4xbf16, #tpu.memory_space<vmem>>, vector<1x1x4x8x4xbf16>
    %5 = vector.shape_cast %4 : vector<1x1x4x8x4xbf16> to vector<4x8x4xbf16>
    %6 = vector.shape_cast %5 : vector<4x8x4xbf16> to vector<32x4xbf16>
    %c0_3 = arith.constant 0 : index
    %c0_4 = arith.constant 0 : index
    %7 = vector.load %arg5[%c0_3, %c0_4] : memref<32x36xbf16, #tpu.memory_space<vmem>>, vector<32x4xbf16>
    tpu.vector_store %arg5[%c0_3, %c0_4], %6 {strides = array<i32>} : memref<32x36xbf16, #tpu.memory_space<vmem>>, vector<32x4xbf16>,
    %c0_i32_5 = arith.constant 0 : i32
    %8 = arith.addi %1, %c0_i32_5 : i32
    %c0_6 = arith.constant 0 : index
    %c1 = arith.constant 1 : index
    %9 = arith.index_cast %8 : i32 to index
    %c0_7 = arith.constant 0 : index
    %c0_8 = arith.constant 0 : index
    %10 = vector.load %arg2[%c0_6, %c1, %9, %c0_7, %c0_8] : memref<1x4x9x9x4xbf16, #tpu.memory_space<vmem>>, vector<1x1x4x8x4xbf16>
    %11 = vector.shape_cast %10 : vector<1x1x4x8x4xbf16> to vector<4x8x4xbf16>
    %12 = vector.shape_cast %11 : vector<4x8x4xbf16> to vector<32x4xbf16>
    %c0_9 = arith.constant 0 : index
    %c4 = arith.constant 4 : index
    %13 = vector.load %arg5[%c0_9, %c4] : memref<32x36xbf16, #tpu.memory_space<vmem>>, vector<32x4xbf16>
    tpu.vector_store %arg5[%c0_9, %c4], %12 {strides = array<i32>} : memref<32x36xbf16, #tpu.memory_space<vmem>>, vector<32x4xbf16>,
    %c0_i32_10 = arith.constant 0 : i32
    %14 = arith.addi %1, %c0_i32_10 : i32
    %c0_11 = arith.constant 0 : index
    %c0_12 = arith.constant 0 : index
    %15 = arith.index_cast %14 : i32 to index
    %c1_13 = arith.constant 1 : index
    %c0_14 = arith.constant 0 : index
    %16 = vector.load %arg2[%c0_11, %c0_12, %15, %c1_13, %c0_14] : memref<1x4x9x9x4xbf16, #tpu.memory_space<vmem>>, vector<1x1x4x8x4xbf16>
    %17 = vector.shape_cast %16 : vector<1x1x4x8x4xbf16> to vector<4x8x4xbf16>
    %18 = vector.shape_cast %17 : vector<4x8x4xbf16> to vector<32x4xbf16>
    %c0_15 = arith.constant 0 : index
    %c8 = arith.constant 8 : index
    %19 = vector.load %arg5[%c0_15, %c8] : memref<32x36xbf16, #tpu.memory_space<vmem>>, vector<32x4xbf16>
    tpu.vector_store %arg5[%c0_15, %c8], %18 {strides = array<i32>} : memref<32x36xbf16, #tpu.memory_space<vmem>>, vector<32x4xbf16>,
    %c0_i32_16 = arith.constant 0 : i32
    %20 = arith.addi %1, %c0_i32_16 : i32
    %c0_17 = arith.constant 0 : index
    %c2 = arith.constant 2 : index
    %21 = arith.index_cast %20 : i32 to index
    %c0_18 = arith.constant 0 : index
    %c0_19 = arith.constant 0 : index
    %22 = vector.load %arg2[%c0_17, %c2, %21, %c0_18, %c0_19] : memref<1x4x9x9x4xbf16, #tpu.memory_space<vmem>>, vector<1x1x4x8x4xbf16>
    %23 = vector.shape_cast %22 : vector<1x1x4x8x4xbf16> to vector<4x8x4xbf16>
    %24 = vector.shape_cast %23 : vector<4x8x4xbf16> to vector<32x4xbf16>
    %c0_20 = arith.constant 0 : index
    %c12 = arith.constant 12 : index
    %25 = vector.load %arg5[%c0_20, %c12] : memref<32x36xbf16, #tpu.memory_space<vmem>>, vector<32x4xbf16>
    tpu.vector_store %arg5[%c0_20, %c12], %24 {strides = array<i32>} : memref<32x36xbf16, #tpu.memory_space<vmem>>, vector<32x4xbf16>,
    %c0_i32_21 = arith.constant 0 : i32
    %26 = arith.addi %1, %c0_i32_21 : i32
    %c0_22 = arith.constant 0 : index
    %c3 = arith.constant 3 : index
    %27 = arith.index_cast %26 : i32 to index
    %c0_23 = arith.constant 0 : index
    %c0_24 = arith.constant 0 : index
    %28 = vector.load %arg2[%c0_22, %c3, %27, %c0_23, %c0_24] : memref<1x4x9x9x4xbf16, #tpu.memory_space<vmem>>, vector<1x1x4x8x4xbf16>
    %29 = vector.shape_cast %28 : vector<1x1x4x8x4xbf16> to vector<4x8x4xbf16>
    %30 = vector.shape_cast %29 : vector<4x8x4xbf16> to vector<32x4xbf16>
    %c0_25 = arith.constant 0 : index
    %c16 = arith.constant 16 : index
    %31 = vector.load %arg5[%c0_25, %c16] : memref<32x36xbf16, #tpu.memory_space<vmem>>, vector<32x4xbf16>
    tpu.vector_store %arg5[%c0_25, %c16], %30 {strides = array<i32>} : memref<32x36xbf16, #tpu.memory_space<vmem>>, vector<32x4xbf16>,
    %c0_i32_26 = arith.constant 0 : i32
    %32 = arith.addi %1, %c0_i32_26 : i32
    %c0_27 = arith.constant 0 : index
    %c2_28 = arith.constant 2 : index
    %33 = arith.index_cast %32 : i32 to index
    %c1_29 = arith.constant 1 : index
    %c0_30 = arith.constant 0 : index
    %34 = vector.load %arg2[%c0_27, %c2_28, %33, %c1_29, %c0_30] : memref<1x4x9x9x4xbf16, #tpu.memory_space<vmem>>, vector<1x1x4x8x4xbf16>
    %35 = vector.shape_cast %34 : vector<1x1x4x8x4xbf16> to vector<4x8x4xbf16>
    %36 = vector.shape_cast %35 : vector<4x8x4xbf16> to vector<32x4xbf16>
    %c0_31 = arith.constant 0 : index
    %c20 = arith.constant 20 : index
    %37 = vector.load %arg5[%c0_31, %c20] : memref<32x36xbf16, #tpu.memory_space<vmem>>, vector<32x4xbf16>
    tpu.vector_store %arg5[%c0_31, %c20], %36 {strides = array<i32>} : memref<32x36xbf16, #tpu.memory_space<vmem>>, vector<32x4xbf16>,
    %c1_i32 = arith.constant 1 : i32
    %38 = arith.addi %1, %c1_i32 : i32
    %c0_32 = arith.constant 0 : index
    %c0_33 = arith.constant 0 : index
    %39 = arith.index_cast %38 : i32 to index
    %c0_34 = arith.constant 0 : index
    %c0_35 = arith.constant 0 : index
    %40 = vector.load %arg2[%c0_32, %c0_33, %39, %c0_34, %c0_35] : memref<1x4x9x9x4xbf16, #tpu.memory_space<vmem>>, vector<1x1x4x8x4xbf16>
    %41 = vector.shape_cast %40 : vector<1x1x4x8x4xbf16> to vector<4x8x4xbf16>
    %42 = vector.shape_cast %41 : vector<4x8x4xbf16> to vector<32x4xbf16>
    %c0_36 = arith.constant 0 : index
    %c24 = arith.constant 24 : index
    %43 = vector.load %arg5[%c0_36, %c24] : memref<32x36xbf16, #tpu.memory_space<vmem>>, vector<32x4xbf16>
    tpu.vector_store %arg5[%c0_36, %c24], %42 {strides = array<i32>} : memref<32x36xbf16, #tpu.memory_space<vmem>>, vector<32x4xbf16>,
    %c1_i32_37 = arith.constant 1 : i32
    %44 = arith.addi %1, %c1_i32_37 : i32
    %c0_38 = arith.constant 0 : index
    %c1_39 = arith.constant 1 : index
    %45 = arith.index_cast %44 : i32 to index
    %c0_40 = arith.constant 0 : index
    %c0_41 = arith.constant 0 : index
    %46 = vector.load %arg2[%c0_38, %c1_39, %45, %c0_40, %c0_41] : memref<1x4x9x9x4xbf16, #tpu.memory_space<vmem>>, vector<1x1x4x8x4xbf16>
    %47 = vector.shape_cast %46 : vector<1x1x4x8x4xbf16> to vector<4x8x4xbf16>
    %48 = vector.shape_cast %47 : vector<4x8x4xbf16> to vector<32x4xbf16>
    %c0_42 = arith.constant 0 : index
    %c28 = arith.constant 28 : index
    %49 = vector.load %arg5[%c0_42, %c28] : memref<32x36xbf16, #tpu.memory_space<vmem>>, vector<32x4xbf16>
    tpu.vector_store %arg5[%c0_42, %c28], %48 {strides = array<i32>} : memref<32x36xbf16, #tpu.memory_space<vmem>>, vector<32x4xbf16>,
    %c1_i32_43 = arith.constant 1 : i32
    %50 = arith.addi %1, %c1_i32_43 : i32
    %c0_44 = arith.constant 0 : index
    %c0_45 = arith.constant 0 : index
    %51 = arith.index_cast %50 : i32 to index
    %c1_46 = arith.constant 1 : index
    %c0_47 = arith.constant 0 : index
    %52 = vector.load %arg2[%c0_44, %c0_45, %51, %c1_46, %c0_47] : memref<1x4x9x9x4xbf16, #tpu.memory_space<vmem>>, vector<1x1x4x8x4xbf16>
    %53 = vector.shape_cast %52 : vector<1x1x4x8x4xbf16> to vector<4x8x4xbf16>
    %54 = vector.shape_cast %53 : vector<4x8x4xbf16> to vector<32x4xbf16>
    %c0_48 = arith.constant 0 : index
    %c32 = arith.constant 32 : index
    %55 = vector.load %arg5[%c0_48, %c32] : memref<32x36xbf16, #tpu.memory_space<vmem>>, vector<32x4xbf16>
    tpu.vector_store %arg5[%c0_48, %c32], %54 {strides = array<i32>} : memref<32x36xbf16, #tpu.memory_space<vmem>>, vector<32x4xbf16>,
    %c0_49 = arith.constant 0 : index
    %c0_50 = arith.constant 0 : index
    %56 = vector.load %arg5[%c0_49, %c0_50] : memref<32x36xbf16, #tpu.memory_space<vmem>>, vector<32x36xbf16>
    %c0_51 = arith.constant 0 : index
    %c0_52 = arith.constant 0 : index
    %57 = vector.load %arg3[%c0_51, %c0_52] : memref<36x2xbf16, #tpu.memory_space<vmem>>, vector<36x2xbf16>
    %cst = arith.constant dense<0.000000e+00> : vector<32x2xf32>
    %58 = tpu.matmul %56, %57, %cst {dimension_numbers = #tpu.dot_dimension_numbers<[1], [0], [0], [1], [0, 0, 1, 1], [], []>} : vector<32x36xbf16>, vector<36x2xbf16>, vector<32x2xf32> -> vector<32x2xf32>
    %59 = vector.shape_cast %58 : vector<32x2xf32> to vector<1x4x8x2xf32>
    %60 = arith.truncf %59 : vector<1x4x8x2xf32> to vector<1x4x8x2xbf16>
    %c0_53 = arith.constant 0 : index
    %c0_54 = arith.constant 0 : index
    %c0_55 = arith.constant 0 : index
    %c0_56 = arith.constant 0 : index
    %61 = vector.load %arg4[%c0_53, %c0_54, %c0_55, %c0_56] : memref<1x4x8x2xbf16, #tpu.memory_space<vmem>>, vector<1x4x8x2xbf16>
    tpu.vector_store %arg4[%c0_53, %c0_54, %c0_55, %c0_56], %60 {strides = array<i32>} : memref<1x4x8x2xbf16, #tpu.memory_space<vmem>>, vector<1x4x8x2xbf16>,
    return
  }
  func.func @transform_0(%arg0: i32, %arg1: i32) -> (i32, i32, i32, i32, i32) {
    %c0_i32 = arith.constant 0 : i32
    %c0_i32_0 = arith.constant 0 : i32
    %c0_i32_1 = arith.constant 0 : i32
    %c0_i32_2 = arith.constant 0 : i32
    %c0_i32_3 = arith.constant 0 : i32
    return %arg0, %c0_i32, %c0_i32_0, %c0_i32_1, %c0_i32_2 : i32, i32, i32, i32, i32
  }
  func.func @transform_1(%arg0: i32, %arg1: i32) -> (i32, i32) {
    %c0_i32 = arith.constant 0 : i32
    %c0_i32_0 = arith.constant 0 : i32
    %c0_i32_1 = arith.constant 0 : i32
    return %c0_i32, %c0_i32_0 : i32, i32
  }
  func.func @transform_2(%arg0: i32, %arg1: i32) -> (i32, i32, i32, i32) {
    %c0_i32 = arith.constant 0 : i32
    %c0_i32_0 = arith.constant 0 : i32
    %c0_i32_1 = arith.constant 0 : i32
    return %arg0, %arg1, %c0_i32, %c0_i32_0 : i32, i32, i32, i32
  }
}

module attributes {stable_mosaic.version = 11 : i64} {
  func.func @_esp_conv_kernel(%arg0: i32, %arg1: i32, %arg2: memref<1x40x40x2xbf16, #tpu.memory_space<vmem>>, %arg3: memref<90x10xbf16, #tpu.memory_space<vmem>>, %arg4: memref<1x4x8x10xbf16, #tpu.memory_space<vmem>>, %arg5: memref<1x1x2x10xf32, #tpu.memory_space<vmem>>, %arg6: memref<32x90xbf16, #tpu.memory_space<vmem>>) attributes {dimension_semantics = [#tpu.dimension_semantics<parallel>, #tpu.dimension_semantics<parallel>], iteration_bounds = array<i64: 2, 2>, scalar_prefetch = 0 : i64, scratch_operands = 1 : i64, tpu.core_type = #tpu.core_type<tc>, window_params = [{transform_indices = @transform_0, window_bounds = array<i64: 1, 40, 40, 2>}, {pipeline_mode = #tpu.pipeline_mode<synchronous>, transform_indices = @transform_1, window_bounds = array<i64: 90, 10>}, {transform_indices = @transform_2, window_bounds = array<i64: 1, 4, 8, 10>}, {transform_indices = @transform_3, window_bounds = array<i64: 1, 1, 2, 10>}]} {
    %c4_i32 = arith.constant 4 : i32
    %0 = arith.muli %arg1, %c4_i32 : i32
    %1 = tpu.assume_multiple %0, 4 : i32
    %c15_i32 = arith.constant 15 : i32
    %2 = arith.addi %1, %c15_i32 : i32
    %c0 = arith.constant 0 : index
    %3 = arith.index_cast %2 : i32 to index
    %c15 = arith.constant 15 : index
    %c0_0 = arith.constant 0 : index
    %4 = vector.load %arg2[%c0, %3, %c15, %c0_0] : memref<1x40x40x2xbf16, #tpu.memory_space<vmem>>, vector<1x4x8x2xbf16>
    %5 = vector.shape_cast %4 : vector<1x4x8x2xbf16> to vector<4x8x2xbf16>
    %6 = vector.shape_cast %5 : vector<4x8x2xbf16> to vector<32x2xbf16>
    %c0_1 = arith.constant 0 : index
    %c0_2 = arith.constant 0 : index
    %7 = vector.load %arg6[%c0_1, %c0_2] : memref<32x90xbf16, #tpu.memory_space<vmem>>, vector<32x2xbf16>
    tpu.vector_store %arg6[%c0_1, %c0_2], %6 {strides = array<i32>} : memref<32x90xbf16, #tpu.memory_space<vmem>>, vector<32x2xbf16>,
    %c15_i32_3 = arith.constant 15 : i32
    %8 = arith.addi %1, %c15_i32_3 : i32
    %c0_4 = arith.constant 0 : index
    %9 = arith.index_cast %8 : i32 to index
    %c16 = arith.constant 16 : index
    %c0_5 = arith.constant 0 : index
    %10 = vector.load %arg2[%c0_4, %9, %c16, %c0_5] : memref<1x40x40x2xbf16, #tpu.memory_space<vmem>>, vector<1x4x8x2xbf16>
    %11 = vector.shape_cast %10 : vector<1x4x8x2xbf16> to vector<4x8x2xbf16>
    %12 = vector.shape_cast %11 : vector<4x8x2xbf16> to vector<32x2xbf16>
    %c0_6 = arith.constant 0 : index
    %c2 = arith.constant 2 : index
    %13 = vector.load %arg6[%c0_6, %c2] : memref<32x90xbf16, #tpu.memory_space<vmem>>, vector<32x2xbf16>
    tpu.vector_store %arg6[%c0_6, %c2], %12 {strides = array<i32>} : memref<32x90xbf16, #tpu.memory_space<vmem>>, vector<32x2xbf16>,
    %c15_i32_7 = arith.constant 15 : i32
    %14 = arith.addi %1, %c15_i32_7 : i32
    %c0_8 = arith.constant 0 : index
    %15 = arith.index_cast %14 : i32 to index
    %c17 = arith.constant 17 : index
    %c0_9 = arith.constant 0 : index
    %16 = vector.load %arg2[%c0_8, %15, %c17, %c0_9] : memref<1x40x40x2xbf16, #tpu.memory_space<vmem>>, vector<1x4x8x2xbf16>
    %17 = vector.shape_cast %16 : vector<1x4x8x2xbf16> to vector<4x8x2xbf16>
    %18 = vector.shape_cast %17 : vector<4x8x2xbf16> to vector<32x2xbf16>
    %c0_10 = arith.constant 0 : index
    %c4 = arith.constant 4 : index
    %19 = vector.load %arg6[%c0_10, %c4] : memref<32x90xbf16, #tpu.memory_space<vmem>>, vector<32x2xbf16>
    tpu.vector_store %arg6[%c0_10, %c4], %18 {strides = array<i32>} : memref<32x90xbf16, #tpu.memory_space<vmem>>, vector<32x2xbf16>,
    %c16_i32 = arith.constant 16 : i32
    %20 = arith.addi %1, %c16_i32 : i32
    %c0_11 = arith.constant 0 : index
    %21 = arith.index_cast %20 : i32 to index
    %c15_12 = arith.constant 15 : index
    %c0_13 = arith.constant 0 : index
    %22 = vector.load %arg2[%c0_11, %21, %c15_12, %c0_13] : memref<1x40x40x2xbf16, #tpu.memory_space<vmem>>, vector<1x4x8x2xbf16>
    %23 = vector.shape_cast %22 : vector<1x4x8x2xbf16> to vector<4x8x2xbf16>
    %24 = vector.shape_cast %23 : vector<4x8x2xbf16> to vector<32x2xbf16>
    %c0_14 = arith.constant 0 : index
    %c6 = arith.constant 6 : index
    %25 = vector.load %arg6[%c0_14, %c6] : memref<32x90xbf16, #tpu.memory_space<vmem>>, vector<32x2xbf16>
    tpu.vector_store %arg6[%c0_14, %c6], %24 {strides = array<i32>} : memref<32x90xbf16, #tpu.memory_space<vmem>>, vector<32x2xbf16>,
    %c16_i32_15 = arith.constant 16 : i32
    %26 = arith.addi %1, %c16_i32_15 : i32
    %c0_16 = arith.constant 0 : index
    %27 = arith.index_cast %26 : i32 to index
    %c16_17 = arith.constant 16 : index
    %c0_18 = arith.constant 0 : index
    %28 = vector.load %arg2[%c0_16, %27, %c16_17, %c0_18] : memref<1x40x40x2xbf16, #tpu.memory_space<vmem>>, vector<1x4x8x2xbf16>
    %29 = vector.shape_cast %28 : vector<1x4x8x2xbf16> to vector<4x8x2xbf16>
    %30 = vector.shape_cast %29 : vector<4x8x2xbf16> to vector<32x2xbf16>
    %c0_19 = arith.constant 0 : index
    %c8 = arith.constant 8 : index
    %31 = vector.load %arg6[%c0_19, %c8] : memref<32x90xbf16, #tpu.memory_space<vmem>>, vector<32x2xbf16>
    tpu.vector_store %arg6[%c0_19, %c8], %30 {strides = array<i32>} : memref<32x90xbf16, #tpu.memory_space<vmem>>, vector<32x2xbf16>,
    %c16_i32_20 = arith.constant 16 : i32
    %32 = arith.addi %1, %c16_i32_20 : i32
    %c0_21 = arith.constant 0 : index
    %33 = arith.index_cast %32 : i32 to index
    %c17_22 = arith.constant 17 : index
    %c0_23 = arith.constant 0 : index
    %34 = vector.load %arg2[%c0_21, %33, %c17_22, %c0_23] : memref<1x40x40x2xbf16, #tpu.memory_space<vmem>>, vector<1x4x8x2xbf16>
    %35 = vector.shape_cast %34 : vector<1x4x8x2xbf16> to vector<4x8x2xbf16>
    %36 = vector.shape_cast %35 : vector<4x8x2xbf16> to vector<32x2xbf16>
    %c0_24 = arith.constant 0 : index
    %c10 = arith.constant 10 : index
    %37 = vector.load %arg6[%c0_24, %c10] : memref<32x90xbf16, #tpu.memory_space<vmem>>, vector<32x2xbf16>
    tpu.vector_store %arg6[%c0_24, %c10], %36 {strides = array<i32>} : memref<32x90xbf16, #tpu.memory_space<vmem>>, vector<32x2xbf16>,
    %c17_i32 = arith.constant 17 : i32
    %38 = arith.addi %1, %c17_i32 : i32
    %c0_25 = arith.constant 0 : index
    %39 = arith.index_cast %38 : i32 to index
    %c15_26 = arith.constant 15 : index
    %c0_27 = arith.constant 0 : index
    %40 = vector.load %arg2[%c0_25, %39, %c15_26, %c0_27] : memref<1x40x40x2xbf16, #tpu.memory_space<vmem>>, vector<1x4x8x2xbf16>
    %41 = vector.shape_cast %40 : vector<1x4x8x2xbf16> to vector<4x8x2xbf16>
    %42 = vector.shape_cast %41 : vector<4x8x2xbf16> to vector<32x2xbf16>
    %c0_28 = arith.constant 0 : index
    %c12 = arith.constant 12 : index
    %43 = vector.load %arg6[%c0_28, %c12] : memref<32x90xbf16, #tpu.memory_space<vmem>>, vector<32x2xbf16>
    tpu.vector_store %arg6[%c0_28, %c12], %42 {strides = array<i32>} : memref<32x90xbf16, #tpu.memory_space<vmem>>, vector<32x2xbf16>,
    %c17_i32_29 = arith.constant 17 : i32
    %44 = arith.addi %1, %c17_i32_29 : i32
    %c0_30 = arith.constant 0 : index
    %45 = arith.index_cast %44 : i32 to index
    %c16_31 = arith.constant 16 : index
    %c0_32 = arith.constant 0 : index
    %46 = vector.load %arg2[%c0_30, %45, %c16_31, %c0_32] : memref<1x40x40x2xbf16, #tpu.memory_space<vmem>>, vector<1x4x8x2xbf16>
    %47 = vector.shape_cast %46 : vector<1x4x8x2xbf16> to vector<4x8x2xbf16>
    %48 = vector.shape_cast %47 : vector<4x8x2xbf16> to vector<32x2xbf16>
    %c0_33 = arith.constant 0 : index
    %c14 = arith.constant 14 : index
    %49 = vector.load %arg6[%c0_33, %c14] : memref<32x90xbf16, #tpu.memory_space<vmem>>, vector<32x2xbf16>
    tpu.vector_store %arg6[%c0_33, %c14], %48 {strides = array<i32>} : memref<32x90xbf16, #tpu.memory_space<vmem>>, vector<32x2xbf16>,
    %c17_i32_34 = arith.constant 17 : i32
    %50 = arith.addi %1, %c17_i32_34 : i32
    %c0_35 = arith.constant 0 : index
    %51 = arith.index_cast %50 : i32 to index
    %c17_36 = arith.constant 17 : index
    %c0_37 = arith.constant 0 : index
    %52 = vector.load %arg2[%c0_35, %51, %c17_36, %c0_37] : memref<1x40x40x2xbf16, #tpu.memory_space<vmem>>, vector<1x4x8x2xbf16>
    %53 = vector.shape_cast %52 : vector<1x4x8x2xbf16> to vector<4x8x2xbf16>
    %54 = vector.shape_cast %53 : vector<4x8x2xbf16> to vector<32x2xbf16>
    %c0_38 = arith.constant 0 : index
    %c16_39 = arith.constant 16 : index
    %55 = vector.load %arg6[%c0_38, %c16_39] : memref<32x90xbf16, #tpu.memory_space<vmem>>, vector<32x2xbf16>
    tpu.vector_store %arg6[%c0_38, %c16_39], %54 {strides = array<i32>} : memref<32x90xbf16, #tpu.memory_space<vmem>>, vector<32x2xbf16>,
    %c14_i32 = arith.constant 14 : i32
    %56 = arith.addi %1, %c14_i32 : i32
    %c0_40 = arith.constant 0 : index
    %57 = arith.index_cast %56 : i32 to index
    %c14_41 = arith.constant 14 : index
    %c0_42 = arith.constant 0 : index
    %58 = vector.load %arg2[%c0_40, %57, %c14_41, %c0_42] : memref<1x40x40x2xbf16, #tpu.memory_space<vmem>>, vector<1x4x8x2xbf16>
    %59 = vector.shape_cast %58 : vector<1x4x8x2xbf16> to vector<4x8x2xbf16>
    %60 = vector.shape_cast %59 : vector<4x8x2xbf16> to vector<32x2xbf16>
    %c0_43 = arith.constant 0 : index
    %c18 = arith.constant 18 : index
    %61 = vector.load %arg6[%c0_43, %c18] : memref<32x90xbf16, #tpu.memory_space<vmem>>, vector<32x2xbf16>
    tpu.vector_store %arg6[%c0_43, %c18], %60 {strides = array<i32>} : memref<32x90xbf16, #tpu.memory_space<vmem>>, vector<32x2xbf16>,
    %c14_i32_44 = arith.constant 14 : i32
    %62 = arith.addi %1, %c14_i32_44 : i32
    %c0_45 = arith.constant 0 : index
    %63 = arith.index_cast %62 : i32 to index
    %c16_46 = arith.constant 16 : index
    %c0_47 = arith.constant 0 : index
    %64 = vector.load %arg2[%c0_45, %63, %c16_46, %c0_47] : memref<1x40x40x2xbf16, #tpu.memory_space<vmem>>, vector<1x4x8x2xbf16>
    %65 = vector.shape_cast %64 : vector<1x4x8x2xbf16> to vector<4x8x2xbf16>
    %66 = vector.shape_cast %65 : vector<4x8x2xbf16> to vector<32x2xbf16>
    %c0_48 = arith.constant 0 : index
    %c20 = arith.constant 20 : index
    %67 = vector.load %arg6[%c0_48, %c20] : memref<32x90xbf16, #tpu.memory_space<vmem>>, vector<32x2xbf16>
    tpu.vector_store %arg6[%c0_48, %c20], %66 {strides = array<i32>} : memref<32x90xbf16, #tpu.memory_space<vmem>>, vector<32x2xbf16>,
    %c14_i32_49 = arith.constant 14 : i32
    %68 = arith.addi %1, %c14_i32_49 : i32
    %c0_50 = arith.constant 0 : index
    %69 = arith.index_cast %68 : i32 to index
    %c18_51 = arith.constant 18 : index
    %c0_52 = arith.constant 0 : index
    %70 = vector.load %arg2[%c0_50, %69, %c18_51, %c0_52] : memref<1x40x40x2xbf16, #tpu.memory_space<vmem>>, vector<1x4x8x2xbf16>
    %71 = vector.shape_cast %70 : vector<1x4x8x2xbf16> to vector<4x8x2xbf16>
    %72 = vector.shape_cast %71 : vector<4x8x2xbf16> to vector<32x2xbf16>
    %c0_53 = arith.constant 0 : index
    %c22 = arith.constant 22 : index
    %73 = vector.load %arg6[%c0_53, %c22] : memref<32x90xbf16, #tpu.memory_space<vmem>>, vector<32x2xbf16>
    tpu.vector_store %arg6[%c0_53, %c22], %72 {strides = array<i32>} : memref<32x90xbf16, #tpu.memory_space<vmem>>, vector<32x2xbf16>,
    %c16_i32_54 = arith.constant 16 : i32
    %74 = arith.addi %1, %c16_i32_54 : i32
    %c0_55 = arith.constant 0 : index
    %75 = arith.index_cast %74 : i32 to index
    %c14_56 = arith.constant 14 : index
    %c0_57 = arith.constant 0 : index
    %76 = vector.load %arg2[%c0_55, %75, %c14_56, %c0_57] : memref<1x40x40x2xbf16, #tpu.memory_space<vmem>>, vector<1x4x8x2xbf16>
    %77 = vector.shape_cast %76 : vector<1x4x8x2xbf16> to vector<4x8x2xbf16>
    %78 = vector.shape_cast %77 : vector<4x8x2xbf16> to vector<32x2xbf16>
    %c0_58 = arith.constant 0 : index
    %c24 = arith.constant 24 : index
    %79 = vector.load %arg6[%c0_58, %c24] : memref<32x90xbf16, #tpu.memory_space<vmem>>, vector<32x2xbf16>
    tpu.vector_store %arg6[%c0_58, %c24], %78 {strides = array<i32>} : memref<32x90xbf16, #tpu.memory_space<vmem>>, vector<32x2xbf16>,
    %c16_i32_59 = arith.constant 16 : i32
    %80 = arith.addi %1, %c16_i32_59 : i32
    %c0_60 = arith.constant 0 : index
    %81 = arith.index_cast %80 : i32 to index
    %c16_61 = arith.constant 16 : index
    %c0_62 = arith.constant 0 : index
    %82 = vector.load %arg2[%c0_60, %81, %c16_61, %c0_62] : memref<1x40x40x2xbf16, #tpu.memory_space<vmem>>, vector<1x4x8x2xbf16>
    %83 = vector.shape_cast %82 : vector<1x4x8x2xbf16> to vector<4x8x2xbf16>
    %84 = vector.shape_cast %83 : vector<4x8x2xbf16> to vector<32x2xbf16>
    %c0_63 = arith.constant 0 : index
    %c26 = arith.constant 26 : index
    %85 = vector.load %arg6[%c0_63, %c26] : memref<32x90xbf16, #tpu.memory_space<vmem>>, vector<32x2xbf16>
    tpu.vector_store %arg6[%c0_63, %c26], %84 {strides = array<i32>} : memref<32x90xbf16, #tpu.memory_space<vmem>>, vector<32x2xbf16>,
    %c16_i32_64 = arith.constant 16 : i32
    %86 = arith.addi %1, %c16_i32_64 : i32
    %c0_65 = arith.constant 0 : index
    %87 = arith.index_cast %86 : i32 to index
    %c18_66 = arith.constant 18 : index
    %c0_67 = arith.constant 0 : index
    %88 = vector.load %arg2[%c0_65, %87, %c18_66, %c0_67] : memref<1x40x40x2xbf16, #tpu.memory_space<vmem>>, vector<1x4x8x2xbf16>
    %89 = vector.shape_cast %88 : vector<1x4x8x2xbf16> to vector<4x8x2xbf16>
    %90 = vector.shape_cast %89 : vector<4x8x2xbf16> to vector<32x2xbf16>
    %c0_68 = arith.constant 0 : index
    %c28 = arith.constant 28 : index
    %91 = vector.load %arg6[%c0_68, %c28] : memref<32x90xbf16, #tpu.memory_space<vmem>>, vector<32x2xbf16>
    tpu.vector_store %arg6[%c0_68, %c28], %90 {strides = array<i32>} : memref<32x90xbf16, #tpu.memory_space<vmem>>, vector<32x2xbf16>,
    %c18_i32 = arith.constant 18 : i32
    %92 = arith.addi %1, %c18_i32 : i32
    %c0_69 = arith.constant 0 : index
    %93 = arith.index_cast %92 : i32 to index
    %c14_70 = arith.constant 14 : index
    %c0_71 = arith.constant 0 : index
    %94 = vector.load %arg2[%c0_69, %93, %c14_70, %c0_71] : memref<1x40x40x2xbf16, #tpu.memory_space<vmem>>, vector<1x4x8x2xbf16>
    %95 = vector.shape_cast %94 : vector<1x4x8x2xbf16> to vector<4x8x2xbf16>
    %96 = vector.shape_cast %95 : vector<4x8x2xbf16> to vector<32x2xbf16>
    %c0_72 = arith.constant 0 : index
    %c30 = arith.constant 30 : index
    %97 = vector.load %arg6[%c0_72, %c30] : memref<32x90xbf16, #tpu.memory_space<vmem>>, vector<32x2xbf16>
    tpu.vector_store %arg6[%c0_72, %c30], %96 {strides = array<i32>} : memref<32x90xbf16, #tpu.memory_space<vmem>>, vector<32x2xbf16>,
    %c18_i32_73 = arith.constant 18 : i32
    %98 = arith.addi %1, %c18_i32_73 : i32
    %c0_74 = arith.constant 0 : index
    %99 = arith.index_cast %98 : i32 to index
    %c16_75 = arith.constant 16 : index
    %c0_76 = arith.constant 0 : index
    %100 = vector.load %arg2[%c0_74, %99, %c16_75, %c0_76] : memref<1x40x40x2xbf16, #tpu.memory_space<vmem>>, vector<1x4x8x2xbf16>
    %101 = vector.shape_cast %100 : vector<1x4x8x2xbf16> to vector<4x8x2xbf16>
    %102 = vector.shape_cast %101 : vector<4x8x2xbf16> to vector<32x2xbf16>
    %c0_77 = arith.constant 0 : index
    %c32 = arith.constant 32 : index
    %103 = vector.load %arg6[%c0_77, %c32] : memref<32x90xbf16, #tpu.memory_space<vmem>>, vector<32x2xbf16>
    tpu.vector_store %arg6[%c0_77, %c32], %102 {strides = array<i32>} : memref<32x90xbf16, #tpu.memory_space<vmem>>, vector<32x2xbf16>,
    %c18_i32_78 = arith.constant 18 : i32
    %104 = arith.addi %1, %c18_i32_78 : i32
    %c0_79 = arith.constant 0 : index
    %105 = arith.index_cast %104 : i32 to index
    %c18_80 = arith.constant 18 : index
    %c0_81 = arith.constant 0 : index
    %106 = vector.load %arg2[%c0_79, %105, %c18_80, %c0_81] : memref<1x40x40x2xbf16, #tpu.memory_space<vmem>>, vector<1x4x8x2xbf16>
    %107 = vector.shape_cast %106 : vector<1x4x8x2xbf16> to vector<4x8x2xbf16>
    %108 = vector.shape_cast %107 : vector<4x8x2xbf16> to vector<32x2xbf16>
    %c0_82 = arith.constant 0 : index
    %c34 = arith.constant 34 : index
    %109 = vector.load %arg6[%c0_82, %c34] : memref<32x90xbf16, #tpu.memory_space<vmem>>, vector<32x2xbf16>
    tpu.vector_store %arg6[%c0_82, %c34], %108 {strides = array<i32>} : memref<32x90xbf16, #tpu.memory_space<vmem>>, vector<32x2xbf16>,
    %c12_i32 = arith.constant 12 : i32
    %110 = arith.addi %1, %c12_i32 : i32
    %c0_83 = arith.constant 0 : index
    %111 = arith.index_cast %110 : i32 to index
    %c12_84 = arith.constant 12 : index
    %c0_85 = arith.constant 0 : index
    %112 = vector.load %arg2[%c0_83, %111, %c12_84, %c0_85] : memref<1x40x40x2xbf16, #tpu.memory_space<vmem>>, vector<1x4x8x2xbf16>
    %113 = vector.shape_cast %112 : vector<1x4x8x2xbf16> to vector<4x8x2xbf16>
    %114 = vector.shape_cast %113 : vector<4x8x2xbf16> to vector<32x2xbf16>
    %c0_86 = arith.constant 0 : index
    %c36 = arith.constant 36 : index
    %115 = vector.load %arg6[%c0_86, %c36] : memref<32x90xbf16, #tpu.memory_space<vmem>>, vector<32x2xbf16>
    tpu.vector_store %arg6[%c0_86, %c36], %114 {strides = array<i32>} : memref<32x90xbf16, #tpu.memory_space<vmem>>, vector<32x2xbf16>,
    %c12_i32_87 = arith.constant 12 : i32
    %116 = arith.addi %1, %c12_i32_87 : i32
    %c0_88 = arith.constant 0 : index
    %117 = arith.index_cast %116 : i32 to index
    %c16_89 = arith.constant 16 : index
    %c0_90 = arith.constant 0 : index
    %118 = vector.load %arg2[%c0_88, %117, %c16_89, %c0_90] : memref<1x40x40x2xbf16, #tpu.memory_space<vmem>>, vector<1x4x8x2xbf16>
    %119 = vector.shape_cast %118 : vector<1x4x8x2xbf16> to vector<4x8x2xbf16>
    %120 = vector.shape_cast %119 : vector<4x8x2xbf16> to vector<32x2xbf16>
    %c0_91 = arith.constant 0 : index
    %c38 = arith.constant 38 : index
    %121 = vector.load %arg6[%c0_91, %c38] : memref<32x90xbf16, #tpu.memory_space<vmem>>, vector<32x2xbf16>
    tpu.vector_store %arg6[%c0_91, %c38], %120 {strides = array<i32>} : memref<32x90xbf16, #tpu.memory_space<vmem>>, vector<32x2xbf16>,
    %c12_i32_92 = arith.constant 12 : i32
    %122 = arith.addi %1, %c12_i32_92 : i32
    %c0_93 = arith.constant 0 : index
    %123 = arith.index_cast %122 : i32 to index
    %c20_94 = arith.constant 20 : index
    %c0_95 = arith.constant 0 : index
    %124 = vector.load %arg2[%c0_93, %123, %c20_94, %c0_95] : memref<1x40x40x2xbf16, #tpu.memory_space<vmem>>, vector<1x4x8x2xbf16>
    %125 = vector.shape_cast %124 : vector<1x4x8x2xbf16> to vector<4x8x2xbf16>
    %126 = vector.shape_cast %125 : vector<4x8x2xbf16> to vector<32x2xbf16>
    %c0_96 = arith.constant 0 : index
    %c40 = arith.constant 40 : index
    %127 = vector.load %arg6[%c0_96, %c40] : memref<32x90xbf16, #tpu.memory_space<vmem>>, vector<32x2xbf16>
    tpu.vector_store %arg6[%c0_96, %c40], %126 {strides = array<i32>} : memref<32x90xbf16, #tpu.memory_space<vmem>>, vector<32x2xbf16>,
    %c16_i32_97 = arith.constant 16 : i32
    %128 = arith.addi %1, %c16_i32_97 : i32
    %c0_98 = arith.constant 0 : index
    %129 = arith.index_cast %128 : i32 to index
    %c12_99 = arith.constant 12 : index
    %c0_100 = arith.constant 0 : index
    %130 = vector.load %arg2[%c0_98, %129, %c12_99, %c0_100] : memref<1x40x40x2xbf16, #tpu.memory_space<vmem>>, vector<1x4x8x2xbf16>
    %131 = vector.shape_cast %130 : vector<1x4x8x2xbf16> to vector<4x8x2xbf16>
    %132 = vector.shape_cast %131 : vector<4x8x2xbf16> to vector<32x2xbf16>
    %c0_101 = arith.constant 0 : index
    %c42 = arith.constant 42 : index
    %133 = vector.load %arg6[%c0_101, %c42] : memref<32x90xbf16, #tpu.memory_space<vmem>>, vector<32x2xbf16>
    tpu.vector_store %arg6[%c0_101, %c42], %132 {strides = array<i32>} : memref<32x90xbf16, #tpu.memory_space<vmem>>, vector<32x2xbf16>,
    %c16_i32_102 = arith.constant 16 : i32
    %134 = arith.addi %1, %c16_i32_102 : i32
    %c0_103 = arith.constant 0 : index
    %135 = arith.index_cast %134 : i32 to index
    %c16_104 = arith.constant 16 : index
    %c0_105 = arith.constant 0 : index
    %136 = vector.load %arg2[%c0_103, %135, %c16_104, %c0_105] : memref<1x40x40x2xbf16, #tpu.memory_space<vmem>>, vector<1x4x8x2xbf16>
    %137 = vector.shape_cast %136 : vector<1x4x8x2xbf16> to vector<4x8x2xbf16>
    %138 = vector.shape_cast %137 : vector<4x8x2xbf16> to vector<32x2xbf16>
    %c0_106 = arith.constant 0 : index
    %c44 = arith.constant 44 : index
    %139 = vector.load %arg6[%c0_106, %c44] : memref<32x90xbf16, #tpu.memory_space<vmem>>, vector<32x2xbf16>
    tpu.vector_store %arg6[%c0_106, %c44], %138 {strides = array<i32>} : memref<32x90xbf16, #tpu.memory_space<vmem>>, vector<32x2xbf16>,
    %c16_i32_107 = arith.constant 16 : i32
    %140 = arith.addi %1, %c16_i32_107 : i32
    %c0_108 = arith.constant 0 : index
    %141 = arith.index_cast %140 : i32 to index
    %c20_109 = arith.constant 20 : index
    %c0_110 = arith.constant 0 : index
    %142 = vector.load %arg2[%c0_108, %141, %c20_109, %c0_110] : memref<1x40x40x2xbf16, #tpu.memory_space<vmem>>, vector<1x4x8x2xbf16>
    %143 = vector.shape_cast %142 : vector<1x4x8x2xbf16> to vector<4x8x2xbf16>
    %144 = vector.shape_cast %143 : vector<4x8x2xbf16> to vector<32x2xbf16>
    %c0_111 = arith.constant 0 : index
    %c46 = arith.constant 46 : index
    %145 = vector.load %arg6[%c0_111, %c46] : memref<32x90xbf16, #tpu.memory_space<vmem>>, vector<32x2xbf16>
    tpu.vector_store %arg6[%c0_111, %c46], %144 {strides = array<i32>} : memref<32x90xbf16, #tpu.memory_space<vmem>>, vector<32x2xbf16>,
    %c20_i32 = arith.constant 20 : i32
    %146 = arith.addi %1, %c20_i32 : i32
    %c0_112 = arith.constant 0 : index
    %147 = arith.index_cast %146 : i32 to index
    %c12_113 = arith.constant 12 : index
    %c0_114 = arith.constant 0 : index
    %148 = vector.load %arg2[%c0_112, %147, %c12_113, %c0_114] : memref<1x40x40x2xbf16, #tpu.memory_space<vmem>>, vector<1x4x8x2xbf16>
    %149 = vector.shape_cast %148 : vector<1x4x8x2xbf16> to vector<4x8x2xbf16>
    %150 = vector.shape_cast %149 : vector<4x8x2xbf16> to vector<32x2xbf16>
    %c0_115 = arith.constant 0 : index
    %c48 = arith.constant 48 : index
    %151 = vector.load %arg6[%c0_115, %c48] : memref<32x90xbf16, #tpu.memory_space<vmem>>, vector<32x2xbf16>
    tpu.vector_store %arg6[%c0_115, %c48], %150 {strides = array<i32>} : memref<32x90xbf16, #tpu.memory_space<vmem>>, vector<32x2xbf16>,
    %c20_i32_116 = arith.constant 20 : i32
    %152 = arith.addi %1, %c20_i32_116 : i32
    %c0_117 = arith.constant 0 : index
    %153 = arith.index_cast %152 : i32 to index
    %c16_118 = arith.constant 16 : index
    %c0_119 = arith.constant 0 : index
    %154 = vector.load %arg2[%c0_117, %153, %c16_118, %c0_119] : memref<1x40x40x2xbf16, #tpu.memory_space<vmem>>, vector<1x4x8x2xbf16>
    %155 = vector.shape_cast %154 : vector<1x4x8x2xbf16> to vector<4x8x2xbf16>
    %156 = vector.shape_cast %155 : vector<4x8x2xbf16> to vector<32x2xbf16>
    %c0_120 = arith.constant 0 : index
    %c50 = arith.constant 50 : index
    %157 = vector.load %arg6[%c0_120, %c50] : memref<32x90xbf16, #tpu.memory_space<vmem>>, vector<32x2xbf16>
    tpu.vector_store %arg6[%c0_120, %c50], %156 {strides = array<i32>} : memref<32x90xbf16, #tpu.memory_space<vmem>>, vector<32x2xbf16>,
    %c20_i32_121 = arith.constant 20 : i32
    %158 = arith.addi %1, %c20_i32_121 : i32
    %c0_122 = arith.constant 0 : index
    %159 = arith.index_cast %158 : i32 to index
    %c20_123 = arith.constant 20 : index
    %c0_124 = arith.constant 0 : index
    %160 = vector.load %arg2[%c0_122, %159, %c20_123, %c0_124] : memref<1x40x40x2xbf16, #tpu.memory_space<vmem>>, vector<1x4x8x2xbf16>
    %161 = vector.shape_cast %160 : vector<1x4x8x2xbf16> to vector<4x8x2xbf16>
    %162 = vector.shape_cast %161 : vector<4x8x2xbf16> to vector<32x2xbf16>
    %c0_125 = arith.constant 0 : index
    %c52 = arith.constant 52 : index
    %163 = vector.load %arg6[%c0_125, %c52] : memref<32x90xbf16, #tpu.memory_space<vmem>>, vector<32x2xbf16>
    tpu.vector_store %arg6[%c0_125, %c52], %162 {strides = array<i32>} : memref<32x90xbf16, #tpu.memory_space<vmem>>, vector<32x2xbf16>,
    %c8_i32 = arith.constant 8 : i32
    %164 = arith.addi %1, %c8_i32 : i32
    %c0_126 = arith.constant 0 : index
    %165 = arith.index_cast %164 : i32 to index
    %c8_127 = arith.constant 8 : index
    %c0_128 = arith.constant 0 : index
    %166 = vector.load %arg2[%c0_126, %165, %c8_127, %c0_128] : memref<1x40x40x2xbf16, #tpu.memory_space<vmem>>, vector<1x4x8x2xbf16>
    %167 = vector.shape_cast %166 : vector<1x4x8x2xbf16> to vector<4x8x2xbf16>
    %168 = vector.shape_cast %167 : vector<4x8x2xbf16> to vector<32x2xbf16>
    %c0_129 = arith.constant 0 : index
    %c54 = arith.constant 54 : index
    %169 = vector.load %arg6[%c0_129, %c54] : memref<32x90xbf16, #tpu.memory_space<vmem>>, vector<32x2xbf16>
    tpu.vector_store %arg6[%c0_129, %c54], %168 {strides = array<i32>} : memref<32x90xbf16, #tpu.memory_space<vmem>>, vector<32x2xbf16>,
    %c8_i32_130 = arith.constant 8 : i32
    %170 = arith.addi %1, %c8_i32_130 : i32
    %c0_131 = arith.constant 0 : index
    %171 = arith.index_cast %170 : i32 to index
    %c16_132 = arith.constant 16 : index
    %c0_133 = arith.constant 0 : index
    %172 = vector.load %arg2[%c0_131, %171, %c16_132, %c0_133] : memref<1x40x40x2xbf16, #tpu.memory_space<vmem>>, vector<1x4x8x2xbf16>
    %173 = vector.shape_cast %172 : vector<1x4x8x2xbf16> to vector<4x8x2xbf16>
    %174 = vector.shape_cast %173 : vector<4x8x2xbf16> to vector<32x2xbf16>
    %c0_134 = arith.constant 0 : index
    %c56 = arith.constant 56 : index
    %175 = vector.load %arg6[%c0_134, %c56] : memref<32x90xbf16, #tpu.memory_space<vmem>>, vector<32x2xbf16>
    tpu.vector_store %arg6[%c0_134, %c56], %174 {strides = array<i32>} : memref<32x90xbf16, #tpu.memory_space<vmem>>, vector<32x2xbf16>,
    %c8_i32_135 = arith.constant 8 : i32
    %176 = arith.addi %1, %c8_i32_135 : i32
    %c0_136 = arith.constant 0 : index
    %177 = arith.index_cast %176 : i32 to index
    %c24_137 = arith.constant 24 : index
    %c0_138 = arith.constant 0 : index
    %178 = vector.load %arg2[%c0_136, %177, %c24_137, %c0_138] : memref<1x40x40x2xbf16, #tpu.memory_space<vmem>>, vector<1x4x8x2xbf16>
    %179 = vector.shape_cast %178 : vector<1x4x8x2xbf16> to vector<4x8x2xbf16>
    %180 = vector.shape_cast %179 : vector<4x8x2xbf16> to vector<32x2xbf16>
    %c0_139 = arith.constant 0 : index
    %c58 = arith.constant 58 : index
    %181 = vector.load %arg6[%c0_139, %c58] : memref<32x90xbf16, #tpu.memory_space<vmem>>, vector<32x2xbf16>
    tpu.vector_store %arg6[%c0_139, %c58], %180 {strides = array<i32>} : memref<32x90xbf16, #tpu.memory_space<vmem>>, vector<32x2xbf16>,
    %c16_i32_140 = arith.constant 16 : i32
    %182 = arith.addi %1, %c16_i32_140 : i32
    %c0_141 = arith.constant 0 : index
    %183 = arith.index_cast %182 : i32 to index
    %c8_142 = arith.constant 8 : index
    %c0_143 = arith.constant 0 : index
    %184 = vector.load %arg2[%c0_141, %183, %c8_142, %c0_143] : memref<1x40x40x2xbf16, #tpu.memory_space<vmem>>, vector<1x4x8x2xbf16>
    %185 = vector.shape_cast %184 : vector<1x4x8x2xbf16> to vector<4x8x2xbf16>
    %186 = vector.shape_cast %185 : vector<4x8x2xbf16> to vector<32x2xbf16>
    %c0_144 = arith.constant 0 : index
    %c60 = arith.constant 60 : index
    %187 = vector.load %arg6[%c0_144, %c60] : memref<32x90xbf16, #tpu.memory_space<vmem>>, vector<32x2xbf16>
    tpu.vector_store %arg6[%c0_144, %c60], %186 {strides = array<i32>} : memref<32x90xbf16, #tpu.memory_space<vmem>>, vector<32x2xbf16>,
    %c16_i32_145 = arith.constant 16 : i32
    %188 = arith.addi %1, %c16_i32_145 : i32
    %c0_146 = arith.constant 0 : index
    %189 = arith.index_cast %188 : i32 to index
    %c16_147 = arith.constant 16 : index
    %c0_148 = arith.constant 0 : index
    %190 = vector.load %arg2[%c0_146, %189, %c16_147, %c0_148] : memref<1x40x40x2xbf16, #tpu.memory_space<vmem>>, vector<1x4x8x2xbf16>
    %191 = vector.shape_cast %190 : vector<1x4x8x2xbf16> to vector<4x8x2xbf16>
    %192 = vector.shape_cast %191 : vector<4x8x2xbf16> to vector<32x2xbf16>
    %c0_149 = arith.constant 0 : index
    %c62 = arith.constant 62 : index
    %193 = vector.load %arg6[%c0_149, %c62] : memref<32x90xbf16, #tpu.memory_space<vmem>>, vector<32x2xbf16>
    tpu.vector_store %arg6[%c0_149, %c62], %192 {strides = array<i32>} : memref<32x90xbf16, #tpu.memory_space<vmem>>, vector<32x2xbf16>,
    %c16_i32_150 = arith.constant 16 : i32
    %194 = arith.addi %1, %c16_i32_150 : i32
    %c0_151 = arith.constant 0 : index
    %195 = arith.index_cast %194 : i32 to index
    %c24_152 = arith.constant 24 : index
    %c0_153 = arith.constant 0 : index
    %196 = vector.load %arg2[%c0_151, %195, %c24_152, %c0_153] : memref<1x40x40x2xbf16, #tpu.memory_space<vmem>>, vector<1x4x8x2xbf16>
    %197 = vector.shape_cast %196 : vector<1x4x8x2xbf16> to vector<4x8x2xbf16>
    %198 = vector.shape_cast %197 : vector<4x8x2xbf16> to vector<32x2xbf16>
    %c0_154 = arith.constant 0 : index
    %c64 = arith.constant 64 : index
    %199 = vector.load %arg6[%c0_154, %c64] : memref<32x90xbf16, #tpu.memory_space<vmem>>, vector<32x2xbf16>
    tpu.vector_store %arg6[%c0_154, %c64], %198 {strides = array<i32>} : memref<32x90xbf16, #tpu.memory_space<vmem>>, vector<32x2xbf16>,
    %c24_i32 = arith.constant 24 : i32
    %200 = arith.addi %1, %c24_i32 : i32
    %c0_155 = arith.constant 0 : index
    %201 = arith.index_cast %200 : i32 to index
    %c8_156 = arith.constant 8 : index
    %c0_157 = arith.constant 0 : index
    %202 = vector.load %arg2[%c0_155, %201, %c8_156, %c0_157] : memref<1x40x40x2xbf16, #tpu.memory_space<vmem>>, vector<1x4x8x2xbf16>
    %203 = vector.shape_cast %202 : vector<1x4x8x2xbf16> to vector<4x8x2xbf16>
    %204 = vector.shape_cast %203 : vector<4x8x2xbf16> to vector<32x2xbf16>
    %c0_158 = arith.constant 0 : index
    %c66 = arith.constant 66 : index
    %205 = vector.load %arg6[%c0_158, %c66] : memref<32x90xbf16, #tpu.memory_space<vmem>>, vector<32x2xbf16>
    tpu.vector_store %arg6[%c0_158, %c66], %204 {strides = array<i32>} : memref<32x90xbf16, #tpu.memory_space<vmem>>, vector<32x2xbf16>,
    %c24_i32_159 = arith.constant 24 : i32
    %206 = arith.addi %1, %c24_i32_159 : i32
    %c0_160 = arith.constant 0 : index
    %207 = arith.index_cast %206 : i32 to index
    %c16_161 = arith.constant 16 : index
    %c0_162 = arith.constant 0 : index
    %208 = vector.load %arg2[%c0_160, %207, %c16_161, %c0_162] : memref<1x40x40x2xbf16, #tpu.memory_space<vmem>>, vector<1x4x8x2xbf16>
    %209 = vector.shape_cast %208 : vector<1x4x8x2xbf16> to vector<4x8x2xbf16>
    %210 = vector.shape_cast %209 : vector<4x8x2xbf16> to vector<32x2xbf16>
    %c0_163 = arith.constant 0 : index
    %c68 = arith.constant 68 : index
    %211 = vector.load %arg6[%c0_163, %c68] : memref<32x90xbf16, #tpu.memory_space<vmem>>, vector<32x2xbf16>
    tpu.vector_store %arg6[%c0_163, %c68], %210 {strides = array<i32>} : memref<32x90xbf16, #tpu.memory_space<vmem>>, vector<32x2xbf16>,
    %c24_i32_164 = arith.constant 24 : i32
    %212 = arith.addi %1, %c24_i32_164 : i32
    %c0_165 = arith.constant 0 : index
    %213 = arith.index_cast %212 : i32 to index
    %c24_166 = arith.constant 24 : index
    %c0_167 = arith.constant 0 : index
    %214 = vector.load %arg2[%c0_165, %213, %c24_166, %c0_167] : memref<1x40x40x2xbf16, #tpu.memory_space<vmem>>, vector<1x4x8x2xbf16>
    %215 = vector.shape_cast %214 : vector<1x4x8x2xbf16> to vector<4x8x2xbf16>
    %216 = vector.shape_cast %215 : vector<4x8x2xbf16> to vector<32x2xbf16>
    %c0_168 = arith.constant 0 : index
    %c70 = arith.constant 70 : index
    %217 = vector.load %arg6[%c0_168, %c70] : memref<32x90xbf16, #tpu.memory_space<vmem>>, vector<32x2xbf16>
    tpu.vector_store %arg6[%c0_168, %c70], %216 {strides = array<i32>} : memref<32x90xbf16, #tpu.memory_space<vmem>>, vector<32x2xbf16>,
    %c0_i32 = arith.constant 0 : i32
    %218 = arith.addi %1, %c0_i32 : i32
    %c0_169 = arith.constant 0 : index
    %219 = arith.index_cast %218 : i32 to index
    %c0_170 = arith.constant 0 : index
    %c0_171 = arith.constant 0 : index
    %220 = vector.load %arg2[%c0_169, %219, %c0_170, %c0_171] : memref<1x40x40x2xbf16, #tpu.memory_space<vmem>>, vector<1x4x8x2xbf16>
    %221 = vector.shape_cast %220 : vector<1x4x8x2xbf16> to vector<4x8x2xbf16>
    %222 = vector.shape_cast %221 : vector<4x8x2xbf16> to vector<32x2xbf16>
    %c0_172 = arith.constant 0 : index
    %c72 = arith.constant 72 : index
    %223 = vector.load %arg6[%c0_172, %c72] : memref<32x90xbf16, #tpu.memory_space<vmem>>, vector<32x2xbf16>
    tpu.vector_store %arg6[%c0_172, %c72], %222 {strides = array<i32>} : memref<32x90xbf16, #tpu.memory_space<vmem>>, vector<32x2xbf16>,
    %c0_i32_173 = arith.constant 0 : i32
    %224 = arith.addi %1, %c0_i32_173 : i32
    %c0_174 = arith.constant 0 : index
    %225 = arith.index_cast %224 : i32 to index
    %c16_175 = arith.constant 16 : index
    %c0_176 = arith.constant 0 : index
    %226 = vector.load %arg2[%c0_174, %225, %c16_175, %c0_176] : memref<1x40x40x2xbf16, #tpu.memory_space<vmem>>, vector<1x4x8x2xbf16>
    %227 = vector.shape_cast %226 : vector<1x4x8x2xbf16> to vector<4x8x2xbf16>
    %228 = vector.shape_cast %227 : vector<4x8x2xbf16> to vector<32x2xbf16>
    %c0_177 = arith.constant 0 : index
    %c74 = arith.constant 74 : index
    %229 = vector.load %arg6[%c0_177, %c74] : memref<32x90xbf16, #tpu.memory_space<vmem>>, vector<32x2xbf16>
    tpu.vector_store %arg6[%c0_177, %c74], %228 {strides = array<i32>} : memref<32x90xbf16, #tpu.memory_space<vmem>>, vector<32x2xbf16>,
    %c0_i32_178 = arith.constant 0 : i32
    %230 = arith.addi %1, %c0_i32_178 : i32
    %c0_179 = arith.constant 0 : index
    %231 = arith.index_cast %230 : i32 to index
    %c32_180 = arith.constant 32 : index
    %c0_181 = arith.constant 0 : index
    %232 = vector.load %arg2[%c0_179, %231, %c32_180, %c0_181] : memref<1x40x40x2xbf16, #tpu.memory_space<vmem>>, vector<1x4x8x2xbf16>
    %233 = vector.shape_cast %232 : vector<1x4x8x2xbf16> to vector<4x8x2xbf16>
    %234 = vector.shape_cast %233 : vector<4x8x2xbf16> to vector<32x2xbf16>
    %c0_182 = arith.constant 0 : index
    %c76 = arith.constant 76 : index
    %235 = vector.load %arg6[%c0_182, %c76] : memref<32x90xbf16, #tpu.memory_space<vmem>>, vector<32x2xbf16>
    tpu.vector_store %arg6[%c0_182, %c76], %234 {strides = array<i32>} : memref<32x90xbf16, #tpu.memory_space<vmem>>, vector<32x2xbf16>,
    %c16_i32_183 = arith.constant 16 : i32
    %236 = arith.addi %1, %c16_i32_183 : i32
    %c0_184 = arith.constant 0 : index
    %237 = arith.index_cast %236 : i32 to index
    %c0_185 = arith.constant 0 : index
    %c0_186 = arith.constant 0 : index
    %238 = vector.load %arg2[%c0_184, %237, %c0_185, %c0_186] : memref<1x40x40x2xbf16, #tpu.memory_space<vmem>>, vector<1x4x8x2xbf16>
    %239 = vector.shape_cast %238 : vector<1x4x8x2xbf16> to vector<4x8x2xbf16>
    %240 = vector.shape_cast %239 : vector<4x8x2xbf16> to vector<32x2xbf16>
    %c0_187 = arith.constant 0 : index
    %c78 = arith.constant 78 : index
    %241 = vector.load %arg6[%c0_187, %c78] : memref<32x90xbf16, #tpu.memory_space<vmem>>, vector<32x2xbf16>
    tpu.vector_store %arg6[%c0_187, %c78], %240 {strides = array<i32>} : memref<32x90xbf16, #tpu.memory_space<vmem>>, vector<32x2xbf16>,
    %c16_i32_188 = arith.constant 16 : i32
    %242 = arith.addi %1, %c16_i32_188 : i32
    %c0_189 = arith.constant 0 : index
    %243 = arith.index_cast %242 : i32 to index
    %c16_190 = arith.constant 16 : index
    %c0_191 = arith.constant 0 : index
    %244 = vector.load %arg2[%c0_189, %243, %c16_190, %c0_191] : memref<1x40x40x2xbf16, #tpu.memory_space<vmem>>, vector<1x4x8x2xbf16>
    %245 = vector.shape_cast %244 : vector<1x4x8x2xbf16> to vector<4x8x2xbf16>
    %246 = vector.shape_cast %245 : vector<4x8x2xbf16> to vector<32x2xbf16>
    %c0_192 = arith.constant 0 : index
    %c80 = arith.constant 80 : index
    %247 = vector.load %arg6[%c0_192, %c80] : memref<32x90xbf16, #tpu.memory_space<vmem>>, vector<32x2xbf16>
    tpu.vector_store %arg6[%c0_192, %c80], %246 {strides = array<i32>} : memref<32x90xbf16, #tpu.memory_space<vmem>>, vector<32x2xbf16>,
    %c16_i32_193 = arith.constant 16 : i32
    %248 = arith.addi %1, %c16_i32_193 : i32
    %c0_194 = arith.constant 0 : index
    %249 = arith.index_cast %248 : i32 to index
    %c32_195 = arith.constant 32 : index
    %c0_196 = arith.constant 0 : index
    %250 = vector.load %arg2[%c0_194, %249, %c32_195, %c0_196] : memref<1x40x40x2xbf16, #tpu.memory_space<vmem>>, vector<1x4x8x2xbf16>
    %251 = vector.shape_cast %250 : vector<1x4x8x2xbf16> to vector<4x8x2xbf16>
    %252 = vector.shape_cast %251 : vector<4x8x2xbf16> to vector<32x2xbf16>
    %c0_197 = arith.constant 0 : index
    %c82 = arith.constant 82 : index
    %253 = vector.load %arg6[%c0_197, %c82] : memref<32x90xbf16, #tpu.memory_space<vmem>>, vector<32x2xbf16>
    tpu.vector_store %arg6[%c0_197, %c82], %252 {strides = array<i32>} : memref<32x90xbf16, #tpu.memory_space<vmem>>, vector<32x2xbf16>,
    %c32_i32 = arith.constant 32 : i32
    %254 = arith.addi %1, %c32_i32 : i32
    %c0_198 = arith.constant 0 : index
    %255 = arith.index_cast %254 : i32 to index
    %c0_199 = arith.constant 0 : index
    %c0_200 = arith.constant 0 : index
    %256 = vector.load %arg2[%c0_198, %255, %c0_199, %c0_200] : memref<1x40x40x2xbf16, #tpu.memory_space<vmem>>, vector<1x4x8x2xbf16>
    %257 = vector.shape_cast %256 : vector<1x4x8x2xbf16> to vector<4x8x2xbf16>
    %258 = vector.shape_cast %257 : vector<4x8x2xbf16> to vector<32x2xbf16>
    %c0_201 = arith.constant 0 : index
    %c84 = arith.constant 84 : index
    %259 = vector.load %arg6[%c0_201, %c84] : memref<32x90xbf16, #tpu.memory_space<vmem>>, vector<32x2xbf16>
    tpu.vector_store %arg6[%c0_201, %c84], %258 {strides = array<i32>} : memref<32x90xbf16, #tpu.memory_space<vmem>>, vector<32x2xbf16>,
    %c32_i32_202 = arith.constant 32 : i32
    %260 = arith.addi %1, %c32_i32_202 : i32
    %c0_203 = arith.constant 0 : index
    %261 = arith.index_cast %260 : i32 to index
    %c16_204 = arith.constant 16 : index
    %c0_205 = arith.constant 0 : index
    %262 = vector.load %arg2[%c0_203, %261, %c16_204, %c0_205] : memref<1x40x40x2xbf16, #tpu.memory_space<vmem>>, vector<1x4x8x2xbf16>
    %263 = vector.shape_cast %262 : vector<1x4x8x2xbf16> to vector<4x8x2xbf16>
    %264 = vector.shape_cast %263 : vector<4x8x2xbf16> to vector<32x2xbf16>
    %c0_206 = arith.constant 0 : index
    %c86 = arith.constant 86 : index
    %265 = vector.load %arg6[%c0_206, %c86] : memref<32x90xbf16, #tpu.memory_space<vmem>>, vector<32x2xbf16>
    tpu.vector_store %arg6[%c0_206, %c86], %264 {strides = array<i32>} : memref<32x90xbf16, #tpu.memory_space<vmem>>, vector<32x2xbf16>,
    %c32_i32_207 = arith.constant 32 : i32
    %266 = arith.addi %1, %c32_i32_207 : i32
    %c0_208 = arith.constant 0 : index
    %267 = arith.index_cast %266 : i32 to index
    %c32_209 = arith.constant 32 : index
    %c0_210 = arith.constant 0 : index
    %268 = vector.load %arg2[%c0_208, %267, %c32_209, %c0_210] : memref<1x40x40x2xbf16, #tpu.memory_space<vmem>>, vector<1x4x8x2xbf16>
    %269 = vector.shape_cast %268 : vector<1x4x8x2xbf16> to vector<4x8x2xbf16>
    %270 = vector.shape_cast %269 : vector<4x8x2xbf16> to vector<32x2xbf16>
    %c0_211 = arith.constant 0 : index
    %c88 = arith.constant 88 : index
    %271 = vector.load %arg6[%c0_211, %c88] : memref<32x90xbf16, #tpu.memory_space<vmem>>, vector<32x2xbf16>
    tpu.vector_store %arg6[%c0_211, %c88], %270 {strides = array<i32>} : memref<32x90xbf16, #tpu.memory_space<vmem>>, vector<32x2xbf16>,
    %c0_212 = arith.constant 0 : index
    %c0_213 = arith.constant 0 : index
    %272 = vector.load %arg6[%c0_212, %c0_213] : memref<32x90xbf16, #tpu.memory_space<vmem>>, vector<32x90xbf16>
    %c0_214 = arith.constant 0 : index
    %c0_215 = arith.constant 0 : index
    %273 = vector.load %arg3[%c0_214, %c0_215] : memref<90x10xbf16, #tpu.memory_space<vmem>>, vector<90x10xbf16>
    %cst = arith.constant dense<0.000000e+00> : vector<32x10xf32>
    %274 = tpu.matmul %272, %273, %cst {dimension_numbers = #tpu.dot_dimension_numbers<[1], [0], [0], [1], [0, 0, 1, 1], [], []>} : vector<32x90xbf16>, vector<90x10xbf16>, vector<32x10xf32> -> vector<32x10xf32>
    %275 = vector.shape_cast %274 : vector<32x10xf32> to vector<1x4x8x10xf32>
    %276 = arith.truncf %275 : vector<1x4x8x10xf32> to vector<1x4x8x10xbf16>
    %c0_216 = arith.constant 0 : index
    %c0_217 = arith.constant 0 : index
    %c0_218 = arith.constant 0 : index
    %c0_219 = arith.constant 0 : index
    %277 = vector.load %arg4[%c0_216, %c0_217, %c0_218, %c0_219] : memref<1x4x8x10xbf16, #tpu.memory_space<vmem>>, vector<1x4x8x10xbf16>
    tpu.vector_store %arg4[%c0_216, %c0_217, %c0_218, %c0_219], %276 {strides = array<i32>} : memref<1x4x8x10xbf16, #tpu.memory_space<vmem>>, vector<1x4x8x10xbf16>,
    %cst_220 = arith.constant dense<0.000000e+00> : vector<10xf32>
    %278 = vector.multi_reduction <add>, %274, %cst_220 [0] : vector<32x10xf32> to vector<10xf32>
    %279 = vector.shape_cast %278 : vector<10xf32> to vector<1x10xf32>
    %cst_221 = arith.constant 3.125000e-02 : f32
    %280 = vector.broadcast %cst_221 : f32 to vector<1x10xf32>
    %281 = arith.mulf %279, %280 : vector<1x10xf32>
    %282 = vector.broadcast %281 : vector<1x10xf32> to vector<32x10xf32>
    %283 = arith.subf %274, %282 : vector<32x10xf32>
    %284 = arith.mulf %283, %283 : vector<32x10xf32>
    %cst_222 = arith.constant dense<0.000000e+00> : vector<10xf32>
    %285 = vector.multi_reduction <add>, %284, %cst_222 [0] : vector<32x10xf32> to vector<10xf32>
    %286 = vector.shape_cast %285 : vector<10xf32> to vector<1x10xf32>
    %c0_223 = arith.constant 0 : index
    %c0_224 = arith.constant 0 : index
    %c0_225 = arith.constant 0 : index
    %c0_226 = arith.constant 0 : index
    %287 = vector.load %arg5[%c0_223, %c0_224, %c0_225, %c0_226] : memref<1x1x2x10xf32, #tpu.memory_space<vmem>>, vector<1x1x1x10xf32>
    %288 = vector.shape_cast %287 : vector<1x1x1x10xf32> to vector<1x10xf32>
    %289 = vector.shape_cast %279 : vector<1x10xf32> to vector<1x1x1x10xf32>
    tpu.vector_store %arg5[%c0_223, %c0_224, %c0_225, %c0_226], %289 {strides = array<i32>} : memref<1x1x2x10xf32, #tpu.memory_space<vmem>>, vector<1x1x1x10xf32>,
    %c0_227 = arith.constant 0 : index
    %c0_228 = arith.constant 0 : index
    %c1 = arith.constant 1 : index
    %c0_229 = arith.constant 0 : index
    %290 = vector.load %arg5[%c0_227, %c0_228, %c1, %c0_229] : memref<1x1x2x10xf32, #tpu.memory_space<vmem>>, vector<1x1x1x10xf32>
    %291 = vector.shape_cast %290 : vector<1x1x1x10xf32> to vector<1x10xf32>
    %292 = vector.shape_cast %286 : vector<1x10xf32> to vector<1x1x1x10xf32>
    tpu.vector_store %arg5[%c0_227, %c0_228, %c1, %c0_229], %292 {strides = array<i32>} : memref<1x1x2x10xf32, #tpu.memory_space<vmem>>, vector<1x1x1x10xf32>,
    return
  }
  func.func @transform_0(%arg0: i32, %arg1: i32) -> (i32, i32, i32, i32) {
    %c0_i32 = arith.constant 0 : i32
    %c0_i32_0 = arith.constant 0 : i32
    %c0_i32_1 = arith.constant 0 : i32
    %c0_i32_2 = arith.constant 0 : i32
    return %arg0, %c0_i32, %c0_i32_0, %c0_i32_1 : i32, i32, i32, i32
  }
  func.func @transform_1(%arg0: i32, %arg1: i32) -> (i32, i32) {
    %c0_i32 = arith.constant 0 : i32
    %c0_i32_0 = arith.constant 0 : i32
    %c0_i32_1 = arith.constant 0 : i32
    return %c0_i32, %c0_i32_0 : i32, i32
  }
  func.func @transform_2(%arg0: i32, %arg1: i32) -> (i32, i32, i32, i32) {
    %c0_i32 = arith.constant 0 : i32
    %c0_i32_0 = arith.constant 0 : i32
    %c0_i32_1 = arith.constant 0 : i32
    return %arg0, %arg1, %c0_i32, %c0_i32_0 : i32, i32, i32, i32
  }
  func.func @transform_3(%arg0: i32, %arg1: i32) -> (i32, i32, i32, i32) {
    %c0_i32 = arith.constant 0 : i32
    %c0_i32_0 = arith.constant 0 : i32
    %c0_i32_1 = arith.constant 0 : i32
    return %arg0, %arg1, %c0_i32, %c0_i32_0 : i32, i32, i32, i32
  }
}

module attributes {stable_mosaic.version = 11 : i64} {
  func.func @_bn_prelu_kernel(%arg0: i32, %arg1: i32, %arg2: memref<1x8x8x10xbf16, #tpu.memory_space<vmem>>, %arg3: memref<1x10xf32, #tpu.memory_space<vmem>>, %arg4: memref<1x10xf32, #tpu.memory_space<vmem>>, %arg5: memref<1x10xf32, #tpu.memory_space<vmem>>, %arg6: memref<1x8x8x10xf32, #tpu.memory_space<vmem>>) attributes {dimension_semantics = [#tpu.dimension_semantics<parallel>, #tpu.dimension_semantics<parallel>], iteration_bounds = array<i64: 1, 2>, scalar_prefetch = 0 : i64, scratch_operands = 0 : i64, tpu.core_type = #tpu.core_type<tc>, window_params = [{transform_indices = @transform_0, window_bounds = array<i64: 1, 8, 8, 10>}, {pipeline_mode = #tpu.pipeline_mode<synchronous>, transform_indices = @transform_1, window_bounds = array<i64: 1, 10>}, {pipeline_mode = #tpu.pipeline_mode<synchronous>, transform_indices = @transform_2, window_bounds = array<i64: 1, 10>}, {pipeline_mode = #tpu.pipeline_mode<synchronous>, transform_indices = @transform_3, window_bounds = array<i64: 1, 10>}, {transform_indices = @transform_4, window_bounds = array<i64: 1, 8, 8, 10>}]} {
    %c0 = arith.constant 0 : index
    %c0_0 = arith.constant 0 : index
    %c0_1 = arith.constant 0 : index
    %c0_2 = arith.constant 0 : index
    %0 = vector.load %arg2[%c0, %c0_0, %c0_1, %c0_2] : memref<1x8x8x10xbf16, #tpu.memory_space<vmem>>, vector<1x8x8x10xbf16>
    %1 = arith.extf %0 : vector<1x8x8x10xbf16> to vector<1x8x8x10xf32>
    %c0_3 = arith.constant 0 : index
    %c0_4 = arith.constant 0 : index
    %2 = vector.load %arg3[%c0_3, %c0_4] : memref<1x10xf32, #tpu.memory_space<vmem>>, vector<1x10xf32>
    %3 = vector.shape_cast %2 : vector<1x10xf32> to vector<1x1x1x10xf32>
    %c0_5 = arith.constant 0 : index
    %c0_6 = arith.constant 0 : index
    %4 = vector.load %arg4[%c0_5, %c0_6] : memref<1x10xf32, #tpu.memory_space<vmem>>, vector<1x10xf32>
    %5 = vector.shape_cast %4 : vector<1x10xf32> to vector<1x1x1x10xf32>
    %c0_7 = arith.constant 0 : index
    %c0_8 = arith.constant 0 : index
    %6 = vector.load %arg5[%c0_7, %c0_8] : memref<1x10xf32, #tpu.memory_space<vmem>>, vector<1x10xf32>
    %7 = vector.shape_cast %6 : vector<1x10xf32> to vector<1x1x1x10xf32>
    %8 = vector.broadcast %3 : vector<1x1x1x10xf32> to vector<1x8x8x10xf32>
    %9 = arith.mulf %1, %8 : vector<1x8x8x10xf32>
    %10 = vector.broadcast %5 : vector<1x1x1x10xf32> to vector<1x8x8x10xf32>
    %11 = arith.addf %9, %10 : vector<1x8x8x10xf32>
    %cst = arith.constant 0.000000e+00 : f32
    %12 = vector.broadcast %cst : f32 to vector<1x8x8x10xf32>
    %13 = arith.cmpf ogt, %11, %12 : vector<1x8x8x10xf32>
    %14 = vector.broadcast %7 : vector<1x1x1x10xf32> to vector<1x8x8x10xf32>
    %15 = arith.mulf %14, %11 : vector<1x8x8x10xf32>
    %16 = arith.select %13, %11, %15 : vector<1x8x8x10xi1>, vector<1x8x8x10xf32>
    %c0_9 = arith.constant 0 : index
    %c0_10 = arith.constant 0 : index
    %c0_11 = arith.constant 0 : index
    %c0_12 = arith.constant 0 : index
    %17 = vector.load %arg6[%c0_9, %c0_10, %c0_11, %c0_12] : memref<1x8x8x10xf32, #tpu.memory_space<vmem>>, vector<1x8x8x10xf32>
    tpu.vector_store %arg6[%c0_9, %c0_10, %c0_11, %c0_12], %16 {strides = array<i32>} : memref<1x8x8x10xf32, #tpu.memory_space<vmem>>, vector<1x8x8x10xf32>,
    return
  }
  func.func @transform_0(%arg0: i32, %arg1: i32) -> (i32, i32, i32, i32) {
    %c0_i32 = arith.constant 0 : i32
    %c0_i32_0 = arith.constant 0 : i32
    %c0_i32_1 = arith.constant 0 : i32
    return %arg1, %arg0, %c0_i32, %c0_i32_0 : i32, i32, i32, i32
  }
  func.func @transform_1(%arg0: i32, %arg1: i32) -> (i32, i32) {
    %c0_i32 = arith.constant 0 : i32
    %c0_i32_0 = arith.constant 0 : i32
    %c0_i32_1 = arith.constant 0 : i32
    return %c0_i32, %c0_i32_0 : i32, i32
  }
  func.func @transform_2(%arg0: i32, %arg1: i32) -> (i32, i32) {
    %c0_i32 = arith.constant 0 : i32
    %c0_i32_0 = arith.constant 0 : i32
    %c0_i32_1 = arith.constant 0 : i32
    return %c0_i32, %c0_i32_0 : i32, i32
  }
  func.func @transform_3(%arg0: i32, %arg1: i32) -> (i32, i32) {
    %c0_i32 = arith.constant 0 : i32
    %c0_i32_0 = arith.constant 0 : i32
    %c0_i32_1 = arith.constant 0 : i32
    return %c0_i32, %c0_i32_0 : i32, i32
  }
  func.func @transform_4(%arg0: i32, %arg1: i32) -> (i32, i32, i32, i32) {
    %c0_i32 = arith.constant 0 : i32
    %c0_i32_0 = arith.constant 0 : i32
    %c0_i32_1 = arith.constant 0 : i32
    return %arg1, %arg0, %c0_i32, %c0_i32_0 : i32, i32, i32, i32
  }
}

</mosaic_0001>

<bundles_post_ra>
// kernel: stride_esp_forward.3
= control target key start
LH: loop header
LB: loop body
LE: loop exit
PB: predicated region body
PF: predicated region fallthrough
CT: control target
= control target key end

     0   :  { %s995_s9 = smov 0   ;;  %s997_s10 = smov 0   ;;  %s1141_s0 = inlined_call_operand.vmem [shape: bf16[2,4,9,9,4], index: 0, kind: input, shape index: {}]   ;;  %s1142_s1 = inlined_call_operand.vmem [shape: bf16[36,2], index: 1, kind: input, shape index: {}]   ;;  %s1143_s2 = inlined_call_operand.vmem [shape: bf16[2,8,8,2], index: 2, kind: output, shape index: {}]  }
   0x1   :  { %s999_s11 = smov 0   ;;  %s1001_s12 = smov 0  }
   0x2   :  { %s1003_s13 = smov 0  }
   0x3 LB: > { %s21_s14 = sadd.s32 1, %s962_s11  ;;  %s24_s15 = sadd.s32 1, %s966_s12  ;;  %s970_s13 = sphi %s1003_s13, %s12_s13   ;;  %s966_s12 = sphi %s1001_s12, %s1149_s12   ;;  %s962_s11 = sphi %s999_s11, %s1148_s11   ;;  %s958_s10 = sphi %s997_s10, %s1147_s10   ;;  %s954_s9 = sphi %s995_s9, %s1146_s9  }
   0x4   : > { %p22_p0 = scmp.ge.s32.totalorder %s21_s14, 2  ;;  %p764_p1 = scmp.ge.s32.totalorder %s970_s13, 1 }
   0x5   : > { %p126_p2 = scmp.lt.s32.totalorder %s970_s13, 5 }
   0x6   : > { %s1151_s14 = smov (%p22_p0, %s21_s14), 0  ;;  %s1153_s15 = smov (!%p22_p0, %s24_s15), %s966_s12 }
   0x7   : > { %p127_p3 = pnand %p764_p1, %p126_p2  ;;  %p26_p4 = scmp.ge.s32.totalorder %s1153_s15, 2 }
   0x8   : > { %p152_p5 = scmp.lt.s32.totalorder (!%p127_p3), %s958_s10, 1  ;;  %s845_s17 = sshll.u32 (!%p127_p3), %s954_s9, 5  ;;  %vm225_vm0 = vsmask.f32 (!%p127_p3), 3328  ;;  %vm226_vm1 = vsmask.f32 (!%p127_p3), 7440 }
   0x9   : > { %s1155_s15 = smov (%p26_p4, %s1153_s15), 0  ;;  %130 = sbr.rel (%p127_p3) target bundleno = 401 (0x191), region = 28 }
   0xa   : > { %s972_s22 = smov (!%p127_p3), 12   ;;  %s973_s23 = smov (!%p127_p3), 4   ;;  %vm1057_vm2 = vmor (!%p127_p3), %vm225_vm0, %vm226_vm1  ;;  %vm188_vm3 = vcmask (!%p127_p3), 31744   ;;  %vm591_vm4 = vcmask (!%p127_p3), 1041408   ;;  %vm214_vm5 = vcmask (!%p127_p3), 64544   ;;  %vm296_vm6 = vcmask (!%p127_p3), 97344  }
   0xb   : > { %s974_s24 = smov (!%p127_p3), 16   ;;  %s975_s25 = smov (!%p127_p3), 24   ;;  %vm322_vm7 = vcmask (!%p127_p3), 130144   ;;  %vm348_vm8 = vcmask (!%p127_p3), 162944   ;;  %vm427_vm9 = vcmask (!%p127_p3), 195744   ;;  %vm454_vm10 = vcmask (!%p127_p3), 228544  }
   0xc   : > { %s976_s26 = smov (!%p127_p3), 8   ;;  %s977_s27 = smov (!%p127_p3), 20   ;;  %vm480_vm11 = vcmask (!%p127_p3), 261344   ;;  %vm559_vm12 = vcmask (!%p127_p3), 294144   ;;  %vm584_vm13 = vcmask (!%p127_p3), 293888   ;;  %vm648_vm14 = vcmask (!%p127_p3), 11264  }
   0xd   : > { %s978_s4 = smov (!%p127_p3), 28   ;;  %s979_s7 = smov (!%p127_p3), 32  }
   0xe   : > { %s766_s8 = sshll.u32 (!%p127_p3), %s954_s9, 2 }
   0xf   : > { %p160_p6 = scmp.lt.s32.totalorder (!%p127_p3), %s766_s8, 7 }
  0x10   : > { %s1157_s10 = smov (!%p152_p5, %s958_s10), 1 }
  0x11   : > { %s868_s16 = smul.u32 288, %s1157_s10  ;;  %s1159_s8 = smov (!%p160_p6, %s766_s8), 7 }
  0x13   : > { %s156_s20 = scalar_lea.vmem %s1141_s0, %s868_s16  ;;  %s767_s16 = sshll.u32 %s1157_s10, 3 }
  0x14   : > { %s1034_s21 = scalar_lea.vmem %s156_s20, %s845_s17  ;;  %s163_s17 = sadd.s32 %s767_s16, %s1159_s8 }
  0x15   : > { %v917_v0 = vld [vmem:[%s1034_s21 + $0xa0] ss:$8 sps:$4 sm:$0xff]   ;;  %v922_v5 = vld [vmem:[%s1034_s21 + $0x90] ss:$8 sps:$4 sm:$0xff]   ;;  %v218_v7 = vld [vmem:[%s1034_s21 + $0x4] sm:$0x1] }
  0x16   : > { %v918_v1 = vld [vmem:[%s1034_s21 + $0x48] ss:$8 sps:$4 sm:$0xff]   ;;  %318 = vrot.lane.b32.xlu1 %v917_v0, %s972_s22  ;;  %v920_v3 = vld [vmem:[%s1034_s21 + $0x58] ss:$8 sps:$4 sm:$0xff]   ;;  %v220_v9 = vld [vmem:[%s1034_s21 + $0xc] sm:$0x1] }
  0x17   : > { %v919_v2 = vld [vmem:[%s1034_s21 + $0xe8] ss:$8 sps:$4 sm:$0xff]   ;;  %208 = vrot.lane.b32.xlu0 %v918_v1, %s973_s23  ;;  %v921_v4 = vld [vmem:[%s1034_s21 + $0x18] ss:$8 sps:$4 sm:$0xff]   ;;  %v238_v12 = vshll.u32 %v218_v7, 16  ;;  %v252_v15 = vshll.u32 %v220_v9, 16 }
  0x18   : > { %v217_v6 = vld [vmem:[%s1034_s21] sm:$0xf]  ;;  %v219_v8 = vld [vmem:[%s1034_s21 + $0x8] sm:$0xf]  ;;  %v221_v23 = vld [vmem:[%s1034_s21 + $0x10] sm:$0xf] }
  0x19   : > { %v229_v10 = vshrl.u32 %v217_v6, 16  ;;  %v232_v11 = vshll.u32 %v217_v6, 16  ;;  %v243_v13 = vshrl.u32 %v219_v8, 16  ;;  %v246_v14 = vshll.u32 %v219_v8, 16  ;;  %v923_v20 = vld [vmem:[%s1034_s21 + $0xd8] ss:$8 sps:$4 sm:$0xff]  }
  0x1a   : > { %344 = vrot.lane.b32.xlu1 %v919_v2, %s974_s24  ;;  %v240_v18 = vrot.slane %v238_v12, 5  ;;  %v254_v22 = vrot.slane %v252_v15, 5  ;;  %v222_v24 = vld [vmem:[%s1034_s21 + $0x14] sm:$0x1]  ;;  %v223_v26 = vld [vmem:[%s1034_s21 + $0x18] sm:$0xf] }
  0x1b   : > { %210 = vrot.lane.b32.xlu0 %v920_v3, %s973_s23  ;;  %v231_v16 = vrot.slane %v229_v10, 4  ;;  %v234_v17 = vrot.slane %v232_v11, 5  ;;  %v245_v19 = vrot.slane %v243_v13, 4  ;;  %v248_v21 = vrot.slane %v246_v14, 5  ;;  %v224_v27 = vld [vmem:[%s1034_s21 + $0x1c] sm:$0x1] }
  0x1c   : > { %v257_v28 = vshrl.u32 %v221_v23, 16  ;;  %v260_v29 = vshll.u32 %v221_v23, 16  ;;  %v266_v32 = vshll.u32 %v222_v24, 16  ;;  %v271_v33 = vshrl.u32 %v223_v26, 16  ;;  %v924_v42 = vld [vmem:[%s1034_s21 + $0x8] ss:$8 sps:$4 sm:$0xff]  }
  0x1d   : > { %v235_v25 = vor.u32 %v234_v17, %v231_v16  ;;  %v249_v31 = vor.u32 %v248_v21, %v245_v19  ;;  %v274_v34 = vshll.u32 %v223_v26, 16  ;;  %v280_v38 = vshll.u32 %v224_v27, 16  ;;  %v804_v47 = vld [vmem:[%s1034_s21 + $0xa0] sm:$0xf]  ;;  %v805_v48 = vld [vmem:[%s1034_s21 + $0xa4] sm:$0x1] }
  0x1e   : > { %450 = vrot.lane.b32.xlu1 %v921_v4, %s975_s25  ;;  %v259_v36 = vrot.slane %v257_v28, 4  ;;  %v262_v37 = vrot.slane %v260_v29, 5  ;;  %v273_v40 = vrot.slane %v271_v33, 4  ;;  %v268_v45 = vrot.slane %v266_v32, 5  ;;  %v806_v51 = vld [vmem:[%s1034_s21 + $0xa8] sm:$0xf] }
  0x1f   : > { %316 = vrot.lane.b32.xlu0 %v922_v5, %s972_s22  ;;  %v236_v35 = vrot.slane %v235_v25, 4  ;;  %v250_v39 = vrot.slane %v249_v31, 4  ;;  %v276_v41 = vrot.slane %v274_v34, 5  ;;  %v282_v46 = vrot.slane %v280_v38, 5  ;;  %v807_v52 = vld [vmem:[%s1034_s21 + $0xac] sm:$0x1] }
  0x20   : > { %v263_v44 = vor.u32 %v262_v37, %v259_v36  ;;  %v388_v53 = vshrl.u32 %v804_v47, 16  ;;  %v391_v54 = vshll.u32 %v804_v47, 16  ;;  %v397_v57 = vshll.u32 %v805_v48, 16  ;;  %v800_v59 = vld [vmem:[%s1034_s21 + $0x90] sm:$0xf]  ;;  %s768_s18 = sshll.u32 %s163_s17, 2 }
  0x21   : > { %v241_v43 = vsel %vm1057_vm2, %v236_v35, %v240_v18  ;;  %v255_v49 = vsel %vm1057_vm2, %v250_v39, %v254_v22  ;;  %v277_v50 = vor.u32 %v276_v41, %v273_v40  ;;  %v402_v58 = vshrl.u32 %v806_v51, 16  ;;  %v801_v0 = vld [vmem:[%s1034_s21 + $0x94] sm:$0x1]  ;;  %v802_v5 = vld [vmem:[%s1034_s21 + $0x98] sm:$0xf] }
  0x22   : > { %v782_v55 = vcombine.low %v241_v43, %v255_v49  ;;  %v264_v56 = vrot.slane %v263_v44, 4  ;;  %v390_v61 = vrot.slane %v388_v53, 4  ;;  %v393_v62 = vrot.slane %v391_v54, 5  ;;  %v803_v9 = vld [vmem:[%s1034_s21 + $0x9c] sm:$0x1]  ;;  %v929_v54 = vld [vmem:[%s1142_s1] sm:$0xff]  }
  0x23   : > { %342 = vrot.lane.b32.xlu0 %v923_v20, %s974_s24  ;;  %v278_v60 = vrot.slane %v277_v50, 4  ;;  %v405_v63 = vshll.u32 %v806_v51, 16  ;;  %v399_v2 = vrot.slane %v397_v57, 5  ;;  %v404_v3 = vrot.slane %v402_v58, 4  ;;  %v827_v29 = vld [vmem:[%s1034_s21 + $0x8] sm:$0xf]  ;;  %857 = vmatprep.subr.bf16.mxu0 %v929_v54 }
  0x24   : > { %290 = vrot.lane.b32.xlu1 %v782_v55, %s976_s26  ;;  %v269_v1 = vsel %vm1057_vm2, %v264_v56, %v268_v45  ;;  %v411_v4 = vshll.u32 %v807_v52, 16  ;;  %v394_v7 = vor.u32 %v393_v62, %v390_v61  ;;  %v360_v10 = vshrl.u32 %v800_v59, 16  ;;  %v828_v31 = vld [vmem:[%s1034_s21 + $0xc] sm:$0x1]  ;;  %v829_v33 = vld [vmem:[%s1034_s21 + $0x10] sm:$0xf]  ;;  %858 = vmatpush3.bf16.msra.mxu0 %v929_v54 }
  0x25   : > { %v283_v6 = vsel %vm1057_vm2, %v278_v60, %v282_v46  ;;  %v407_v8 = vrot.slane %v405_v63, 5  ;;  %v363_v13 = vshll.u32 %v800_v59, 16  ;;  %v369_v14 = vshll.u32 %v801_v0, 16  ;;  %v830_v34 = vld [vmem:[%s1034_s21 + $0x14] sm:$0x1]  ;;  %v930_v59 = vld [vmem:[%s1142_s1 + $0x8] sm:$0xff]  }
  0x26   : > { %v783_v11 = vcombine.low %v269_v1, %v283_v6  ;;  %v413_v12 = vrot.slane %v411_v4, 5  ;;  %v395_v15 = vrot.slane %v394_v7, 4  ;;  %v362_v17 = vrot.slane %v360_v10, 4  ;;  %v926_v40 = vld [vmem:[%s1034_s21 + $0x60] ss:$8 sps:$4 sm:$0xff]   ;;  %859 = vmatprep.subr.bf16.mxu0 %v930_v59 }
  0x27   : > { %448 = vrot.lane.b32.xlu0 %v924_v42, %s975_s25  ;;  %v408_v16 = vor.u32 %v407_v8, %v404_v3  ;;  %v374_v18 = vshrl.u32 %v802_v5, 16  ;;  %v365_v19 = vrot.slane %v363_v13, 5  ;;  %v377_v20 = vshll.u32 %v802_v5, 16  ;;  %v831_v42 = vld [vmem:[%s1034_s21 + $0x18] sm:$0xf] }
  0x28   : > { %292 = vrot.lane.b32.xlu1 %v783_v11, %s976_s26  ;;  %v383_v21 = vshll.u32 %v803_v9, 16  ;;  %v400_v22 = vsel %vm1057_vm2, %v395_v15, %v399_v2  ;;  %v371_v24 = vrot.slane %v369_v14, 5  ;;  %v492_v35 = vshrl.u32 %v827_v29, 16  ;;  %v832_v43 = vld [vmem:[%s1034_s21 + $0x1c] sm:$0x1]  ;;  %860 = vmatpush3.bf16.msra.mxu0 %v930_v59 }
  0x29   : > { %v409_v23 = vrot.slane %v408_v16, 4  ;;  %v376_v25 = vrot.slane %v374_v18, 4  ;;  %v366_v26 = vor.u32 %v365_v19, %v362_v17  ;;  %v379_v27 = vrot.slane %v377_v20, 5  ;;  %v833_v48 = vld [vmem:[%s1034_s21 + $0x20] sm:$0xf] }
  0x2a   : > { %v385_v28 = vrot.slane %v383_v21, 5  ;;  %v495_v36 = vshll.u32 %v827_v29, 16  ;;  %v501_v41 = vshll.u32 %v828_v31, 16  ;;  %v494_v44 = vrot.slane %v492_v35, 4  ;;  %v834_v53 = vld [vmem:[%s1034_s21 + $0x24] sm:$0x1] }
  0x2b   : > { %v414_v32 = vsel %vm1057_vm2, %v409_v23, %v413_v12  ;;  %v367_v38 = vrot.slane %v366_v26, 4  ;;  %v380_v39 = vor.u32 %v379_v27, %v376_v25  ;;  %v506_v46 = vshrl.u32 %v829_v33, 16  ;;  %v925_v1 = vld [vmem:[%s1034_s21 + $0x50] ss:$8 sps:$4 sm:$0xff]   ;;  %v927_v5 = vld [vmem:[%s1034_s21] ss:$8 sps:$4 sm:$0xff]  }
  0x2c   : > { %v809_v37 = vcombine.low %v400_v22, %v414_v32  ;;  %v497_v45 = vrot.slane %v495_v36, 5  ;;  %v509_v47 = vshll.u32 %v829_v33, 16  ;;  %v503_v51 = vrot.slane %v501_v41, 5  ;;  %189 = vst.msk [vmem:[#allocation2] sm:$0xff] %vm188_vm3, %v927_v5  ;;  %v928_v12 = vld [vmem:[%s1034_s21 + $0x10] ss:$8 sps:$4 sm:$0xff]   ;;  %s165_s21 = scalar_lea.vmem %s1143_s2, %s768_s18 }
  0x2d   : > { %v372_v49 = vsel %vm1057_vm2, %v367_v38, %v371_v24  ;;  %v381_v50 = vrot.slane %v380_v39, 4  ;;  %v515_v52 = vshll.u32 %v830_v34, 16  ;;  %v508_v56 = vrot.slane %v506_v46, 4  ;;  %v931_v17 = vld [vmem:[%s1142_s1 + $0x10] ss:$0 sps:$4 sm:$0x33]  }
  0x2e   : > { %423 = vrot.lane.b32.xlu1 %v809_v37, %s977_s27  ;;  %v498_v55 = vor.u32 %v497_v45, %v494_v44  ;;  %v511_v57 = vrot.slane %v509_v47, 5  ;;  %v520_v58 = vshrl.u32 %v831_v42, 16  ;;  %v523_v62 = vshll.u32 %v831_v42, 16  ;;  %190 = vst.msk [vmem:[#allocation2 + $0x8] sm:$0xff] %vm188_vm3, %v928_v12  ;;  %867 = vmatprep.subr.msk.bf16.mxu0 %vm591_vm4, %v931_v17 }
  0x2f   : > { %v386_v60 = vsel %vm1057_vm2, %v381_v50, %v385_v28  ;;  %v517_v61 = vrot.slane %v515_v52, 5  ;;  %v529_v63 = vshll.u32 %v832_v43, 16  ;;  %v534_v7 = vshrl.u32 %v833_v48, 16 }
  0x30   : > { %v808_v0 = vcombine.low %v372_v49, %v386_v60  ;;  %v499_v2 = vrot.slane %v498_v55, 4  ;;  %v512_v3 = vor.u32 %v511_v57, %v508_v56  ;;  %v522_v4 = vrot.slane %v520_v58, 4 }
  0x31   : > { %v525_v6 = vrot.slane %v523_v62, 5  ;;  %v537_v8 = vshll.u32 %v833_v48, 16  ;;  %v531_v10 = vrot.slane %v529_v63, 5  ;;  %v543_v11 = vshll.u32 %v834_v53, 16 }
  0x32   : > { %476 = vrot.lane.b32.xlu1 %v926_v40, %s978_s4  ;;  %421 = vrot.lane.b32.xlu0 %v808_v0, %s977_s27  ;;  %v513_v9 = vrot.slane %v512_v3, 4  ;;  %v504_v13 = vsel %vm1057_vm2, %v499_v2, %v503_v51  ;;  %v536_v15 = vrot.slane %v534_v7, 4  ;;  %v593_v25 = vsel %vm591_vm4, %v931_v17, 0 }
  0x33   : > { %v526_v14 = vor.u32 %v525_v6, %v522_v4  ;;  %v539_v16 = vrot.slane %v537_v8, 5  ;;  %v545_v21 = vrot.slane %v543_v11, 5  ;;  %862 = vmatpush3.bf16.msra.mxu0 %v593_v25 }
  0x34   : > { %v518_v18 = vsel %vm1057_vm2, %v513_v9, %v517_v61 }
  0x35   : > { %v527_v19 = vrot.slane %v526_v14, 4  ;;  %v540_v20 = vor.u32 %v539_v16, %v536_v15  ;;  %v835_v22 = vcombine.low %v504_v13, %v518_v18 }
  0x36   : > { %474 = vrot.lane.b32.xlu0 %v925_v1, %s978_s4 }
  0x37   : > { %v532_v23 = vsel %vm1057_vm2, %v527_v19, %v531_v10  ;;  %v541_v24 = vrot.slane %v540_v20, 4 }
  0x39   : > { %v546_v26 = vsel %vm1057_vm2, %v541_v24, %v545_v21 }
  0x3a   : > { %553 = vrot.lane.b32.xlu0 %v835_v22, %s979_s7  ;;  %v836_v27 = vcombine.low %v532_v23, %v546_v26 }
  0x3c   : > { %555 = vrot.lane.b32.xlu1 %v836_v27, %s979_s7 }
  0x88   : > { %v319_v28 = vpop.permute.xlu1 %318 }
  0x89   : > { %v209_v29 = vpop.permute.xlu0 %208 }
  0x8a   : > { %215 = vst.msk [vmem:[#allocation2] sm:$0xff] %vm214_vm5, %v209_v29 }
  0x8c   : > { %v345_v31 = vpop.permute.xlu1 %344 }
  0x8d   : > { %v211_v32 = vpop.permute.xlu0 %210 }
  0x8e   : > { %216 = vst.msk [vmem:[#allocation2 + $0x8] sm:$0xff] %vm214_vm5, %v211_v32 }
  0x90   : > { %v451_v33 = vpop.permute.xlu1 %450 }
  0x91   : > { %v317_v34 = vpop.permute.xlu0 %316 }
  0x95   : > { %v343_v30 = vpop.permute.xlu0 %342 }
  0x96   : > { %v291_v35 = vpop.permute.xlu1 %290 }
  0x97   : > { %297 = vst.msk [vmem:[#allocation2] sm:$0xff] %vm296_vm6, %v291_v35 }
  0x98   : > { %323 = vst.msk [vmem:[#allocation2] sm:$0xff] %vm322_vm7, %v317_v34 }
  0x99   : > { %349 = vst.msk [vmem:[#allocation2] sm:$0xff] %vm348_vm8, %v343_v30  ;;  %v449_v37 = vpop.permute.xlu0 %448 }
  0x9a   : > { %v293_v36 = vpop.permute.xlu1 %292 }
  0x9b   : > { %298 = vst.msk [vmem:[#allocation2 + $0x8] sm:$0xff] %vm296_vm6, %v293_v36 }
  0x9c   : > { %324 = vst.msk [vmem:[#allocation2 + $0x8] sm:$0xff] %vm322_vm7, %v319_v28 }
  0x9d   : > { %350 = vst.msk [vmem:[#allocation2 + $0x8] sm:$0xff] %vm348_vm8, %v345_v31 }
  0xa0   : > { %v424_v38 = vpop.permute.xlu1 %423 }
  0xa1   : > { %429 = vst.msk [vmem:[#allocation2 + $0x8] sm:$0xff] %vm427_vm9, %v424_v38 }
  0xa2   : > { %456 = vst.msk [vmem:[#allocation2 + $0x8] sm:$0xff] %vm454_vm10, %v451_v33 }
  0xa4   : > { %v477_v39 = vpop.permute.xlu1 %476  ;;  %v422_v40 = vpop.permute.xlu0 %421 }
  0xa5   : > { %482 = vst.msk [vmem:[#allocation2 + $0x8] sm:$0xff] %vm480_vm11, %v477_v39 }
  0xa6   : > { %428 = vst.msk [vmem:[#allocation2] sm:$0xff] %vm427_vm9, %v422_v40 }
  0xa7   : > { %455 = vst.msk [vmem:[#allocation2] sm:$0xff] %vm454_vm10, %v449_v37 }
  0xa8   : > { %v475_v41 = vpop.permute.xlu0 %474 }
  0xa9   : > { %481 = vst.msk [vmem:[#allocation2] sm:$0xff] %vm480_vm11, %v475_v41 }
  0xac   : > { %v554_v42 = vpop.permute.xlu0 %553 }
  0xad   : > { %560 = vst.msk [vmem:[#allocation2] sm:$0xff] %vm559_vm12, %v554_v42 }
  0xae   : > { %v556_v43 = vpop.permute.xlu1 %555 }
  0xaf   : > { %561 = vst.msk [vmem:[#allocation2 + $0x8] sm:$0xff] %vm559_vm12, %v556_v43 }
  0xb4   : > { %v562_v44 = vld [vmem:[#allocation2] sm:$0xff] }
  0xb5   : > { %863 = vmatprep.mubr.msk.bf16.mxu0 %vm584_vm13, %v562_v44 }
  0xb6   : > { %v563_v45 = vld [vmem:[#allocation2 + $0x8] sm:$0xff] }
  0xb7   : > { %864 = vmatmul.mubr.msk.bf16.vlgmr.msra.gmra.mrb[0].mxu0 %vm584_vm13, %v563_v45 }
 0x18a   : > { %v865_v46 = vpop.f32.mrb[0].mxu0 }
 0x18b   : > { %v646_v47 = vpack.c.bf16 %v865_v46, %v865_v46  ;;  %v629_v48 = vpop.f32.mrb[1].mxu0 }
 0x18c   : > { %v644_v49 = vpack.c.bf16 %v629_v48, %v629_v48  ;;  %v866_v50 = vpop.f32.mrb[2].mxu0 }
 0x18d   : > { %651 = vst.msk [vmem:[%s165_s21 + $0x8] sm:$0xf] %vm648_vm14, %v646_v47  ;;  %v647_v51 = vpack.c.bf16 %v866_v50, %v866_v50  ;;  %v632_v52 = vpop.f32.mrb[3].mxu0 }
 0x18e   : > { %649 = vst.msk [vmem:[%s165_s21] sm:$0xf] %vm648_vm14, %v644_v49  ;;  %v645_v53 = vpack.c.bf16 %v632_v52, %v632_v52 }
 0x18f   : > { %652 = vst.msk [vmem:[%s165_s21 + $0xc] sm:$0xf] %vm648_vm14, %v647_v51 }
 0x190   : > { %650 = vst.msk [vmem:[%s165_s21 + $0x4] sm:$0xf] %vm648_vm14, %v645_v53 }
 0x191 PF: > { %s12_s13 = sadd.s32 1, %s970_s13   ;;  %s1146_s9 = smov %s962_s11 }
 0x192   : > { %p9_p7 = scmp.ge.s32.totalorder %s12_s13, 6   ;;  %s1147_s10 = smov %s966_s12 }
 0x193   : > { %s1148_s11 = smov %s1151_s14  ;;  %s1149_s12 = smov %s1155_s15 }
 0x194   :  { %11 = sbr.rel (!%p9_p7) target bundleno = 3 (0x3), region = 64 }

// kernel: stride_esp_forward.5
= control target key start
LH: loop header
LB: loop body
LE: loop exit
PB: predicated region body
PF: predicated region fallthrough
CT: control target
= control target key end

     0   :  { %9 = vsyncpa [#allocation3], 0  ;;  %s746_s0 = inlined_call_operand.vmem [shape: bf16[2,8,8,10], index: 0, kind: input, shape index: {}]   ;;  %s747_s1 = inlined_call_operand.vmem [shape: f32[1,10], index: 1, kind: input, shape index: {}]   ;;  %s748_s2 = inlined_call_operand.vmem [shape: f32[1,10], index: 2, kind: input, shape index: {}]   ;;  %s749_s3 = inlined_call_operand.vmem [shape: f32[1,10], index: 3, kind: input, shape index: {}]   ;;  %s750_s4 = inlined_call_operand.hbm [shape: f32[2,8,8,10], index: 4, kind: output, shape index: {}]  }
   0x1   :  { %11 = vsyncpa [#allocation3 + $0x1], 0  ;;  %s610_s15 = smov 0   ;;  %s612_s16 = smov 0  }
   0x2   :  { %s614_s17 = smov 0   ;;  %s616_s18 = smov 0  }
   0x3   :  { %s618_s19 = smov 0   ;;  %s620_s20 = smov 0  }
   0x4 LB: > { %s408_s21 = sadd.s32 4294967295, %s580_s20   ;;  %s409_s22 = sadd.s32 4294967294, %s580_s20   ;;  %s580_s20 = sphi %s620_s20, %s17_s20   ;;  %s576_s19 = sphi %s618_s19, %s757_s19   ;;  %s572_s18 = sphi %s616_s18, %s756_s18   ;;  %s568_s17 = sphi %s614_s17, %s755_s17   ;;  %s564_s16 = sphi %s612_s16, %s754_s16   ;;  %s560_s15 = sphi %s610_s15, %s753_s15  }
   0x5   : > { %s26_s23 = sadd.s32 1, %s576_s19  ;;  %s129_s24 = sadd.s32 1, %s568_s17 }
   0x6   : > { %p27_p0 = scmp.ge.s32.totalorder %s26_s23, 2  ;;  %p139_p1 = scmp.ne.s32.totalorder %s568_s17, %s564_s16 }
   0x7   : > { %p140_p2 = scmp.eq.s32.totalorder %s408_s21, 1  ;;  %p145_p3 = scmp.ne.s32.totalorder %s564_s16, %s560_s15 }
   0x8   : > { %s759_s23 = smov (%p27_p0, %s26_s23), 0  ;;  %p146_p5 = scmp.eq.s32.totalorder %s409_s22, 1 }
   0x9   : > { %p650_p4 = por %p140_p2, %p139_p1  ;;  %s124_s26 = ssub.s32 %s576_s19, %s759_s23 }
   0xa   : > { %p412_p6 = scmp.ge.s32.totalorder %s580_s20, 1  ;;  %p127_p7 = scmp.eq.s32.totalorder %s124_s26, 0 }
   0xb   : > { %p657_p8 = por %p146_p5, %p145_p3  ;;  %p186_p9 = scmp.lt.s32.totalorder %s580_s20, 3 }
   0xc   : > { %s663_s28 = scalar_select %p127_p7, %s568_s17, %s129_s24  }
   0xd   : > { %p187_p10 = pnand %p412_p6, %p186_p9 }
   0xe   : > { %p217_p11 = scmp.lt.s32.totalorder (!%p187_p10), %s572_s18, 1  ;;  %v416_v0 = vld [vmem:[%s747_s1] ss:$0 sm:$0xff] (!%p187_p10)  ;;  %s213_s10 = sand.u32 (!%p187_p10), 1, %s564_s16   ;;  %vm304_vm0 = vcmask (!%p187_p10), 80896  }
   0xf   : > { %190 = sbr.rel (%p187_p10) target bundleno = 56 (0x38), region = 36  ;;  %v417_v9 = vld [vmem:[%s748_s2] ss:$0 sm:$0xff] (!%p187_p10)  ;;  %s413_s13 = sshll.u32 (!%p187_p10), %s213_s10, 6 }
  0x10   : > { %v418_v18 = vld [vmem:[%s749_s3] ss:$0 sm:$0xff] (!%p187_p10)  ;;  %s215_s22 = scalar_lea.vmem (!%p187_p10), [#allocation2], %s413_s13  ;;  %s425_s26 = sshll.u32 (!%p187_p10), %s572_s18, 10 }
  0x11   : > { %s329_s24 = sshll.u32 (!%p187_p10), %s215_s22, 4  ;;  %s700_s5 = scalar_lea.sflag (!%p187_p10), [#allocation3], %s213_s10  ;;  %s687_s24 = int_to_ptr.vmem [resolvable:$true] %s329_s24 }
  0x12   : > { %s502_s6 = scalar_lea.vmem (!%p187_p10), %s687_s24, 1024 }
  0x13   : > { %p503_p12 = scmp.ne.s32.totalorder (!%p187_p10), %s687_s24, %s502_s6 }
  0x15   : > { %p504_p13 = pnand (!%p187_p10), %p503_p12, %p650_p4 }
  0x16   : > { %s218_s29 = scalar_select %p217_p11, %s572_s18, 1 }
  0x17   : > { %p505_p0 = pneg %p504_p13 }
  0x18   : > { %s424_s30 = sshll.u32 %s218_s29, 5 }
  0x19   : > { %s224_s7 = scalar_lea.vmem %s746_s0, %s424_s30  ;;  %s693_s30 = scalar_lea.hbm %s750_s4, %s425_s26 }
  0x1a   : > { %v427_v1 = vld [vmem:[%s224_s7] sm:$0xff]   ;;  %v442_v2 = vld [vmem:[%s224_s7 + $0x8] sm:$0xff]   ;;  %v443_v3 = vld [vmem:[%s224_s7 + $0x10] sm:$0xff]  }
  0x1b   : > { %v428_v4 = vunpack.c.l.bf16 %v427_v1  ;;  %v429_v5 = vunpack.c.h.bf16 %v427_v1  ;;  %v432_v6 = vunpack.c.l.bf16 %v442_v2  ;;  %v433_v7 = vunpack.c.h.bf16 %v442_v2  ;;  %v444_v8 = vld [vmem:[%s224_s7 + $0x18] sm:$0xff]   ;;  %s582_s7 = smov [#allocation2]  }
  0x1c   : > { %v436_v10 = vunpack.c.l.bf16 %v443_v3  ;;  %v437_v11 = vunpack.c.h.bf16 %v443_v3  ;;  %v440_v12 = vunpack.c.l.bf16 %v444_v8  ;;  %v441_v13 = vunpack.c.h.bf16 %v444_v8  ;;  %s506_s8 = sshll.u32 %s582_s7, 4  ;;  %s507_s8 = int_to_ptr.vmem [resolvable:$false] %s506_s8 }
  0x1d   : > { %v252_v14 = vmul.f32 %v428_v4, %v416_v0  ;;  %v253_v15 = vmul.f32 %v429_v5, %v416_v0  ;;  %v254_v16 = vmul.f32 %v432_v6, %v416_v0  ;;  %v255_v17 = vmul.f32 %v433_v7, %v416_v0  ;;  %s508_s9 = scalar_lea.vmem %s507_s8, 2048  ;;  %p509_p1 = scmp.lt.s32.totalorder %s687_s24, %s507_s8 }
  0x1e   : > { %v256_v19 = vmul.f32 %v436_v10, %v416_v0  ;;  %v257_v20 = vmul.f32 %v437_v11, %v416_v0  ;;  %v258_v21 = vmul.f32 %v440_v12, %v416_v0  ;;  %v259_v22 = vmul.f32 %v441_v13, %v416_v0  ;;  %p510_p2 = scmp.lt.s32.totalorder %s508_s9, %s502_s6 }
  0x1f   : > { %v266_v23 = vadd.f32 %v417_v9, %v252_v14  ;;  %v267_v24 = vadd.f32 %v417_v9, %v253_v15  ;;  %v268_v25 = vadd.f32 %v417_v9, %v254_v16  ;;  %v269_v26 = vadd.f32 %v417_v9, %v255_v17 }
  0x20   : > { %v270_v27 = vadd.f32 %v417_v9, %v256_v19  ;;  %v271_v28 = vadd.f32 %v417_v9, %v257_v20  ;;  %v272_v29 = vadd.f32 %v417_v9, %v258_v21  ;;  %v273_v30 = vadd.f32 %v417_v9, %v259_v22  ;;  %p511_p3 = por %p510_p2, %p509_p1 }
  0x21   : > { %vm274_vm1 = vcmp.gt.f32.partialorder %v266_v23, 0.0  ;;  %v288_v31 = vmul.f32 %v418_v18, %v266_v23  ;;  %vm275_vm2 = vcmp.gt.f32.partialorder %v267_v24, 0.0  ;;  %v289_v32 = vmul.f32 %v418_v18, %v267_v24 }
  0x22   : > { %vm276_vm3 = vcmp.gt.f32.partialorder %v268_v25, 0.0  ;;  %v290_v33 = vmul.f32 %v418_v18, %v268_v25  ;;  %vm277_vm4 = vcmp.gt.f32.partialorder %v269_v26, 0.0  ;;  %v291_v34 = vmul.f32 %v418_v18, %v269_v26  ;;  %p512_p5 = pnand %p511_p3, %p505_p0 }
  0x23   : > { %v296_v35 = vsel %vm274_vm1, %v266_v23, %v288_v31  ;;  %v297_v36 = vsel %vm275_vm2, %v267_v24, %v289_v32  ;;  %vm278_vm5 = vcmp.gt.f32.partialorder %v270_v27, 0.0  ;;  %v292_v37 = vmul.f32 %v418_v18, %v270_v27 }
  0x24   : > { %305 = vst.msk [vmem:[%s215_s22] sm:$0xff] %vm304_vm0, %v296_v35  ;;  %306 = vst.msk [vmem:[%s215_s22 + $0x8] sm:$0xff] %vm304_vm0, %v297_v36  ;;  %v298_v38 = vsel %vm276_vm3, %v268_v25, %v290_v33  ;;  %v299_v39 = vsel %vm277_vm4, %v269_v26, %v291_v34  ;;  %vm279_vm6 = vcmp.gt.f32.partialorder %v271_v28, 0.0  ;;  %v293_v40 = vmul.f32 %v418_v18, %v271_v28 }
  0x25   : > { %307 = vst.msk [vmem:[%s215_s22 + $0x10] sm:$0xff] %vm304_vm0, %v298_v38  ;;  %308 = vst.msk [vmem:[%s215_s22 + $0x18] sm:$0xff] %vm304_vm0, %v299_v39  ;;  %v300_v41 = vsel %vm278_vm5, %v270_v27, %v292_v37  ;;  %vm280_vm7 = vcmp.gt.f32.partialorder %v272_v29, 0.0  ;;  %v294_v42 = vmul.f32 %v418_v18, %v272_v29  ;;  %vm281_vm8 = vcmp.gt.f32.partialorder %v273_v30, 0.0 }
  0x26   : > { %309 = vst.msk [vmem:[%s215_s22 + $0x20] sm:$0xff] %vm304_vm0, %v300_v41  ;;  %v301_v43 = vsel %vm279_vm6, %v271_v28, %v293_v40  ;;  %v295_v44 = vmul.f32 %v418_v18, %v273_v30 }
  0x27   : > { %310 = vst.msk [vmem:[%s215_s22 + $0x28] sm:$0xff] %vm304_vm0, %v301_v43  ;;  %v302_v45 = vsel %vm280_vm7, %v272_v29, %v294_v42 }
  0x28   : > { %311 = vst.msk [vmem:[%s215_s22 + $0x30] sm:$0xff] %vm304_vm0, %v302_v45  ;;  %v303_v46 = vsel %vm281_vm8, %v273_v30, %v295_v44 }
  0x29   : > { %312 = vst.msk [vmem:[%s215_s22 + $0x38] sm:$0xff] %vm304_vm0, %v303_v46 }
  0x2a   : > { %515 = shalt.err (!%p512_p5)
}
  0x2b   : > { %s516_s10 = scalar_lea.hbm %s693_s30, 1024  ;;  %s520_s13 = scalar_lea.hbm %s750_s4, 2048 }
  0x2c   : > { %p517_p6 = scmp.ne.s32.totalorder %s693_s30, %s516_s10  ;;  %p521_p10 = scmp.lt.u32.totalorder %s693_s30, %s750_s4 }
  0x2d   : > { %p522_p11 = scmp.lt.u32.totalorder %s520_s13, %s516_s10  ;;  %p524_p13 = scmp.lt.u32.totalorder %s516_s10, %s693_s30 }
  0x2e   : > { %p518_p7 = pnand %p517_p6, %p650_p4 }
  0x2f   : > { %p523_p12 = por %p522_p11, %p521_p10 }
  0x30   : > { %p519_p9 = pneg %p518_p7 }
  0x31   : > { %p525_p0 = por %p524_p13, %p523_p12 }
  0x33   : > { %p526_p1 = pnand %p525_p0, %p519_p9 }
  0x35   : > { %529 = shalt.err (!%p526_p1)
}
  0x36   : > { %s583_s22 = smov 128   ;;  %s584_s26 = smov 8  }
  0x37   : > { %445 = dma.vmem_to_hbm [thread:$0]  (%p650_p4), %s687_s24, 1024, %s693_s30, %s700_s5, %s583_s22, %s583_s22, %s584_s26  }
  0x38 PF: > { %p451_p2 = scmp.ge.s32.totalorder %s580_s20, 2  ;;  %s344_s18 = sand.u32 1, %s560_s15  }
  0x39   : > { %s345_s29 = scalar_lea.sflag [#allocation3], %s344_s18 }
  0x3a   : > { %p448_p3 = pnand %p451_p2, %p657_p8 }
  0x3c   : > { %555 = dma.done.wait (!%p448_p3), %s345_s29, 1024  }
  0x3d   : > { %557 = vsyncadd (!%p448_p3), %s345_s29, 4294966272  ;;  %s17_s20 = sadd.s32 1, %s580_s20   ;;  %s753_s15 = smov %s564_s16 }
  0x3e   : > { %p14_p5 = scmp.ge.s32.totalorder %s17_s20, 4   ;;  %s754_s16 = smov %s568_s17 }
  0x3f   : > { %s755_s17 = smov %s663_s28  ;;  %s756_s18 = smov %s576_s19 }
  0x40   : > { %s757_s19 = smov %s759_s23  ;;  %16 = sbr.rel (!%p14_p5) target bundleno = 4 (0x4), region = 71 }
  0x47   :  { %350 = vsyncpa [#allocation3], 1 }
  0x48   :  { %352 = vsyncpa [#allocation3 + $0x1], 1 }

// kernel: stride_esp_forward.4
= control target key start
LH: loop header
LB: loop body
LE: loop exit
PB: predicated region body
PF: predicated region fallthrough
CT: control target
= control target key end

     0   :  { %s2957_s12 = smov 0   ;;  %s2959_s13 = smov 0   ;;  %s3464_s0 = inlined_call_operand.vmem [shape: bf16[2,40,40,2], index: 0, kind: input, shape index: {}]   ;;  %s3465_s1 = inlined_call_operand.vmem [shape: bf16[90,10], index: 1, kind: input, shape index: {}]   ;;  %s3466_s2 = inlined_call_operand.vmem [shape: bf16[2,8,8,10], index: 2, kind: output, shape index: {0}]   ;;  %s3467_s3 = inlined_call_operand.vmem [shape: f32[2,2,2,10], index: 3, kind: output, shape index: {1}]  }
   0x1   :  { %s2961_s14 = smov 0   ;;  %s2963_s15 = smov 0  }
   0x2   :  { %s2965_s16 = smov 0  }
   0x3 LB: > { %s23_s17 = sadd.s32 1, %s2883_s14  ;;  %s26_s18 = sadd.s32 1, %s2887_s15  ;;  %s2891_s16 = sphi %s2965_s16, %s14_s16   ;;  %s2887_s15 = sphi %s2963_s15, %s3481_s15   ;;  %s2883_s14 = sphi %s2961_s14, %s3480_s14   ;;  %s2879_s13 = sphi %s2959_s13, %s3479_s13   ;;  %s2875_s12 = sphi %s2957_s12, %s3478_s12  }
   0x4   : > { %p24_p0 = scmp.ge.s32.totalorder %s23_s17, 2  ;;  %p2252_p1 = scmp.ge.s32.totalorder %s2891_s16, 1 }
   0x5   : > { %p156_p2 = scmp.lt.s32.totalorder %s2891_s16, 5 }
   0x6   : > { %s3483_s17 = smov (%p24_p0, %s23_s17), 0  ;;  %s3485_s18 = smov (!%p24_p0, %s26_s18), %s2887_s15 }
   0x7   : > { %p157_p3 = pnand %p2252_p1, %p156_p2  ;;  %p28_p4 = scmp.ge.s32.totalorder %s3485_s18, 2 }
   0x8   : > { %p192_p5 = scmp.lt.s32.totalorder (!%p157_p3), %s2879_s13, 1  ;;  %s2261_s19 = smul.u32 (!%p157_p3), 80, %s2875_s12  ;;  %vm229_vm0 = vsmask.f32 (!%p157_p3), 256  ;;  %vm230_vm1 = vsmask.f32 (!%p157_p3), 4368 }
   0x9   : > { %s3487_s18 = smov (%p28_p4, %s3485_s18), 0  ;;  %160 = sbr.rel (%p157_p3) target bundleno = 602 (0x25a), region = 28 }
   0xa   : > { %s2893_s25 = smov (!%p157_p3), 2   ;;  %s2894_s26 = smov (!%p157_p3), 8   ;;  %vm3009_vm2 = vmor (!%p157_p3), %vm229_vm0, %vm230_vm1  ;;  %vm326_vm3 = vsmask.f32 (!%p157_p3), 3328  ;;  %vm327_vm4 = vsmask.f32 (!%p157_p3), 7440 }
   0xb   : > { %s2895_s27 = smov (!%p157_p3), 6   ;;  %s2896_s28 = smov (!%p157_p3), 12   ;;  %vm3047_vm5 = vmor (!%p157_p3), %vm326_vm3, %vm327_vm4  ;;  %vm782_vm6 = vcmask (!%p157_p3), 1040384   ;;  %vm783_vm7 = vcmask (!%p157_p3), 1044484   ;;  %vm855_vm8 = vcmask (!%p157_p3), 1042432   ;;  %vm856_vm9 = vcmask (!%p157_p3), 1046532  }
   0xc   : > { %s2897_s29 = smov (!%p157_p3), 4   ;;  %s2898_s30 = smov (!%p157_p3), 10   ;;  %vm3106_vm10 = vmor (!%p157_p3), %vm782_vm6, %vm783_vm7  ;;  %vm1147_vm12 = vcmask (!%p157_p3), 1041408   ;;  %vm1148_vm13 = vcmask (!%p157_p3), 1045508   ;;  %vm292_vm15 = vcmask (!%p157_p3), 15360   ;;  %vm315_vm0 = vcmask (!%p157_p3), 31760  }
   0xd   : > { %s2899_s4 = smov (!%p157_p3), 14   ;;  %s2900_s5 = smov (!%p157_p3), 16   ;;  %vm3130_vm11 = vmor (!%p157_p3), %vm855_vm8, %vm856_vm9  ;;  %vm397_vm1 = vcmask (!%p157_p3), 48160   ;;  %vm499_vm3 = vcmask (!%p157_p3), 80960   ;;  %vm578_vm4 = vcmask (!%p157_p3), 97360   ;;  %vm680_vm6 = vcmask (!%p157_p3), 130160  }
   0xe   : > { %s2901_s6 = smov (!%p157_p3), 18   ;;  %s2902_s7 = smov (!%p157_p3), 20   ;;  %vm3219_vm14 = vmor (!%p157_p3), %vm1147_vm12, %vm1148_vm13  ;;  %vm759_vm7 = vcmask (!%p157_p3), 146560   ;;  %vm813_vm8 = vcmask (!%p157_p3), 162960   ;;  %vm836_vm9 = vcmask (!%p157_p3), 179360   ;;  %vm956_vm12 = vcmask (!%p157_p3), 228560  }
   0xf   : > { %s2903_s8 = smov (!%p157_p3), 22   ;;  %s2904_s9 = smov (!%p157_p3), 24   ;;  %vm1974_vm13 = vcmask (!%p157_p3), 1044480  }
  0x10   : > { %s3489_s13 = smov (!%p192_p5, %s2879_s13), 1  ;;  %s2905_s10 = smov 26  }
  0x11   : > { %s2708_s20 = smul.u32 800, %s3489_s13  ;;  %s2906_s11 = smov 28  }
  0x12   : > { %s2909_s21 = smov 34   ;;  %s2910_s22 = smov 36  }
  0x13   : > { %s196_s23 = scalar_lea.vmem %s3464_s0, %s2708_s20  ;;  %s2908_s20 = smov 32  }
  0x14   : > { %s2996_s24 = scalar_lea.vmem %s196_s23, %s2261_s19  ;;  %s2907_s19 = smov 30  }
  0x15   : > { %v2793_v0 = vld [vmem:[%s2996_s24 + $0x134] ss:$20 sps:$4 sm:$0xff]   ;;  %v2794_v1 = vld [vmem:[%s2996_s24 + $0x170] ss:$20 sps:$4 sm:$0xff]   ;;  %v2298_v3 = vld [vmem:[%s2996_s24 + $0x16c] sm:$0x8] }
  0x16   : > { %309 = vrot.lane.b32.xlu0 %v2793_v0, %s2893_s25  ;;  %v2795_v2 = vld [vmem:[%s2996_s24 + $0x15c] ss:$20 sps:$4 sm:$0xff]   ;;  %495 = vrot.lane.b32.xlu1 %v2794_v1, %s2894_s26  ;;  %v2300_v5 = vld [vmem:[%s2996_s24 + $0x180] sm:$0x8]  ;;  %v439_v7 = vshrl.u32 %v2298_v3, 16  ;;  %s2911_s23 = smov 38  }
  0x17   : > { %v2299_v4 = vld [vmem:[%s2996_s24 + $0x170] sm:$0xf]  ;;  %v2301_v6 = vld [vmem:[%s2996_s24 + $0x184] sm:$0xf]  ;;  %v452_v10 = vshrl.u32 %v2300_v5, 16  ;;  %p209_p7 = scmp.lt.s32.totalorder %s2875_s12, 1 }
  0x18   : > { %v444_v8 = vshrl.u32 %v2299_v4, 16  ;;  %v447_v9 = vshll.u32 %v2299_v4, 16  ;;  %v457_v11 = vshrl.u32 %v2301_v6, 16  ;;  %v460_v12 = vshll.u32 %v2301_v6, 16  ;;  %v2796_v15 = vld [vmem:[%s2996_s24 + $0x148] ss:$20 sps:$4 sm:$0xff]  }
  0x19   : > { %v2304_v13 = vrot.slane %v439_v7, 11  ;;  %v2305_v17 = vrot.slane %v452_v10, 11  ;;  %v2330_v19 = vld [vmem:[%s2996_s24 + $0x180] sm:$0x8]  ;;  %v2331_v20 = vld [vmem:[%s2996_s24 + $0x184] sm:$0xf] }
  0x1a   : > { %311 = vrot.lane.b32.xlu0 %v2795_v2, %s2893_s25  ;;  %v446_v14 = vrot.slane %v444_v8, 7  ;;  %v459_v18 = vrot.slane %v457_v11, 7  ;;  %v2332_v22 = vld [vmem:[%s2996_s24 + $0x194] sm:$0x8]  ;;  %v2333_v23 = vld [vmem:[%s2996_s24 + $0x198] sm:$0xf] }
  0x1b   : > { %v620_v24 = vshrl.u32 %v2330_v19, 16  ;;  %v625_v25 = vshrl.u32 %v2331_v20, 16  ;;  %v628_v27 = vshll.u32 %v2331_v20, 16  ;;  %v633_v28 = vshrl.u32 %v2332_v22, 16  ;;  %v2294_v30 = vld [vmem:[%s2996_s24 + $0x144] sm:$0x8] }
  0x1c   : > { %v449_v21 = vor.u32 %v447_v9, %v446_v14  ;;  %v462_v26 = vor.u32 %v460_v12, %v459_v18  ;;  %v638_v29 = vshrl.u32 %v2333_v23, 16  ;;  %v641_v34 = vshll.u32 %v2333_v23, 16  ;;  %v2295_v35 = vld [vmem:[%s2996_s24 + $0x148] sm:$0xf]  ;;  %v2296_v39 = vld [vmem:[%s2996_s24 + $0x158] sm:$0x8] }
  0x1d   : > { %v2336_v32 = vrot.slane %v620_v24, 11  ;;  %v627_v33 = vrot.slane %v625_v25, 7  ;;  %v2337_v37 = vrot.slane %v633_v28, 11  ;;  %v2297_v40 = vld [vmem:[%s2996_s24 + $0x15c] sm:$0xf]  ;;  %v413_v43 = vshrl.u32 %v2294_v30, 16 }
  0x1e   : > { %v450_v31 = vsel %vm3009_vm2, %v2304_v13, %v449_v21  ;;  %493 = vrot.lane.b32.xlu0 %v2796_v15, %s2894_s26  ;;  %v463_v36 = vsel %vm3009_vm2, %v2305_v17, %v462_v26  ;;  %v640_v38 = vrot.slane %v638_v29, 7  ;;  %v418_v44 = vshrl.u32 %v2295_v35, 16  ;;  %v2282_v45 = vld [vmem:[%s2996_s24 + $0x134] sm:$0xf]  ;;  %v2283_v50 = vld [vmem:[%s2996_s24 + $0x138] sm:$0x1] }
  0x1f   : > { %v2307_v41 = vcombine.low %v450_v31, %v463_v36  ;;  %v630_v42 = vor.u32 %v628_v27, %v627_v33  ;;  %v421_v47 = vshll.u32 %v2295_v35, 16  ;;  %v426_v48 = vshrl.u32 %v2296_v39, 16  ;;  %v2284_v55 = vld [vmem:[%s2996_s24 + $0x148] sm:$0xf]  ;;  %v2285_v59 = vld [vmem:[%s2996_s24 + $0x14c] sm:$0x1] }
  0x20   : > { %v643_v46 = vor.u32 %v641_v34, %v640_v38  ;;  %v431_v49 = vshrl.u32 %v2297_v40, 16  ;;  %v2302_v52 = vrot.slane %v413_v43, 11  ;;  %v420_v53 = vrot.slane %v418_v44, 7  ;;  %v2326_v1 = vld [vmem:[%s2996_s24 + $0x158] sm:$0x8]  ;;  %s2912_s25 = smov 40  }
  0x21   : > { %472 = vrot.lane.b32.xlu1 %v2307_v41, %s2895_s27  ;;  %v631_v51 = vsel %vm3009_vm2, %v2336_v32, %v630_v42  ;;  %v434_v54 = vshll.u32 %v2297_v40, 16  ;;  %v2303_v57 = vrot.slane %v426_v48, 11  ;;  %v330_v60 = vshrl.u32 %v2282_v45, 16  ;;  %v2327_v6 = vld [vmem:[%s2996_s24 + $0x15c] sm:$0xf]  ;;  %s2913_s26 = smov 42  }
  0x22   : > { %v644_v56 = vsel %vm3009_vm2, %v2337_v37, %v643_v46  ;;  %v433_v58 = vrot.slane %v431_v49, 7  ;;  %v423_v62 = vor.u32 %v421_v47, %v420_v53  ;;  %v333_v63 = vshll.u32 %v2282_v45, 16  ;;  %v2328_v11 = vld [vmem:[%s2996_s24 + $0x16c] sm:$0x8]  ;;  %v2329_v15 = vld [vmem:[%s2996_s24 + $0x170] sm:$0xf] }
  0x23   : > { %v2339_v61 = vcombine.low %v631_v51, %v644_v56  ;;  %v339_v0 = vshll.u32 %v2283_v50, 16  ;;  %v332_v3 = vrot.slane %v330_v60, 4  ;;  %v344_v4 = vshrl.u32 %v2284_v55, 16  ;;  %v2286_v22 = vld [vmem:[%s2996_s24 + $0x15c] sm:$0xf] }
  0x24   : > { %v436_v2 = vor.u32 %v434_v54, %v433_v58  ;;  %v347_v5 = vshll.u32 %v2284_v55, 16  ;;  %v424_v7 = vsel %vm3009_vm2, %v2302_v52, %v423_v62  ;;  %v335_v8 = vrot.slane %v333_v63, 5  ;;  %v2287_v28 = vld [vmem:[%s2996_s24 + $0x160] sm:$0x1]  ;;  %v2288_v33 = vld [vmem:[%s2996_s24 + $0x170] sm:$0xf] }
  0x25   : > { %653 = vrot.lane.b32.xlu1 %v2339_v61, %s2896_s28  ;;  %v341_v9 = vrot.slane %v339_v0, 5  ;;  %v353_v10 = vshll.u32 %v2285_v59, 16  ;;  %v346_v13 = vrot.slane %v344_v4, 4  ;;  %v594_v17 = vshrl.u32 %v2326_v1, 16  ;;  %v2289_v41 = vld [vmem:[%s2996_s24 + $0x174] sm:$0x1] }
  0x26   : > { %v437_v12 = vsel %vm3009_vm2, %v2303_v57, %v436_v2  ;;  %v349_v14 = vrot.slane %v347_v5, 5  ;;  %v336_v19 = vor.u32 %v335_v8, %v332_v3  ;;  %v599_v21 = vshrl.u32 %v2327_v6, 16  ;;  %v2314_v43 = vld [vmem:[%s2996_s24 + $0x148] sm:$0xf]  ;;  %v2315_v48 = vld [vmem:[%s2996_s24 + $0x14c] sm:$0x1] }
  0x27   : > { %v2306_v18 = vcombine.low %v424_v7, %v437_v12  ;;  %v355_v20 = vrot.slane %v353_v10, 5  ;;  %v2334_v25 = vrot.slane %v594_v17, 11  ;;  %v602_v26 = vshll.u32 %v2327_v6, 16  ;;  %v2316_v53 = vld [vmem:[%s2996_s24 + $0x15c] sm:$0xf] }
  0x28   : > { %v350_v24 = vor.u32 %v349_v14, %v346_v13  ;;  %v607_v27 = vshrl.u32 %v2328_v11, 16  ;;  %v337_v29 = vrot.slane %v336_v19, 4  ;;  %v601_v30 = vrot.slane %v599_v21, 7  ;;  %v2317_v54 = vld [vmem:[%s2996_s24 + $0x160] sm:$0x1] }
  0x29   : > { %470 = vrot.lane.b32.xlu0 %v2306_v18, %s2895_s27  ;;  %v612_v31 = vshrl.u32 %v2329_v15, 16  ;;  %v615_v32 = vshll.u32 %v2329_v15, 16  ;;  %v358_v36 = vshrl.u32 %v2286_v22, 16  ;;  %v361_v37 = vshll.u32 %v2286_v22, 16  ;;  %v2318_v59 = vld [vmem:[%s2996_s24 + $0x170] sm:$0xf] }
  0x2a   : > { %v351_v34 = vrot.slane %v350_v24, 4  ;;  %v2335_v35 = vrot.slane %v607_v27, 11  ;;  %v342_v38 = vsel %vm3047_vm5, %v337_v29, %v341_v9  ;;  %v604_v39 = vor.u32 %v602_v26, %v601_v30  ;;  %v2319_v4 = vld [vmem:[%s2996_s24 + $0x174] sm:$0x1]  ;;  %v2320_v13 = vld [vmem:[%s2996_s24 + $0x184] sm:$0xf] }
  0x2b   : > { %v614_v40 = vrot.slane %v612_v31, 7  ;;  %v367_v42 = vshll.u32 %v2287_v28, 16  ;;  %v360_v45 = vrot.slane %v358_v36, 4  ;;  %v363_v46 = vrot.slane %v361_v37, 5  ;;  %v2321_v22 = vld [vmem:[%s2996_s24 + $0x188] sm:$0x1] }
  0x2c   : > { %v356_v44 = vsel %vm3047_vm5, %v351_v34, %v355_v20  ;;  %v372_v47 = vshrl.u32 %v2288_v33, 16  ;;  %v605_v50 = vsel %vm3009_vm2, %v2334_v25, %v604_v39  ;;  %v375_v57 = vshll.u32 %v2288_v33, 16  ;;  %v2346_v29 = vld [vmem:[%s2996_s24 + $0x15c] sm:$0xf]  ;;  %v2347_v34 = vld [vmem:[%s2996_s24 + $0x160] sm:$0x1] }
  0x2d   : > { %v2290_v49 = vcombine.low %v342_v38, %v356_v44  ;;  %v617_v51 = vor.u32 %v615_v32, %v614_v40  ;;  %v369_v52 = vrot.slane %v367_v42, 5  ;;  %v364_v55 = vor.u32 %v363_v46, %v360_v45  ;;  %v2349_v45 = vld [vmem:[%s2996_s24 + $0x174] sm:$0x1]  ;;  %s2914_s27 = smov 44   ;;  %v2815_v16 = vld [vmem:[%s2996_s24 + $0xac] ss:$20 sps:$4 sm:$0xff]  }
  0x2e   : > { %v374_v56 = vrot.slane %v372_v47, 4  ;;  %v381_v58 = vshll.u32 %v2289_v41, 16  ;;  %v511_v61 = vshrl.u32 %v2314_v43, 16  ;;  %v514_v62 = vshll.u32 %v2314_v43, 16 }
  0x2f   : > { %391 = vrot.lane.b32.xlu1 %v2290_v49, %s2897_s29  ;;  %v618_v60 = vsel %vm3009_vm2, %v2335_v35, %v617_v51  ;;  %v520_v63 = vshll.u32 %v2315_v48, 16  ;;  %v365_v1 = vrot.slane %v364_v55, 4  ;;  %v377_v2 = vrot.slane %v375_v57, 5  ;;  %v2348_v35 = vld [vmem:[%s2996_s24 + $0x170] sm:$0xf] }
  0x30   : > { %v2338_v0 = vcombine.low %v605_v50, %v618_v60  ;;  %v383_v3 = vrot.slane %v381_v58, 5  ;;  %v513_v5 = vrot.slane %v511_v61, 4  ;;  %v516_v6 = vrot.slane %v514_v62, 5  ;;  %v2797_v57 = vld [vmem:[%s2996_s24 + $0x15c] ss:$20 sps:$4 sm:$0xff]  }
  0x31   : > { %v522_v7 = vrot.slane %v520_v63, 5  ;;  %v525_v8 = vshrl.u32 %v2316_v53, 16  ;;  %v370_v9 = vsel %vm3047_vm5, %v365_v1, %v369_v52  ;;  %v378_v10 = vor.u32 %v377_v2, %v374_v56  ;;  %v2352_v60 = vld [vmem:[%s2996_s24 + $0x198] sm:$0xf]  ;;  %v2353_v1 = vld [vmem:[%s2996_s24 + $0x19c] sm:$0x1] }
  0x32   : > { %651 = vrot.lane.b32.xlu0 %v2338_v0, %s2896_s28  ;;  %v528_v11 = vshll.u32 %v2316_v53, 16  ;;  %v534_v12 = vshll.u32 %v2317_v54, 16  ;;  %v517_v14 = vor.u32 %v516_v6, %v513_v5  ;;  %v539_v17 = vshrl.u32 %v2318_v59, 16  ;;  %v2350_v53 = vld [vmem:[%s2996_s24 + $0x184] sm:$0xf]  ;;  %s2915_s28 = smov 46  }
  0x33   : > { %v527_v15 = vrot.slane %v525_v8, 4  ;;  %v542_v18 = vshll.u32 %v2318_v59, 16  ;;  %v379_v19 = vrot.slane %v378_v10, 4  ;;  %v548_v24 = vshll.u32 %v2319_v4, 16  ;;  %v2351_v54 = vld [vmem:[%s2996_s24 + $0x188] sm:$0x1] }
  0x34   : > { %v530_v20 = vrot.slane %v528_v11, 5  ;;  %v536_v21 = vrot.slane %v534_v12, 5  ;;  %v518_v25 = vrot.slane %v517_v14, 4  ;;  %v541_v26 = vrot.slane %v539_v17, 4  ;;  %v2358_v2 = vld [vmem:[%s2996_s24 + $0x11c] sm:$0x8] }
  0x35   : > { %v544_v27 = vrot.slane %v542_v18, 5  ;;  %v553_v28 = vshrl.u32 %v2320_v13, 16  ;;  %v384_v30 = vsel %vm3047_vm5, %v379_v19, %v383_v3  ;;  %v550_v32 = vrot.slane %v548_v24, 5  ;;  %v2360_v8 = vld [vmem:[%s2996_s24 + $0x130] sm:$0x8] }
  0x36   : > { %v531_v31 = vor.u32 %v530_v20, %v527_v15  ;;  %v556_v33 = vshll.u32 %v2320_v13, 16  ;;  %v2291_v36 = vcombine.low %v370_v9, %v384_v30  ;;  %v523_v37 = vsel %vm3047_vm5, %v518_v25, %v522_v7  ;;  %v2359_v7 = vld [vmem:[%s2996_s24 + $0x120] sm:$0x7]  ;;  %v2361_v13 = vld [vmem:[%s2996_s24 + $0x134] sm:$0x7] }
  0x37   : > { %v545_v38 = vor.u32 %v544_v27, %v541_v26  ;;  %v555_v39 = vrot.slane %v553_v28, 4  ;;  %v562_v42 = vshll.u32 %v2321_v22, 16  ;;  %v692_v43 = vshrl.u32 %v2346_v29, 16  ;;  %v2362_v14 = vld [vmem:[%s2996_s24 + $0x144] sm:$0x8] }
  0x38   : > { %v532_v40 = vrot.slane %v531_v31, 4  ;;  %v558_v41 = vrot.slane %v556_v33, 5  ;;  %393 = vrot.lane.b32.xlu1 %v2291_v36, %s2897_s29  ;;  %v695_v46 = vshll.u32 %v2346_v29, 16  ;;  %v701_v47 = vshll.u32 %v2347_v34, 16  ;;  %v2798_v17 = vld [vmem:[%s2996_s24 + $0x184] ss:$20 sps:$4 sm:$0xff]  }
  0x39   : > { %v546_v44 = vrot.slane %v545_v38, 4  ;;  %v706_v48 = vshrl.u32 %v2348_v35, 16  ;;  %v564_v51 = vrot.slane %v562_v42, 5  ;;  %v694_v52 = vrot.slane %v692_v43, 4  ;;  %s2916_s29 = smov 48  }
  0x3a   : > { %v537_v49 = vsel %vm3047_vm5, %v532_v40, %v536_v21  ;;  %v559_v50 = vor.u32 %v558_v41, %v555_v39  ;;  %v697_v58 = vrot.slane %v695_v46, 5  ;;  %v703_v59 = vrot.slane %v701_v47, 5  ;;  %v2363_v21 = vld [vmem:[%s2996_s24 + $0x148] sm:$0x7]  ;;  %v2365_v40 = vld [vmem:[%s2996_s24 + $0x15c] sm:$0x7] }
  0x3b   : > { %v2322_v55 = vcombine.low %v523_v37, %v537_v49  ;;  %v551_v56 = vsel %vm3047_vm5, %v546_v44, %v550_v32  ;;  %v708_v62 = vrot.slane %v706_v48, 4  ;;  %v709_v63 = vshll.u32 %v2348_v35, 16  ;;  %v2364_v32 = vld [vmem:[%s2996_s24 + $0x158] sm:$0x8]  ;;  %v2378_v46 = vld [vmem:[%s2996_s24 + $0x120] sm:$0xe] }
  0x3c   : > { %v560_v61 = vrot.slane %v559_v50, 4  ;;  %v715_v0 = vshll.u32 %v2349_v45, 16  ;;  %v698_v3 = vor.u32 %v697_v58, %v694_v52  ;;  %v720_v4 = vshrl.u32 %v2350_v53, 16  ;;  %v2379_v47 = vld [vmem:[%s2996_s24 + $0x124] sm:$0x1] }
  0x3d   : > { %572 = vrot.lane.b32.xlu0 %v2322_v55, %s2898_s30  ;;  %v723_v5 = vshll.u32 %v2350_v53, 16  ;;  %v729_v6 = vshll.u32 %v2351_v54, 16  ;;  %v711_v10 = vrot.slane %v709_v63, 5  ;;  %v734_v12 = vshrl.u32 %v2352_v60, 16  ;;  %v2380_v52 = vld [vmem:[%s2996_s24 + $0x134] sm:$0xe] }
  0x3e   : > { %v565_v9 = vsel %vm3047_vm5, %v560_v61, %v564_v51  ;;  %v717_v11 = vrot.slane %v715_v0, 5  ;;  %v699_v18 = vrot.slane %v698_v3, 4  ;;  %v722_v19 = vrot.slane %v720_v4, 4  ;;  %v2381_v53 = vld [vmem:[%s2996_s24 + $0x138] sm:$0x1] }
  0x3f   : > { %v2323_v15 = vcombine.low %v551_v56, %v565_v9  ;;  %v725_v20 = vrot.slane %v723_v5, 5  ;;  %v712_v22 = vor.u32 %v711_v10, %v708_v62  ;;  %v731_v24 = vrot.slane %v729_v6, 5  ;;  %v2382_v58 = vld [vmem:[%s2996_s24 + $0x148] sm:$0xe]  ;;  %v2385_v4 = vld [vmem:[%s2996_s24 + $0x160] sm:$0x1] }
  0x40   : > { %v736_v25 = vrot.slane %v734_v12, 4  ;;  %v737_v26 = vshll.u32 %v2352_v60, 16  ;;  %v704_v27 = vsel %vm3047_vm5, %v699_v18, %v703_v59  ;;  %v743_v29 = vshll.u32 %v2353_v1, 16  ;;  %v2383_v59 = vld [vmem:[%s2996_s24 + $0x14c] sm:$0x1] }
  0x41   : > { %574 = vrot.lane.b32.xlu1 %v2323_v15, %s2898_s30  ;;  %674 = vrot.lane.b32.xlu0 %v2797_v57, %s2899_s4  ;;  %v726_v28 = vor.u32 %v725_v20, %v722_v19  ;;  %v2366_v31 = vrot.slane %v2358_v2, 11  ;;  %v713_v33 = vrot.slane %v712_v22, 4  ;;  %v787_v35 = vrot.slane %v2359_v7, 7  ;;  %v2384_v1 = vld [vmem:[%s2996_s24 + $0x15c] sm:$0xe]  ;;  %s2917_s30 = smov 50  }
  0x42   : > { %v739_v34 = vrot.slane %v737_v26, 5  ;;  %v2367_v36 = vrot.slane %v2360_v8, 11  ;;  %v745_v38 = vrot.slane %v743_v29, 5  ;;  %v791_v39 = vrot.slane %v2361_v13, 7  ;;  %v2392_v7 = vld [vmem:[%s2996_s24 + $0x144] sm:$0x8] }
  0x43   : > { %v727_v37 = vrot.slane %v726_v28, 4  ;;  %v2368_v41 = vrot.slane %v2362_v14, 11  ;;  %v718_v42 = vsel %vm3047_vm5, %v713_v33, %v717_v11  ;;  %v788_v44 = vsel %vm3106_vm10, %v2366_v31, %v787_v35  ;;  %v2393_v10 = vld [vmem:[%s2996_s24 + $0x148] sm:$0x7]  ;;  %v2394_v11 = vld [vmem:[%s2996_s24 + $0x158] sm:$0x8] }
  0x44   : > { %v740_v43 = vor.u32 %v739_v34, %v736_v25  ;;  %v795_v45 = vrot.slane %v2363_v21, 7  ;;  %v2354_v48 = vcombine.low %v704_v27, %v718_v42  ;;  %v792_v50 = vsel %vm3106_vm10, %v2367_v36, %v791_v39  ;;  %v2395_v12 = vld [vmem:[%s2996_s24 + $0x15c] sm:$0x7]  ;;  %v2799_v13 = vld [vmem:[%s2996_s24 + $0x120] ss:$20 sps:$4 sm:$0xff]  }
  0x45   : > { %676 = vrot.lane.b32.xlu1 %v2798_v17, %s2899_s4  ;;  %v732_v49 = vsel %vm3047_vm5, %v727_v37, %v731_v24  ;;  %v2369_v51 = vrot.slane %v2364_v32, 11  ;;  %v2370_v55 = vcombine.low %v788_v44, %v792_v50  ;;  %v799_v57 = vrot.slane %v2365_v40, 7  ;;  %v2396_v18 = vld [vmem:[%s2996_s24 + $0x16c] sm:$0x8]  ;;  %v2397_v24 = vld [vmem:[%s2996_s24 + $0x170] sm:$0x7] }
  0x46   : > { %v741_v54 = vrot.slane %v740_v43, 4  ;;  %v796_v56 = vsel %vm3106_vm10, %v2368_v41, %v795_v45  ;;  %753 = vrot.lane.b32.xlu0 %v2354_v48, %s2900_s5  ;;  %v2386_v61 = vrot.slane %v2378_v46, 9  ;;  %v860_v62 = vrot.slane %v2379_v47, 5  ;;  %v2398_v25 = vld [vmem:[%s2996_s24 + $0x180] sm:$0x8]  ;;  %s2918_s4 = smov 52  }
  0x47   : > { %v2387_v63 = vrot.slane %v2380_v52, 9  ;;  %v864_v0 = vrot.slane %v2381_v53, 5  ;;  %v800_v3 = vsel %vm3106_vm10, %v2369_v51, %v799_v57  ;;  %v2388_v5 = vrot.slane %v2382_v58, 9  ;;  %v2399_v26 = vld [vmem:[%s2996_s24 + $0x184] sm:$0x7] }
  0x48   : > { %v746_v2 = vsel %vm3047_vm5, %v741_v54, %v745_v38  ;;  %v868_v6 = vrot.slane %v2383_v59, 5  ;;  %v2371_v9 = vcombine.low %v796_v56, %v800_v3  ;;  %v861_v23 = vsel %vm3130_vm11, %v2386_v61, %v860_v62  ;;  %v2800_v33 = vld [vmem:[%s2996_s24 + $0x148] ss:$20 sps:$4 sm:$0xff]   ;;  %v2413_v39 = vld [vmem:[%s2996_s24 + $0x14c] sm:$0x1] }
  0x49   : > { %v2355_v8 = vcombine.low %v732_v49, %v746_v2  ;;  %v865_v14 = vsel %vm3130_vm11, %v2387_v63, %v864_v0  ;;  %v2389_v15 = vrot.slane %v2384_v1, 9  ;;  %v872_v17 = vrot.slane %v2385_v4, 5  ;;  %v2412_v38 = vld [vmem:[%s2996_s24 + $0x148] sm:$0xe]  ;;  %v2414_v40 = vld [vmem:[%s2996_s24 + $0x15c] sm:$0xe] }
  0x4a   : > { %807 = vrot.lane.b32.xlu0 %v2370_v55, %s2901_s6  ;;  %v2400_v19 = vrot.slane %v2392_v7, 11  ;;  %v907_v20 = vrot.slane %v2393_v10, 7  ;;  %v2401_v21 = vrot.slane %v2394_v11, 11  ;;  %v911_v22 = vrot.slane %v2395_v12, 7  ;;  %v2415_v41 = vld [vmem:[%s2996_s24 + $0x160] sm:$0x1] }
  0x4b   : > { %755 = vrot.lane.b32.xlu1 %v2355_v8, %s2900_s5  ;;  %v2390_v27 = vcombine.low %v861_v23, %v865_v14  ;;  %v869_v28 = vsel %vm3130_vm11, %v2388_v5, %v868_v6  ;;  %v873_v29 = vsel %vm3130_vm11, %v2389_v15, %v872_v17  ;;  %v2402_v31 = vrot.slane %v2396_v18, 11  ;;  %v2416_v42 = vld [vmem:[%s2996_s24 + $0x170] sm:$0xe]  ;;  %v2417_v47 = vld [vmem:[%s2996_s24 + $0x174] sm:$0x1]  ;;  %s2919_s5 = smov 54  }
  0x4c   : > { %v915_v32 = vrot.slane %v2397_v24, 7  ;;  %v908_v34 = vsel %vm3106_vm10, %v2400_v19, %v907_v20  ;;  %v912_v35 = vsel %vm3106_vm10, %v2401_v21, %v911_v22  ;;  %v2403_v36 = vrot.slane %v2398_v25, 11  ;;  %v2418_v52 = vld [vmem:[%s2996_s24 + $0x184] sm:$0xe]  ;;  %v2419_v53 = vld [vmem:[%s2996_s24 + $0x188] sm:$0x1] }
  0x4d   : > { %v919_v37 = vrot.slane %v2399_v26, 7  ;;  %v2391_v43 = vcombine.low %v869_v28, %v873_v29  ;;  %v2404_v44 = vcombine.low %v908_v34, %v912_v35  ;;  %v2420_v45 = vrot.slane %v2412_v38, 9  ;;  %v2428_v56 = vld [vmem:[%s2996_s24 + $0x16c] sm:$0x8]  ;;  %v2429_v57 = vld [vmem:[%s2996_s24 + $0x170] sm:$0x7] }
  0x4e   : > { %830 = vrot.lane.b32.xlu0 %v2799_v13, %s2902_s7  ;;  %v977_v46 = vrot.slane %v2413_v39, 5  ;;  %v916_v48 = vsel %vm3106_vm10, %v2402_v31, %v915_v32  ;;  %v2421_v50 = vrot.slane %v2414_v40, 9  ;;  %v981_v51 = vrot.slane %v2415_v41, 5  ;;  %v2801_v58 = vld [vmem:[%s2996_s24 + $0x148] ss:$20 sps:$4 sm:$0xff]  }
  0x4f   : > { %809 = vrot.lane.b32.xlu1 %v2371_v9, %s2901_s6  ;;  %v920_v49 = vsel %vm3106_vm10, %v2403_v36, %v919_v37  ;;  %v2422_v54 = vrot.slane %v2416_v42, 9  ;;  %v985_v55 = vrot.slane %v2417_v47, 5  ;;  %v2430_v59 = vld [vmem:[%s2996_s24 + $0x180] sm:$0x8]  ;;  %v2431_v61 = vld [vmem:[%s2996_s24 + $0x184] sm:$0x7] }
  0x50   : > { %v2432_v62 = vld [vmem:[%s2996_s24 + $0x194] sm:$0x8]  ;;  %v2405_v63 = vcombine.low %v916_v48, %v920_v49  ;;  %v2423_v0 = vrot.slane %v2418_v52, 9  ;;  %v989_v1 = vrot.slane %v2419_v53, 5  ;;  %v2433_v2 = vld [vmem:[%s2996_s24 + $0x198] sm:$0x7]  ;;  %v978_v4 = vsel %vm3130_vm11, %v2420_v45, %v977_v46 }
  0x51   : > { %v2434_v3 = vld [vmem:[%s2996_s24 + $0x1a8] sm:$0x8]  ;;  %v982_v5 = vsel %vm3130_vm11, %v2421_v50, %v981_v51  ;;  %v2436_v6 = vrot.slane %v2428_v56, 11  ;;  %v1028_v7 = vrot.slane %v2429_v57, 7  ;;  %v2435_v8 = vld [vmem:[%s2996_s24 + $0x1ac] sm:$0x7]  ;;  %v986_v21 = vsel %vm3130_vm11, %v2422_v54, %v985_v55 }
  0x52   : > { %880 = vrot.lane.b32.xlu0 %v2390_v27, %s2903_s8  ;;  %v2437_v9 = vrot.slane %v2430_v59, 11  ;;  %v1032_v10 = vrot.slane %v2431_v61, 7  ;;  %v2438_v11 = vrot.slane %v2432_v62, 11  ;;  %v1036_v12 = vrot.slane %v2433_v2, 7  ;;  %v2448_v14 = vld [vmem:[%s2996_s24 + $0x170] sm:$0xe] }
  0x53   : > { %832 = vrot.lane.b32.xlu1 %v2800_v33, %s2902_s7  ;;  %v2439_v13 = vrot.slane %v2434_v3, 11  ;;  %v1040_v23 = vrot.slane %v2435_v8, 7  ;;  %v2449_v15 = vld [vmem:[%s2996_s24 + $0x174] sm:$0x1]  ;;  %v2450_v17 = vld [vmem:[%s2996_s24 + $0x184] sm:$0xe]  ;;  %v2424_v19 = vcombine.low %v978_v4, %v982_v5  ;;  %v990_v22 = vsel %vm3130_vm11, %v2423_v0, %v989_v1 }
  0x54   : > { %v2802_v18 = vld [vmem:[%s2996_s24 + $0x170] ss:$20 sps:$4 sm:$0xff]   ;;  %v2451_v20 = vld [vmem:[%s2996_s24 + $0x188] sm:$0x1]  ;;  %v1029_v24 = vsel %vm3106_vm10, %v2436_v6, %v1028_v7  ;;  %v1033_v25 = vsel %vm3106_vm10, %v2437_v9, %v1032_v10  ;;  %v2456_v26 = vrot.slane %v2448_v14, 9  ;;  %v1098_v27 = vrot.slane %v2449_v15, 5 }
  0x55   : > { %v2457_v28 = vrot.slane %v2450_v17, 9  ;;  %v1102_v29 = vrot.slane %v2451_v20, 5  ;;  %v1037_v31 = vsel %vm3106_vm10, %v2438_v11, %v1036_v12  ;;  %v1041_v32 = vsel %vm3106_vm10, %v2439_v13, %v1040_v23  ;;  %v2452_v33 = vld [vmem:[%s2996_s24 + $0x198] sm:$0xe]  ;;  %v2453_v34 = vld [vmem:[%s2996_s24 + $0x19c] sm:$0x1] }
  0x56   : > { %927 = vrot.lane.b32.xlu0 %v2404_v44, %s2904_s9  ;;  %v2454_v35 = vld [vmem:[%s2996_s24 + $0x1ac] sm:$0xe]  ;;  %v2425_v36 = vcombine.low %v986_v21, %v990_v22  ;;  %v2440_v37 = vcombine.low %v1029_v24, %v1033_v25  ;;  %v2455_v38 = vld [vmem:[%s2996_s24 + $0x1b0] sm:$0x1]  ;;  %v2464_v39 = vld [vmem:[%s2996_s24 + $0xf4] sm:$0xc]  ;;  %v1099_v46 = vsel %vm3130_vm11, %v2456_v26, %v1098_v27 }
  0x57   : > { %882 = vrot.lane.b32.xlu1 %v2391_v43, %s2903_s8  ;;  %v2465_v40 = vld [vmem:[%s2996_s24 + $0xf8] sm:$0x3]  ;;  %v2466_v41 = vld [vmem:[%s2996_s24 + $0x108] sm:$0xc]  ;;  %v2467_v42 = vld [vmem:[%s2996_s24 + $0x10c] sm:$0x3]  ;;  %v2441_v43 = vcombine.low %v1037_v31, %v1041_v32  ;;  %v1103_v47 = vsel %vm3130_vm11, %v2457_v28, %v1102_v29 }
  0x58   : > { %v2803_v44 = vld [vmem:[%s2996_s24 + $0x170] ss:$20 sps:$4 sm:$0xff]   ;;  %v2458_v30 = vrot.slane %v2452_v33, 9  ;;  %v1106_v45 = vrot.slane %v2453_v34, 5  ;;  %v2459_v48 = vrot.slane %v2454_v35, 9  ;;  %v1110_v49 = vrot.slane %v2455_v38, 5 }
  0x59   : > { %v2472_v51 = vrot.slane %v2464_v39, 10  ;;  %v1152_v52 = vrot.slane %v2465_v40, 6  ;;  %v2473_v53 = vrot.slane %v2466_v41, 10  ;;  %v1156_v54 = vrot.slane %v2467_v42, 6  ;;  %v2468_v55 = vld [vmem:[%s2996_s24 + $0x11c] sm:$0xc] }
  0x5a   : > { %950 = vrot.lane.b32.xlu0 %v2801_v58, %s2905_s10  ;;  %v2469_v56 = vld [vmem:[%s2996_s24 + $0x120] sm:$0x3]  ;;  %v2470_v57 = vld [vmem:[%s2996_s24 + $0x130] sm:$0xc]  ;;  %v2471_v58 = vld [vmem:[%s2996_s24 + $0x134] sm:$0x3]  ;;  %v2460_v61 = vcombine.low %v1099_v46, %v1103_v47  ;;  %v1107_v2 = vsel %vm3130_vm11, %v2458_v30, %v1106_v45  ;;  %v1111_v3 = vsel %vm3130_vm11, %v2459_v48, %v1110_v49 }
  0x5b   : > { %929 = vrot.lane.b32.xlu1 %v2405_v63, %s2904_s9  ;;  %v2484_v59 = vld [vmem:[%s2996_s24 + $0xf8] sm:$0xc]  ;;  %v2485_v62 = vld [vmem:[%s2996_s24 + $0xfc] sm:$0x3]  ;;  %v2486_v63 = vld [vmem:[%s2996_s24 + $0x10c] sm:$0xc]  ;;  %v1153_v6 = vsel %vm3219_vm14, %v2472_v51, %v1152_v52  ;;  %v1157_v7 = vsel %vm3219_vm14, %v2473_v53, %v1156_v54 }
  0x5c   : > { %v2487_v0 = vld [vmem:[%s2996_s24 + $0x110] sm:$0x3]  ;;  %v2804_v1 = vld [vmem:[%s2996_s24 + $0x198] ss:$20 sps:$4 sm:$0xff]   ;;  %v2474_v4 = vrot.slane %v2468_v55, 10  ;;  %v1160_v5 = vrot.slane %v2469_v56, 6  ;;  %v2476_v20 = vcombine.low %v1153_v6, %v1157_v7 }
  0x5d   : > { %v2475_v8 = vrot.slane %v2470_v57, 10  ;;  %v1164_v9 = vrot.slane %v2471_v58, 6  ;;  %v2488_v10 = vld [vmem:[%s2996_s24 + $0x120] sm:$0xc]  ;;  %v2489_v11 = vld [vmem:[%s2996_s24 + $0x124] sm:$0x3] }
  0x5e   : > { %997 = vrot.lane.b32.xlu0 %v2424_v19, %s2906_s11  ;;  %v2492_v12 = vrot.slane %v2484_v59, 10  ;;  %v1222_v13 = vrot.slane %v2485_v62, 6  ;;  %v2493_v23 = vrot.slane %v2486_v63, 10  ;;  %v1226_v60 = vrot.slane %v2487_v0, 6  ;;  %v2490_v14 = vld [vmem:[%s2996_s24 + $0x134] sm:$0xc] }
  0x5f   : > { %952 = vrot.lane.b32.xlu1 %v2802_v18, %s2905_s10  ;;  %v2491_v15 = vld [vmem:[%s2996_s24 + $0x138] sm:$0x3]  ;;  %v2498_v17 = vld [vmem:[%s2996_s24 + $0x144] sm:$0xc]  ;;  %v2499_v18 = vld [vmem:[%s2996_s24 + $0x148] sm:$0x3]  ;;  %v2461_v19 = vcombine.low %v1107_v2, %v1111_v3  ;;  %v1161_v24 = vsel %vm3219_vm14, %v2474_v4, %v1160_v5  ;;  %v1165_v25 = vsel %vm3219_vm14, %v2475_v8, %v1164_v9 }
  0x60   : > { %v2494_v21 = vrot.slane %v2488_v10, 10  ;;  %v1230_v22 = vrot.slane %v2489_v11, 6  ;;  %v2500_v26 = vld [vmem:[%s2996_s24 + $0x158] sm:$0xc]  ;;  %v2501_v27 = vld [vmem:[%s2996_s24 + $0x15c] sm:$0x3]  ;;  %v1223_v34 = vsel %vm3219_vm14, %v2492_v12, %v1222_v13  ;;  %v1227_v35 = vsel %vm3219_vm14, %v2493_v23, %v1226_v60 }
  0x61   : > { %v2805_v28 = vld [vmem:[%s2996_s24 + $0xf8] ss:$20 sps:$4 sm:$0xff]   ;;  %v2495_v29 = vrot.slane %v2490_v14, 10  ;;  %v1234_v31 = vrot.slane %v2491_v15, 6  ;;  %v2506_v32 = vrot.slane %v2498_v17, 10  ;;  %v1269_v33 = vrot.slane %v2499_v18, 6 }
  0x62   : > { %1048 = vrot.lane.b32.xlu0 %v2440_v37, %s2907_s19  ;;  %v2477_v37 = vcombine.low %v1161_v24, %v1165_v25  ;;  %v2507_v38 = vrot.slane %v2500_v26, 10  ;;  %v1273_v39 = vrot.slane %v2501_v27, 6  ;;  %v2503_v40 = vld [vmem:[%s2996_s24 + $0x170] sm:$0x3]  ;;  %v2504_v41 = vld [vmem:[%s2996_s24 + $0x180] sm:$0xc]  ;;  %v2496_v30 = vcombine.low %v1223_v34, %v1227_v35 }
  0x63   : > { %999 = vrot.lane.b32.xlu1 %v2425_v36, %s2906_s11  ;;  %v2502_v36 = vld [vmem:[%s2996_s24 + $0x16c] sm:$0xc]  ;;  %v2505_v42 = vld [vmem:[%s2996_s24 + $0x184] sm:$0x3]  ;;  %v2520_v45 = vld [vmem:[%s2996_s24 + $0x15c] sm:$0xc]  ;;  %v1231_v47 = vsel %vm3219_vm14, %v2494_v21, %v1230_v22  ;;  %v1235_v48 = vsel %vm3219_vm14, %v2495_v29, %v1234_v31  ;;  %v1270_v57 = vsel %vm3219_vm14, %v2506_v32, %v1269_v33 }
  0x64   : > { %v2521_v46 = vld [vmem:[%s2996_s24 + $0x160] sm:$0x3]  ;;  %v2508_v49 = vrot.slane %v2502_v36, 10  ;;  %v1277_v51 = vrot.slane %v2503_v40, 6  ;;  %v2509_v53 = vrot.slane %v2504_v41, 10  ;;  %v1281_v54 = vrot.slane %v2505_v42, 6 }
  0x65   : > { %v2806_v52 = vld [vmem:[%s2996_s24 + $0x120] ss:$20 sps:$4 sm:$0xff]   ;;  %v1274_v58 = vsel %vm3219_vm14, %v2507_v38, %v1273_v39  ;;  %v2527_v59 = vrot.slane %v2520_v45, 10  ;;  %v2522_v62 = vld [vmem:[%s2996_s24 + $0x170] sm:$0xc]  ;;  %v2497_v6 = vcombine.low %v1231_v47, %v1235_v48  ;;  %s2920_s6 = smov 56  }
  0x66   : > { %1071 = vrot.lane.b32.xlu0 %v2803_v44, %s2908_s20  ;;  %v2519_v44 = vld [vmem:[%s2996_s24 + $0x14c] sm:$0x3]  ;;  %v2523_v63 = vld [vmem:[%s2996_s24 + $0x174] sm:$0x3]  ;;  %v2524_v0 = vld [vmem:[%s2996_s24 + $0x184] sm:$0xc]  ;;  %v2510_v7 = vcombine.low %v1270_v57, %v1274_v58  ;;  %v1278_v8 = vsel %vm3219_vm14, %v2508_v49, %v1277_v51  ;;  %v1282_v9 = vsel %vm3219_vm14, %v2509_v53, %v1281_v54 }
  0x67   : > { %1050 = vrot.lane.b32.xlu1 %v2441_v43, %s2907_s19  ;;  %v2518_v43 = vld [vmem:[%s2996_s24 + $0x148] sm:$0xc]  ;;  %v1339_v56 = vrot.slane %v2519_v44, 6  ;;  %v2534_v2 = vld [vmem:[%s2996_s24 + $0x194] sm:$0xc]  ;;  %v2528_v10 = vrot.slane %v2522_v62, 10  ;;  %v2511_v22 = vcombine.low %v1278_v8, %v1282_v9 }
  0x68   : > { %v2526_v55 = vrot.slane %v2518_v43, 10  ;;  %v2535_v3 = vld [vmem:[%s2996_s24 + $0x198] sm:$0x3]  ;;  %v2536_v4 = vld [vmem:[%s2996_s24 + $0x1a8] sm:$0xc]  ;;  %v1347_v11 = vrot.slane %v2523_v63, 6 }
  0x69   : > { %v2537_v5 = vld [vmem:[%s2996_s24 + $0x1ac] sm:$0x3]  ;;  %v2807_v12 = vld [vmem:[%s2996_s24 + $0x148] ss:$20 sps:$4 sm:$0xff]   ;;  %v2529_v13 = vrot.slane %v2524_v0, 10  ;;  %v2542_v60 = vrot.slane %v2534_v2, 10 }
  0x6a   : > { %1118 = vrot.lane.b32.xlu0 %v2460_v61, %s2909_s21  ;;  %v1343_v61 = vrot.slane %v2521_v46, 6  ;;  %v1390_v14 = vrot.slane %v2535_v3, 6  ;;  %v1340_v15 = vsel %vm3219_vm14, %v2526_v55, %v1339_v56  ;;  %v2543_v18 = vrot.slane %v2536_v4, 10  ;;  %v2539_v21 = vld [vmem:[%s2996_s24 + $0x1c0] sm:$0x3]  ;;  %s2921_s7 = smov 58  }
  0x6b   : > { %1073 = vrot.lane.b32.xlu1 %v2804_v1, %s2908_s20  ;;  %v2525_v1 = vld [vmem:[%s2996_s24 + $0x188] sm:$0x3]  ;;  %v2540_v24 = vld [vmem:[%s2996_s24 + $0x1d0] sm:$0xc]  ;;  %v2541_v25 = vld [vmem:[%s2996_s24 + $0x1d4] sm:$0x3]  ;;  %v1348_v32 = vsel %vm3219_vm14, %v2528_v10, %v1347_v11 }
  0x6c   : > { %v1351_v23 = vrot.slane %v2525_v1, 6  ;;  %v1344_v17 = vsel %vm3219_vm14, %v2527_v59, %v1343_v61  ;;  %v2554_v26 = vld [vmem:[%s2996_s24 + $0x198] sm:$0xc]  ;;  %v2555_v27 = vld [vmem:[%s2996_s24 + $0x19c] sm:$0x3]  ;;  %v1391_v35 = vsel %vm3219_vm14, %v2542_v60, %v1390_v14  ;;  %v1398_v38 = vrot.slane %v2539_v21, 6 }
  0x6d   : > { %v2808_v29 = vld [vmem:[%s2996_s24 + $0x170] ss:$20 sps:$4 sm:$0xff]   ;;  %v2530_v31 = vcombine.low %v1340_v15, %v1344_v17  ;;  %v2545_v39 = vrot.slane %v2540_v24, 10  ;;  %v1402_v40 = vrot.slane %v2541_v25, 6  ;;  %v2562_v41 = vrot.slane %v2554_v26, 10  ;;  %s2922_s8 = smov 60  }
  0x6e   : > { %1172 = vrot.lane.b32.xlu0 %v2476_v20, %s2910_s22  ;;  %v2538_v20 = vld [vmem:[%s2996_s24 + $0x1bc] sm:$0xc]  ;;  %v1352_v33 = vsel %vm3219_vm14, %v2529_v13, %v1351_v23  ;;  %v2557_v34 = vld [vmem:[%s2996_s24 + $0x1b0] sm:$0x3]  ;;  %v1460_v42 = vrot.slane %v2555_v27, 6  ;;  %s2923_s9 = smov 62  }
  0x6f   : > { %1120 = vrot.lane.b32.xlu1 %v2461_v19, %s2909_s21  ;;  %v1394_v19 = vrot.slane %v2537_v5, 6  ;;  %v1464_v44 = vrot.slane %v2557_v34, 6  ;;  %v2531_v45 = vcombine.low %v1348_v32, %v1352_v33  ;;  %v2559_v47 = vld [vmem:[%s2996_s24 + $0x1c4] sm:$0x3]  ;;  %v2262_v48 = vld [vmem:[%s2996_s24 + $0x130] sm:$0x8]  ;;  %v1403_v51 = vsel %vm3219_vm14, %v2545_v39, %v1402_v40 }
  0x70   : > { %v2560_v53 = vld [vmem:[%s2996_s24 + $0x1d4] sm:$0xc]  ;;  %v2561_v54 = vld [vmem:[%s2996_s24 + $0x1d8] sm:$0x3]  ;;  %v2264_v56 = vld [vmem:[%s2996_s24 + $0x144] sm:$0x8] }
  0x71   : > { %v1395_v36 = vsel %vm3219_vm14, %v2543_v18, %v1394_v19  ;;  %v2263_v55 = vld [vmem:[%s2996_s24 + $0x134] sm:$0xf]  ;;  %v233_v57 = vshrl.u32 %v2262_v48, 16  ;;  %v2265_v59 = vld [vmem:[%s2996_s24 + $0x148] sm:$0xf]  ;;  %v246_v63 = vshrl.u32 %v2264_v56, 16 }
  0x72   : > { %1195 = vrot.lane.b32.xlu0 %v2805_v28, %s2911_s23  ;;  %v2556_v28 = vld [vmem:[%s2996_s24 + $0x1ac] sm:$0xc]  ;;  %v2546_v46 = vcombine.low %v1391_v35, %v1395_v36  ;;  %v238_v61 = vshrl.u32 %v2263_v55, 16  ;;  %v241_v62 = vshll.u32 %v2263_v55, 16  ;;  %v1468_v1 = vrot.slane %v2559_v47, 6  ;;  %s2924_s10 = smov 64  }
  0x73   : > { %1174 = vrot.lane.b32.xlu1 %v2477_v37, %s2910_s22  ;;  %v2544_v37 = vrot.slane %v2538_v20, 10  ;;  %v2563_v43 = vrot.slane %v2556_v28, 10  ;;  %v251_v2 = vshrl.u32 %v2265_v59, 16  ;;  %v254_v3 = vshll.u32 %v2265_v59, 16  ;;  %v2809_v4 = vld [vmem:[%s2996_s24 + $0x198] ss:$20 sps:$4 sm:$0xff]  }
  0x74   : > { %v2270_v5 = vrot.slane %v233_v57, 11  ;;  %v2271_v8 = vrot.slane %v246_v63, 11  ;;  %v2565_v11 = vrot.slane %v2560_v53, 10  ;;  %v2266_v23 = vld [vmem:[%s2996_s24 + $0x158] sm:$0x8]  ;;  %s2925_s11 = smov 66  }
  0x75   : > { %v1399_v49 = vsel %vm3219_vm14, %v2544_v37, %v1398_v38  ;;  %v1465_v0 = vsel %vm3219_vm14, %v2563_v43, %v1464_v44  ;;  %v253_v9 = vrot.slane %v251_v2, 7  ;;  %v2267_v60 = vld [vmem:[%s2996_s24 + $0x15c] sm:$0xf]  ;;  %v2810_v14 = vld [vmem:[%s2996_s24 + $0x1c0] ss:$20 sps:$4 sm:$0xff]   ;;  %v259_v20 = vshrl.u32 %v2266_v23, 16 }
  0x76   : > { %1242 = vrot.lane.b32.xlu0 %v2496_v30, %s2912_s25  ;;  %v2558_v30 = vld [vmem:[%s2996_s24 + $0x1c0] sm:$0xc]  ;;  %v2268_v18 = vld [vmem:[%s2996_s24 + $0x16c] sm:$0x8]  ;;  %v2269_v19 = vld [vmem:[%s2996_s24 + $0x170] sm:$0xf] }
  0x77   : > { %1197 = vrot.lane.b32.xlu1 %v2806_v52, %s2911_s23  ;;  %v1461_v52 = vsel %vm3219_vm14, %v2562_v41, %v1460_v42  ;;  %v2564_v58 = vrot.slane %v2558_v30, 10  ;;  %v256_v17 = vor.u32 %v254_v3, %v253_v9  ;;  %v264_v21 = vshrl.u32 %v2267_v60, 16  ;;  %v2811_v40 = vld [vmem:[%s2996_s24 + $0xa4] ss:$20 sps:$4 sm:$0xff]   ;;  %v2812_v43 = vld [vmem:[%s2996_s24 + $0xcc] ss:$20 sps:$4 sm:$0xff]  }
  0x78   : > { %v2566_v10 = vcombine.low %v1461_v52, %v1465_v0  ;;  %v267_v24 = vshll.u32 %v2267_v60, 16  ;;  %v272_v25 = vshrl.u32 %v2268_v18, 16  ;;  %v277_v26 = vshrl.u32 %v2269_v19, 16  ;;  %v2813_v30 = vld [vmem:[%s2996_s24 + $0xa8] ss:$20 sps:$4 sm:$0xff]   ;;  %s2926_s19 = smov 68  }
  0x79   : > { %v1469_v15 = vsel %vm3219_vm14, %v2564_v58, %v1468_v1  ;;  %v257_v27 = vsel %vm3009_vm2, %v2271_v8, %v256_v17  ;;  %v2272_v28 = vrot.slane %v259_v20, 11  ;;  %v2814_v47 = vld [vmem:[%s2996_s24 + $0xd0] ss:$20 sps:$4 sm:$0xff]   ;;  %v2816_v48 = vld [vmem:[%s2996_s24 + $0xd4] ss:$20 sps:$4 sm:$0xff]   ;;  %vm657_vm5 = vcmask 113760  }
  0x7a   : > { %1289 = vrot.lane.b32.xlu0 %v2510_v7, %s2913_s26  ;;  %v2547_v7 = vcombine.low %v1399_v49, %v1403_v51  ;;  %v2273_v34 = vrot.slane %v272_v25, 11  ;;  %v279_v35 = vrot.slane %v277_v26, 7  ;;  %v2817_v49 = vld [vmem:[%s2996_s24 + $0x144] ss:$20 sps:$4 sm:$0xff]   ;;  %v2818_v53 = vld [vmem:[%s2996_s24 + $0x16c] ss:$20 sps:$4 sm:$0xff]  }
  0x7b   : > { %1244 = vrot.lane.b32.xlu1 %v2497_v6, %s2912_s25  ;;  %v240_v6 = vrot.slane %v238_v61, 7  ;;  %v2820_v56 = vld [vmem:[%s2996_s24 + $0x170] ss:$20 sps:$4 sm:$0xff]   ;;  %v2821_v58 = vld [vmem:[%s2996_s24 + $0x14c] ss:$20 sps:$4 sm:$0xff]   ;;  %s2927_s20 = smov 70  }
  0x7c   : > { %v2822_v59 = vld [vmem:[%s2996_s24 + $0x174] ss:$20 sps:$4 sm:$0xff]   ;;  %v2823_v61 = vld [vmem:[%s2996_s24 + $0x1e4] ss:$20 sps:$4 sm:$0xff]   ;;  %v2824_v63 = vld [vmem:[%s2996_s24 + $0x20c] ss:$20 sps:$4 sm:$0xff]  }
  0x7d   : > { %v243_v13 = vor.u32 %v241_v62, %v240_v6  ;;  %v2825_v1 = vld [vmem:[%s2996_s24 + $0x1e8] ss:$20 sps:$4 sm:$0xff]   ;;  %v2826_v3 = vld [vmem:[%s2996_s24 + $0x210] ss:$20 sps:$4 sm:$0xff]   ;;  %v2829_v8 = vld [vmem:[%s2996_s24] ss:$20 sps:$4 sm:$0xff]  }
  0x7e   : > { %1312 = vrot.lane.b32.xlu0 %v2807_v12, %s2914_s27  ;;  %v1472_v12 = vrot.slane %v2561_v54, 6  ;;  %v2819_v54 = vld [vmem:[%s2996_s24 + $0x148] ss:$20 sps:$4 sm:$0xff]   ;;  %s2928_s21 = smov 72   ;;  %s2929_s22 = smov 74   ;;  %v2847_v60 = vld [vmem:[%s3465_s1] sm:$0xff]  }
  0x7f   : > { %1291 = vrot.lane.b32.xlu1 %v2511_v22, %s2913_s26  ;;  %v244_v22 = vsel %vm3009_vm2, %v2270_v5, %v243_v13  ;;  %v2828_v6 = vld [vmem:[%s2996_s24 + $0x214] ss:$20 sps:$4 sm:$0xff]   ;;  %v2832_v13 = vld [vmem:[%s2996_s24 + $0x30] ss:$20 sps:$4 sm:$0xff]   ;;  %2691 = vmatprep.subr.bf16.mxu0 %v2847_v60  ;;  %s2930_s26 = smov 76   ;;  %vm886_vm10 = vcmask 195760  }
  0x80   : > { %v1473_v32 = vsel %vm3219_vm14, %v2565_v11, %v1472_v12  ;;  %v2274_v33 = vcombine.low %v244_v22, %v257_v27  ;;  %v2831_v11 = vld [vmem:[%s2996_s24 + $0x8] ss:$20 sps:$4 sm:$0xff]   ;;  %v2833_v23 = vld [vmem:[%s2996_s24 + $0x10] ss:$20 sps:$4 sm:$0xff]   ;;  %v2834_v17 = vld [vmem:[%s2996_s24 + $0x38] ss:$20 sps:$4 sm:$0xff]   ;;  %2692 = vmatpush3.bf16.msra.mxu0 %v2847_v60 }
  0x81   : > { %v2567_v39 = vcombine.low %v1469_v15, %v1473_v32  ;;  %v2835_v18 = vld [vmem:[%s2996_s24 + $0x140] ss:$20 sps:$4 sm:$0xff]   ;;  %v2836_v22 = vld [vmem:[%s2996_s24 + $0x168] ss:$20 sps:$4 sm:$0xff]   ;;  %vm933_vm11 = vcmask 212160   ;;  %vm1003_vm14 = vcmask 244960  }
  0x82   : > { %1359 = vrot.lane.b32.xlu0 %v2530_v31, %s2915_s28  ;;  %v280_v31 = vshll.u32 %v2269_v19, 16  ;;  %293 = vst.msk [vmem:[#allocation2] sm:$0xff] %vm292_vm15, %v2274_v33  ;;  %v2848_v19 = vld [vmem:[%s3465_s1 + $0x8] sm:$0xff]   ;;  %v2849_v25 = vld [vmem:[%s3465_s1 + $0x10] sm:$0xff]   ;;  %s2255_s23 = sshll.u32 %s3489_s13, 3 }
  0x83   : > { %1314 = vrot.lane.b32.xlu1 %v2808_v29, %s2914_s27  ;;  %v266_v29 = vrot.slane %v264_v21, 7  ;;  %2693 = vmatprep.subr.bf16.mxu0 %v2848_v19 }
  0x84   : > { %v282_v38 = vor.u32 %v280_v31, %v279_v35  ;;  %2694 = vmatpush3.bf16.msra.mxu0 %v2848_v19  ;;  %v2850_v31 = vld [vmem:[%s3465_s1 + $0x18] sm:$0xff]   ;;  %v2841_v35 = vld [vmem:[%s2996_s24 + $0x280] ss:$20 sps:$4 sm:$0xff]  }
  0x85   : > { %v269_v37 = vor.u32 %v267_v24, %v266_v29  ;;  %v2837_v24 = vld [vmem:[%s2996_s24 + $0x148] ss:$20 sps:$4 sm:$0xff]   ;;  %2695 = vmatprep.subr.bf16.mxu0 %v2849_v25  ;;  %v2839_v29 = vld [vmem:[%s2996_s24 + $0x150] ss:$20 sps:$4 sm:$0xff]  }
  0x86   : > { %1410 = vrot.lane.b32.xlu0 %v2546_v46, %s2916_s29  ;;  %v283_v42 = vsel %vm3009_vm2, %v2273_v34, %v282_v38  ;;  %v2840_v34 = vld [vmem:[%s2996_s24 + $0x178] ss:$20 sps:$4 sm:$0xff]  }
  0x87   : > { %1361 = vrot.lane.b32.xlu1 %v2531_v45, %s2915_s28  ;;  %v270_v41 = vsel %vm3009_vm2, %v2272_v28, %v269_v37  ;;  %vm476_vm2 = vcmask 64560   ;;  %v2838_v28 = vld [vmem:[%s2996_s24 + $0x170] ss:$20 sps:$4 sm:$0xff]  }
  0x88   : > { %v310_v36 = vpop.permute.xlu0 %309  ;;  %v496_v50 = vpop.permute.xlu1 %495  ;;  %v2275_v44 = vcombine.low %v270_v41, %v283_v42  ;;  %2696 = vmatpush3.bf16.msra.mxu0 %v2849_v25 }
  0x89   : > { %316 = vst.msk [vmem:[#allocation2] sm:$0xff] %vm315_vm0, %v310_v36  ;;  %2697 = vmatprep.subr.bf16.mxu0 %v2850_v31  ;;  %v2851_v36 = vld [vmem:[%s3465_s1 + $0x20] sm:$0xff]  }
  0x8a   : > { %1433 = vrot.lane.b32.xlu0 %v2809_v4, %s2917_s30  ;;  %294 = vst.msk [vmem:[#allocation2 + $0x8] sm:$0xff] %vm292_vm15, %v2275_v44  ;;  %v2827_v4 = vld [vmem:[%s2996_s24 + $0x1ec] ss:$20 sps:$4 sm:$0xff]   ;;  %v2844_v44 = vld [vmem:[%s2996_s24 + $0x2b0] ss:$20 sps:$4 sm:$0xff]   ;;  %vm1054_vm15 = vcmask 261360  }
  0x8b   : > { %1412 = vrot.lane.b32.xlu1 %v2547_v7, %s2916_s29  ;;  %s2931_s29 = smov 78  }
  0x8c   : > { %v312_v45 = vpop.permute.xlu0 %311  ;;  %2698 = vmatpush3.bf16.msra.mxu0 %v2850_v31 }
  0x8d   : > { %317 = vst.msk [vmem:[#allocation2 + $0x8] sm:$0xff] %vm315_vm0, %v312_v45  ;;  %2699 = vmatprep.subr.bf16.mxu0 %v2851_v36  ;;  %vm1077_vm0 = vcmask 277760  }
  0x8e   : > { %1480 = vrot.lane.b32.xlu0 %v2566_v10, %s2918_s4  ;;  %v2830_v10 = vld [vmem:[%s2996_s24 + $0x28] ss:$20 sps:$4 sm:$0xff]  }
  0x8f   : > { %1435 = vrot.lane.b32.xlu1 %v2810_v14, %s2917_s30  ;;  %s2257_s30 = sshll.u32 %s3489_s13, 1 }
  0x90   : > { %v494_v52 = vpop.permute.xlu0 %493  ;;  %2700 = vmatpush3.bf16.msra.mxu0 %v2851_v36 }
  0x92   : > { %1507 = vrot.lane.b32.xlu0 %v2811_v40, %s2919_s5  ;;  %v2842_v40 = vld [vmem:[%s2996_s24 + $0x2a8] ss:$20 sps:$4 sm:$0xff]  }
  0x93   : > { %1482 = vrot.lane.b32.xlu1 %v2567_v39, %s2918_s4  ;;  %v473_v46 = vpop.permute.xlu1 %472  ;;  %v2852_v39 = vld [vmem:[%s3465_s1 + $0x28] sm:$0x1f]  }
  0x94   : > { %2707 = vmatprep.subr.msk.bf16.mxu0 %vm1974_vm13, %v2852_v39 }
  0x96   : > { %1530 = vrot.lane.b32.xlu0 %v2813_v30, %s2920_s6  ;;  %v2845_v30 = vld [vmem:[%s2996_s24 + $0x290] ss:$20 sps:$4 sm:$0xff]  }
  0x97   : > { %1509 = vrot.lane.b32.xlu1 %v2812_v43, %s2919_s5  ;;  %v654_v51 = vpop.permute.xlu1 %653  ;;  %s2932_s5 = smov 80   ;;  %v1976_v43 = vsel %vm1974_vm13, %v2852_v39, 0  ;;  %vm1559_vm13 = vcmask 490960  }
  0x98   : > { %2702 = vmatpush3.bf16.msra.mxu0 %v1976_v43 }
  0x9a   : > { %1553 = vrot.lane.b32.xlu0 %v2815_v16, %s2921_s7 }
  0x9b   : > { %1532 = vrot.lane.b32.xlu1 %v2814_v47, %s2920_s6  ;;  %v471_v57 = vpop.permute.xlu0 %470  ;;  %v2846_v47 = vld [vmem:[%s2996_s24 + $0x2b8] ss:$20 sps:$4 sm:$0xff]  }
  0x9e   : > { %1576 = vrot.lane.b32.xlu0 %v2817_v49, %s2922_s8 }
  0x9f   : > { %1555 = vrot.lane.b32.xlu1 %v2816_v48, %s2921_s7 }
  0xa1   : > { %v392_v55 = vpop.permute.xlu1 %391 }
  0xa2   : > { %398 = vst.msk [vmem:[#allocation2] sm:$0xff] %vm397_vm1, %v392_v55  ;;  %1599 = vrot.lane.b32.xlu0 %v2819_v54, %s2923_s9 }
  0xa3   : > { %1578 = vrot.lane.b32.xlu1 %v2818_v53, %s2922_s8  ;;  %477 = vst.msk [vmem:[#allocation2] sm:$0xff] %vm476_vm2, %v471_v57  ;;  %s2933_s8 = smov 82  }
  0xa4   : > { %500 = vst.msk [vmem:[#allocation2] sm:$0xff] %vm499_vm3, %v494_v52  ;;  %v652_v62 = vpop.permute.xlu0 %651 }
  0xa6   : > { %1622 = vrot.lane.b32.xlu0 %v2821_v58, %s2924_s10 }
  0xa7   : > { %1601 = vrot.lane.b32.xlu1 %v2820_v56, %s2923_s9 }
  0xaa   : > { %1649 = vrot.lane.b32.xlu0 %v2823_v61, %s2925_s11  ;;  %v394_v0 = vpop.permute.xlu1 %393 }
  0xab   : > { %1624 = vrot.lane.b32.xlu1 %v2822_v59, %s2924_s10  ;;  %399 = vst.msk [vmem:[#allocation2 + $0x8] sm:$0xff] %vm397_vm1, %v394_v0  ;;  %vm1124_vm1 = vcmask 294160  }
  0xac   : > { %478 = vst.msk [vmem:[#allocation2 + $0x8] sm:$0xff] %vm476_vm2, %v473_v46  ;;  %vm1178_vm2 = vcmask 310560  }
  0xad   : > { %501 = vst.msk [vmem:[#allocation2 + $0x8] sm:$0xff] %vm499_vm3, %v496_v50  ;;  %v2843_v50 = vld [vmem:[%s2996_s24 + $0x288] ss:$20 sps:$4 sm:$0xff]   ;;  %vm1201_vm3 = vcmask 326960   ;;  %s2254_s24 = sshll.u32 %s2875_s12, 2  ;;  %s3493_s12 = smov (!%p209_p7, %s2875_s12), 1 }
  0xae   : > { %1672 = vrot.lane.b32.xlu0 %v2825_v1, %s2926_s19  ;;  %p200_p6 = scmp.lt.s32.totalorder %s2254_s24, 7  ;;  %s212_s4 = sadd.s32 %s2257_s30, %s3493_s12 }
  0xaf   : > { %1651 = vrot.lane.b32.xlu1 %v2824_v63, %s2925_s11  ;;  %v573_v2 = vpop.permute.xlu0 %572 }
  0xb0   : > { %579 = vst.msk [vmem:[#allocation2] sm:$0xff] %vm578_vm4, %v573_v2  ;;  %s3491_s24 = smov (!%p200_p6, %s2254_s24), 7 }
  0xb1   : > { %658 = vst.msk [vmem:[#allocation2] sm:$0xff] %vm657_vm5, %v652_v62  ;;  %s203_s25 = sadd.s32 %s2255_s23, %s3491_s24 }
  0xb2   : > { %1695 = vrot.lane.b32.xlu0 %v2827_v4, %s2927_s20 }
  0xb3   : > { %1674 = vrot.lane.b32.xlu1 %v2826_v3, %s2926_s19  ;;  %v575_v5 = vpop.permute.xlu1 %574  ;;  %v675_v7 = vpop.permute.xlu0 %674 }
  0xb4   : > { %580 = vst.msk [vmem:[#allocation2 + $0x8] sm:$0xff] %vm578_vm4, %v575_v5  ;;  %vm1248_vm4 = vcmask 343360  }
  0xb5   : > { %681 = vst.msk [vmem:[#allocation2] sm:$0xff] %vm680_vm6, %v675_v7 }
  0xb6   : > { %659 = vst.msk [vmem:[#allocation2 + $0x8] sm:$0xff] %vm657_vm5, %v654_v51  ;;  %1721 = vrot.lane.b32.xlu0 %v2829_v8, %s2928_s21  ;;  %vm1295_vm5 = vcmask 359760  }
  0xb7   : > { %1697 = vrot.lane.b32.xlu1 %v2828_v6, %s2927_s20  ;;  %v677_v9 = vpop.permute.xlu1 %676  ;;  %s2934_s20 = smov 84  }
  0xb8   : > { %682 = vst.msk [vmem:[#allocation2 + $0x8] sm:$0xff] %vm680_vm6, %v677_v9  ;;  %v754_v12 = vpop.permute.xlu0 %753  ;;  %vm1318_vm6 = vcmask 376160  }
  0xb9   : > { %760 = vst.msk [vmem:[#allocation2] sm:$0xff] %vm759_vm7, %v754_v12 }
  0xba   : > { %1744 = vrot.lane.b32.xlu0 %v2831_v11, %s2929_s22 }
  0xbb   : > { %1723 = vrot.lane.b32.xlu1 %v2830_v10, %s2928_s21  ;;  %s2935_s21 = smov 86  }
  0xbc   : > { %v808_v15 = vpop.permute.xlu0 %807 }
  0xbd   : > { %v756_v14 = vpop.permute.xlu1 %755  ;;  %814 = vst.msk [vmem:[#allocation2] sm:$0xff] %vm813_vm8, %v808_v15 }
  0xbe   : > { %761 = vst.msk [vmem:[#allocation2 + $0x8] sm:$0xff] %vm759_vm7, %v756_v14  ;;  %1767 = vrot.lane.b32.xlu0 %v2833_v23, %s2930_s26  ;;  %vm1365_vm7 = vcmask 392560  }
  0xbf   : > { %1746 = vrot.lane.b32.xlu1 %v2832_v13, %s2929_s22  ;;  %s2936_s22 = smov 88  }
  0xc0   : > { %v831_v21 = vpop.permute.xlu0 %830 }
  0xc1   : > { %v810_v20 = vpop.permute.xlu1 %809  ;;  %837 = vst.msk [vmem:[#allocation2] sm:$0xff] %vm836_vm9, %v831_v21 }
  0xc2   : > { %815 = vst.msk [vmem:[#allocation2 + $0x8] sm:$0xff] %vm813_vm8, %v810_v20  ;;  %1790 = vrot.lane.b32.xlu0 %v2835_v18, %s2931_s29  ;;  %vm1416_vm8 = vcmask 408960  }
  0xc3   : > { %1769 = vrot.lane.b32.xlu1 %v2834_v17, %s2930_s26  ;;  %s2256_s26 = sshll.u32 %s203_s25, 2 }
  0xc4   : > { %v881_v27 = vpop.permute.xlu0 %880 }
  0xc5   : > { %v833_v26 = vpop.permute.xlu1 %832  ;;  %887 = vst.msk [vmem:[#allocation2] sm:$0xff] %vm886_vm10, %v881_v27 }
  0xc6   : > { %838 = vst.msk [vmem:[#allocation2 + $0x8] sm:$0xff] %vm836_vm9, %v833_v26  ;;  %1813 = vrot.lane.b32.xlu0 %v2837_v24, %s2932_s5  ;;  %vm1439_vm9 = vcmask 425360  }
  0xc7   : > { %1792 = vrot.lane.b32.xlu1 %v2836_v22, %s2931_s29  ;;  %s205_s29 = scalar_lea.vmem %s3466_s2, %s2256_s26 }
  0xc8   : > { %v928_v33 = vpop.permute.xlu0 %927 }
  0xc9   : > { %v883_v32 = vpop.permute.xlu1 %882  ;;  %934 = vst.msk [vmem:[#allocation2] sm:$0xff] %vm933_vm11, %v928_v33 }
  0xca   : > { %888 = vst.msk [vmem:[#allocation2 + $0x8] sm:$0xff] %vm886_vm10, %v883_v32  ;;  %1836 = vrot.lane.b32.xlu0 %v2839_v29, %s2933_s8  ;;  %vm1486_vm10 = vcmask 441760  }
  0xcb   : > { %1815 = vrot.lane.b32.xlu1 %v2838_v28, %s2932_s5  ;;  %s2258_s5 = sshll.u32 %s212_s4, 1 }
  0xcc   : > { %v951_v38 = vpop.permute.xlu0 %950 }
  0xcd   : > { %v930_v37 = vpop.permute.xlu1 %929  ;;  %957 = vst.msk [vmem:[#allocation2] sm:$0xff] %vm956_vm12, %v951_v38 }
  0xce   : > { %935 = vst.msk [vmem:[#allocation2 + $0x8] sm:$0xff] %vm933_vm11, %v930_v37  ;;  %1863 = vrot.lane.b32.xlu0 %v2841_v35, %s2934_s20  ;;  %vm1513_vm11 = vcmask 458160  }
  0xcf   : > { %1838 = vrot.lane.b32.xlu1 %v2840_v34, %s2933_s8  ;;  %s214_s8 = scalar_lea.vmem %s3467_s3, %s2258_s5 }
  0xd0   : > { %v998_v42 = vpop.permute.xlu0 %997 }
  0xd1   : > { %v953_v41 = vpop.permute.xlu1 %952  ;;  %1004 = vst.msk [vmem:[#allocation2] sm:$0xff] %vm1003_vm14, %v998_v42 }
  0xd2   : > { %958 = vst.msk [vmem:[#allocation2 + $0x8] sm:$0xff] %vm956_vm12, %v953_v41  ;;  %1886 = vrot.lane.b32.xlu0 %v2843_v50, %s2935_s21  ;;  %vm1536_vm12 = vcmask 474560  }
  0xd3   : > { %1865 = vrot.lane.b32.xlu1 %v2842_v40, %s2934_s20 }
  0xd4   : > { %v1049_v46 = vpop.permute.xlu0 %1048 }
  0xd5   : > { %v1000_v45 = vpop.permute.xlu1 %999  ;;  %1055 = vst.msk [vmem:[#allocation2] sm:$0xff] %vm1054_vm15, %v1049_v46 }
  0xd6   : > { %1005 = vst.msk [vmem:[#allocation2 + $0x8] sm:$0xff] %vm1003_vm14, %v1000_v45  ;;  %1909 = vrot.lane.b32.xlu0 %v2845_v30, %s2936_s22  ;;  %vm1582_vm14 = vcmask 507360  }
  0xd7   : > { %1888 = vrot.lane.b32.xlu1 %v2844_v44, %s2935_s21 }
  0xd8   : > { %v1072_v48 = vpop.permute.xlu0 %1071 }
  0xd9   : > { %v1051_v16 = vpop.permute.xlu1 %1050  ;;  %1078 = vst.msk [vmem:[#allocation2] sm:$0xff] %vm1077_vm0, %v1072_v48 }
  0xda   : > { %1056 = vst.msk [vmem:[#allocation2 + $0x8] sm:$0xff] %vm1054_vm15, %v1051_v16  ;;  %vm1605_vm15 = vcmask 523760  }
  0xdb   : > { %1911 = vrot.lane.b32.xlu1 %v2846_v47, %s2936_s22 }
  0xdc   : > { %v1119_v51 = vpop.permute.xlu0 %1118 }
  0xdd   : > { %v1074_v49 = vpop.permute.xlu1 %1073  ;;  %1125 = vst.msk [vmem:[#allocation2] sm:$0xff] %vm1124_vm1, %v1119_v51 }
  0xde   : > { %1079 = vst.msk [vmem:[#allocation2 + $0x8] sm:$0xff] %vm1077_vm0, %v1074_v49  ;;  %vm1628_vm0 = vcmask 540160  }
  0xe0   : > { %v1173_v53 = vpop.permute.xlu0 %1172 }
  0xe1   : > { %v1121_v52 = vpop.permute.xlu1 %1120  ;;  %1179 = vst.msk [vmem:[#allocation2] sm:$0xff] %vm1178_vm2, %v1173_v53 }
  0xe2   : > { %1126 = vst.msk [vmem:[#allocation2 + $0x8] sm:$0xff] %vm1124_vm1, %v1121_v52  ;;  %vm1655_vm1 = vcmask 556560  }
  0xe4   : > { %v1196_v55 = vpop.permute.xlu0 %1195 }
  0xe5   : > { %v1175_v54 = vpop.permute.xlu1 %1174  ;;  %1202 = vst.msk [vmem:[#allocation2] sm:$0xff] %vm1201_vm3, %v1196_v55 }
  0xe6   : > { %1180 = vst.msk [vmem:[#allocation2 + $0x8] sm:$0xff] %vm1178_vm2, %v1175_v54  ;;  %vm1678_vm2 = vcmask 572960  }
  0xe8   : > { %v1243_v57 = vpop.permute.xlu0 %1242 }
  0xe9   : > { %v1198_v56 = vpop.permute.xlu1 %1197  ;;  %1249 = vst.msk [vmem:[#allocation2] sm:$0xff] %vm1248_vm4, %v1243_v57 }
  0xea   : > { %1203 = vst.msk [vmem:[#allocation2 + $0x8] sm:$0xff] %vm1201_vm3, %v1198_v56  ;;  %vm1701_vm3 = vcmask 589360  }
  0xec   : > { %v1290_v59 = vpop.permute.xlu0 %1289 }
  0xed   : > { %v1245_v58 = vpop.permute.xlu1 %1244  ;;  %1296 = vst.msk [vmem:[#allocation2] sm:$0xff] %vm1295_vm5, %v1290_v59 }
  0xee   : > { %1250 = vst.msk [vmem:[#allocation2 + $0x8] sm:$0xff] %vm1248_vm4, %v1245_v58  ;;  %vm1727_vm4 = vcmask 605760  }
  0xf0   : > { %v1313_v62 = vpop.permute.xlu0 %1312 }
  0xf1   : > { %v1292_v61 = vpop.permute.xlu1 %1291  ;;  %1319 = vst.msk [vmem:[#allocation2] sm:$0xff] %vm1318_vm6, %v1313_v62 }
  0xf2   : > { %1297 = vst.msk [vmem:[#allocation2 + $0x8] sm:$0xff] %vm1295_vm5, %v1292_v61  ;;  %vm1750_vm5 = vcmask 622160  }
  0xf4   : > { %v1360_v0 = vpop.permute.xlu0 %1359 }
  0xf5   : > { %v1315_v63 = vpop.permute.xlu1 %1314  ;;  %1366 = vst.msk [vmem:[#allocation2] sm:$0xff] %vm1365_vm7, %v1360_v0 }
  0xf6   : > { %1320 = vst.msk [vmem:[#allocation2 + $0x8] sm:$0xff] %vm1318_vm6, %v1315_v63  ;;  %vm1773_vm6 = vcmask 638560  }
  0xf8   : > { %v1411_v2 = vpop.permute.xlu0 %1410 }
  0xf9   : > { %v1362_v1 = vpop.permute.xlu1 %1361  ;;  %1417 = vst.msk [vmem:[#allocation2] sm:$0xff] %vm1416_vm8, %v1411_v2 }
  0xfa   : > { %1367 = vst.msk [vmem:[#allocation2 + $0x8] sm:$0xff] %vm1365_vm7, %v1362_v1  ;;  %vm1796_vm7 = vcmask 654960  }
  0xfc   : > { %v1434_v4 = vpop.permute.xlu0 %1433 }
  0xfd   : > { %v1413_v3 = vpop.permute.xlu1 %1412  ;;  %1440 = vst.msk [vmem:[#allocation2] sm:$0xff] %vm1439_vm9, %v1434_v4 }
  0xfe   : > { %1418 = vst.msk [vmem:[#allocation2 + $0x8] sm:$0xff] %vm1416_vm8, %v1413_v3  ;;  %vm1819_vm8 = vcmask 671360  }
 0x100   : > { %v1481_v6 = vpop.permute.xlu0 %1480 }
 0x101   : > { %v1436_v5 = vpop.permute.xlu1 %1435  ;;  %1487 = vst.msk [vmem:[#allocation2] sm:$0xff] %vm1486_vm10, %v1481_v6 }
 0x102   : > { %1441 = vst.msk [vmem:[#allocation2 + $0x8] sm:$0xff] %vm1439_vm9, %v1436_v5  ;;  %vm1842_vm9 = vcmask 687760  }
 0x104   : > { %v1508_v8 = vpop.permute.xlu0 %1507 }
 0x105   : > { %v1483_v7 = vpop.permute.xlu1 %1482  ;;  %1514 = vst.msk [vmem:[#allocation2] sm:$0xff] %vm1513_vm11, %v1508_v8 }
 0x106   : > { %1488 = vst.msk [vmem:[#allocation2 + $0x8] sm:$0xff] %vm1486_vm10, %v1483_v7  ;;  %vm1869_vm10 = vcmask 704160  }
 0x108   : > { %v1531_v10 = vpop.permute.xlu0 %1530 }
 0x109   : > { %v1510_v9 = vpop.permute.xlu1 %1509  ;;  %1537 = vst.msk [vmem:[#allocation2] sm:$0xff] %vm1536_vm12, %v1531_v10 }
 0x10a   : > { %1515 = vst.msk [vmem:[#allocation2 + $0x8] sm:$0xff] %vm1513_vm11, %v1510_v9  ;;  %vm1892_vm11 = vcmask 720560  }
 0x10c   : > { %v1554_v12 = vpop.permute.xlu0 %1553 }
 0x10d   : > { %v1533_v11 = vpop.permute.xlu1 %1532  ;;  %1560 = vst.msk [vmem:[#allocation2] sm:$0xff] %vm1559_vm13, %v1554_v12 }
 0x10e   : > { %1538 = vst.msk [vmem:[#allocation2 + $0x8] sm:$0xff] %vm1536_vm12, %v1533_v11  ;;  %vm1915_vm12 = vcmask 736960  }
 0x110   : > { %v1577_v23 = vpop.permute.xlu0 %1576 }
 0x111   : > { %v1556_v13 = vpop.permute.xlu1 %1555  ;;  %1583 = vst.msk [vmem:[#allocation2] sm:$0xff] %vm1582_vm14, %v1577_v23 }
 0x112   : > { %1561 = vst.msk [vmem:[#allocation2 + $0x8] sm:$0xff] %vm1559_vm13, %v1556_v13  ;;  %vm1967_vm13 = vcmask 736256  }
 0x114   : > { %v1600_v14 = vpop.permute.xlu0 %1599 }
 0x115   : > { %v1579_v60 = vpop.permute.xlu1 %1578  ;;  %1606 = vst.msk [vmem:[#allocation2] sm:$0xff] %vm1605_vm15, %v1600_v14 }
 0x116   : > { %1584 = vst.msk [vmem:[#allocation2 + $0x8] sm:$0xff] %vm1582_vm14, %v1579_v60  ;;  %vm2031_vm14 = vcmask 76800  }
 0x118   : > { %v1623_v17 = vpop.permute.xlu0 %1622 }
 0x119   : > { %v1602_v15 = vpop.permute.xlu1 %1601  ;;  %1629 = vst.msk [vmem:[#allocation2] sm:$0xff] %vm1628_vm0, %v1623_v17 }
 0x11a   : > { %1607 = vst.msk [vmem:[#allocation2 + $0x8] sm:$0xff] %vm1605_vm15, %v1602_v15  ;;  %vm2036_vm15 = vcmask 80896  }
 0x11c   : > { %v1650_v19 = vpop.permute.xlu0 %1649 }
 0x11d   : > { %v1625_v18 = vpop.permute.xlu1 %1624  ;;  %1656 = vst.msk [vmem:[#allocation2] sm:$0xff] %vm1655_vm1, %v1650_v19 }
 0x11e   : > { %1630 = vst.msk [vmem:[#allocation2 + $0x8] sm:$0xff] %vm1628_vm0, %v1625_v18  ;;  %vm2072_vm0 = vcmask 73728  }
 0x120   : > { %v1673_v21 = vpop.permute.xlu0 %1672 }
 0x121   : > { %v1652_v20 = vpop.permute.xlu1 %1651  ;;  %1679 = vst.msk [vmem:[#allocation2] sm:$0xff] %vm1678_vm2, %v1673_v21 }
 0x122   : > { %1657 = vst.msk [vmem:[#allocation2 + $0x8] sm:$0xff] %vm1655_vm1, %v1652_v20 }
 0x124   : > { %v1696_v24 = vpop.permute.xlu0 %1695 }
 0x125   : > { %v1675_v22 = vpop.permute.xlu1 %1674  ;;  %1702 = vst.msk [vmem:[#allocation2] sm:$0xff] %vm1701_vm3, %v1696_v24 }
 0x126   : > { %1680 = vst.msk [vmem:[#allocation2 + $0x8] sm:$0xff] %vm1678_vm2, %v1675_v22 }
 0x128   : > { %v1722_v26 = vpop.permute.xlu0 %1721 }
 0x129   : > { %v1698_v25 = vpop.permute.xlu1 %1697  ;;  %1728 = vst.msk [vmem:[#allocation2] sm:$0xff] %vm1727_vm4, %v1722_v26 }
 0x12a   : > { %1703 = vst.msk [vmem:[#allocation2 + $0x8] sm:$0xff] %vm1701_vm3, %v1698_v25 }
 0x12c   : > { %v1745_v28 = vpop.permute.xlu0 %1744 }
 0x12d   : > { %v1724_v27 = vpop.permute.xlu1 %1723  ;;  %1751 = vst.msk [vmem:[#allocation2] sm:$0xff] %vm1750_vm5, %v1745_v28 }
 0x12e   : > { %1729 = vst.msk [vmem:[#allocation2 + $0x8] sm:$0xff] %vm1727_vm4, %v1724_v27 }
 0x130   : > { %v1768_v31 = vpop.permute.xlu0 %1767 }
 0x131   : > { %v1747_v29 = vpop.permute.xlu1 %1746  ;;  %1774 = vst.msk [vmem:[#allocation2] sm:$0xff] %vm1773_vm6, %v1768_v31 }
 0x132   : > { %1752 = vst.msk [vmem:[#allocation2 + $0x8] sm:$0xff] %vm1750_vm5, %v1747_v29 }
 0x134   : > { %v1791_v33 = vpop.permute.xlu0 %1790 }
 0x135   : > { %v1770_v32 = vpop.permute.xlu1 %1769  ;;  %1797 = vst.msk [vmem:[#allocation2] sm:$0xff] %vm1796_vm7, %v1791_v33 }
 0x136   : > { %1775 = vst.msk [vmem:[#allocation2 + $0x8] sm:$0xff] %vm1773_vm6, %v1770_v32 }
 0x138   : > { %v1814_v35 = vpop.permute.xlu0 %1813 }
 0x139   : > { %v1793_v34 = vpop.permute.xlu1 %1792  ;;  %1820 = vst.msk [vmem:[#allocation2] sm:$0xff] %vm1819_vm8, %v1814_v35 }
 0x13a   : > { %1798 = vst.msk [vmem:[#allocation2 + $0x8] sm:$0xff] %vm1796_vm7, %v1793_v34 }
 0x13c   : > { %v1837_v37 = vpop.permute.xlu0 %1836 }
 0x13d   : > { %v1816_v36 = vpop.permute.xlu1 %1815  ;;  %1843 = vst.msk [vmem:[#allocation2] sm:$0xff] %vm1842_vm9, %v1837_v37 }
 0x13e   : > { %1821 = vst.msk [vmem:[#allocation2 + $0x8] sm:$0xff] %vm1819_vm8, %v1816_v36 }
 0x140   : > { %v1864_v39 = vpop.permute.xlu0 %1863 }
 0x141   : > { %v1839_v38 = vpop.permute.xlu1 %1838  ;;  %1870 = vst.msk [vmem:[#allocation2] sm:$0xff] %vm1869_vm10, %v1864_v39 }
 0x142   : > { %1844 = vst.msk [vmem:[#allocation2 + $0x8] sm:$0xff] %vm1842_vm9, %v1839_v38 }
 0x144   : > { %v1887_v50 = vpop.permute.xlu0 %1886 }
 0x145   : > { %v1866_v40 = vpop.permute.xlu1 %1865  ;;  %1893 = vst.msk [vmem:[#allocation2] sm:$0xff] %vm1892_vm11, %v1887_v50 }
 0x146   : > { %1871 = vst.msk [vmem:[#allocation2 + $0x8] sm:$0xff] %vm1869_vm10, %v1866_v40 }
 0x148   : > { %v1910_v42 = vpop.permute.xlu0 %1909 }
 0x149   : > { %v1889_v41 = vpop.permute.xlu1 %1888  ;;  %1916 = vst.msk [vmem:[#allocation2] sm:$0xff] %vm1915_vm12, %v1910_v42 }
 0x14a   : > { %1894 = vst.msk [vmem:[#allocation2 + $0x8] sm:$0xff] %vm1892_vm11, %v1889_v41 }
 0x14d   : > { %v1912_v43 = vpop.permute.xlu1 %1911 }
 0x14e   : > { %1917 = vst.msk [vmem:[#allocation2 + $0x8] sm:$0xff] %vm1915_vm12, %v1912_v43 }
 0x150   : > { %v1918_v44 = vld [vmem:[#allocation2] sm:$0xff] }
 0x151   : > { %2703 = vmatprep.mubr.msk.bf16.mxu0 %vm1967_vm13, %v1918_v44 }
 0x155   : > { %v1919_v30 = vld [vmem:[#allocation2 + $0x8] sm:$0xff] }
 0x156   : > { %2704 = vmatmul.mubr.msk.bf16.vlgmr.msra.gmra.mrb[0].mxu0 %vm1967_vm13, %v1919_v30 }
 0x229   : > { %v2705_v45 = vpop.f32.mrb[0].mxu0 }
 0x22a   : > { %v2029_v46 = vpack.c.bf16 %v2705_v45, %v2705_v45  ;;  %v2012_v47 = vpop.f32.mrb[1].mxu0  ;;  %v2040_v56 = vsel %vm2036_vm15, %v2705_v45, 0.0 }
 0x22b   : > { %v2027_v16 = vpack.c.bf16 %v2012_v47, %v2012_v47  ;;  %v2706_v48 = vpop.f32.mrb[2].mxu0  ;;  %v2037_v52 = vsel %vm2036_vm15, %v2012_v47, 0.0 }
 0x22c   : > { %2034 = vst.msk [vmem:[%s205_s29 + $0x8] sm:$0xf] %vm2031_vm14, %v2029_v46  ;;  %v2030_v49 = vpack.c.bf16 %v2706_v48, %v2706_v48  ;;  %v2015_v51 = vpop.f32.mrb[3].mxu0  ;;  %v2042_v58 = vsel %vm2036_vm15, %v2706_v48, 0.0 }
 0x22d   : > { %2032 = vst.msk [vmem:[%s205_s29] sm:$0xf] %vm2031_vm14, %v2027_v16  ;;  %v2028_v53 = vpack.c.bf16 %v2015_v51, %v2015_v51  ;;  %v2038_v54 = vsel %vm2036_vm15, %v2015_v51, 0.0 }
 0x22e   : > { %2035 = vst.msk [vmem:[%s205_s29 + $0xc] sm:$0xf] %vm2031_vm14, %v2030_v49  ;;  %v2039_v55 = vadd.f32 %v2038_v54, %v2037_v52 }
 0x22f   : > { %2033 = vst.msk [vmem:[%s205_s29 + $0x4] sm:$0xf] %vm2031_vm14, %v2028_v53 }
 0x230   : > { %v2041_v57 = vadd.f32 %v2040_v56, %v2039_v55 }
 0x232   : > { %v2043_v59 = vadd.f32 %v2042_v58, %v2041_v57 }
 0x234   : > { %v2044_v61 = vrot.slane %v2043_v59, 4 }
 0x236   : > { %v2045_v62 = vadd.f32 %v2044_v61, %v2043_v59 }
 0x238   : > { %v2046_v63 = vrot.slane %v2045_v62, 2 }
 0x23a   : > { %v2047_v0 = vadd.f32 %v2046_v63, %v2045_v62 }
 0x23c   : > { %v2048_v1 = vrot.slane %v2047_v0, 1 }
 0x23e   : > { %v2049_v2 = vadd.f32 %v2048_v1, %v2047_v0 }
 0x240   : > { %v2050_v3 = vmul.f32 0.03125, %v2049_v2  ;;  %2073 = vst.msk [vmem:[%s214_s8] sm:$0x1] %vm2072_vm0, %v2049_v2 }
 0x242   : > { %v2051_v4 = vsub.f32 %v2012_v47, %v2050_v3  ;;  %v2052_v5 = vsub.f32 %v2015_v51, %v2050_v3  ;;  %v2053_v6 = vsub.f32 %v2705_v45, %v2050_v3  ;;  %v2054_v7 = vsub.f32 %v2706_v48, %v2050_v3 }
 0x244   : > { %v2055_v8 = vmul.f32 %v2051_v4, %v2051_v4  ;;  %v2056_v9 = vmul.f32 %v2052_v5, %v2052_v5  ;;  %v2057_v10 = vmul.f32 %v2053_v6, %v2053_v6  ;;  %v2058_v11 = vmul.f32 %v2054_v7, %v2054_v7 }
 0x246   : > { %v2059_v12 = vsel %vm2036_vm15, %v2055_v8, 0.0  ;;  %v2060_v13 = vsel %vm2036_vm15, %v2056_v9, 0.0  ;;  %v2062_v60 = vsel %vm2036_vm15, %v2057_v10, 0.0  ;;  %v2064_v15 = vsel %vm2036_vm15, %v2058_v11, 0.0 }
 0x247   : > { %v2061_v23 = vadd.f32 %v2060_v13, %v2059_v12 }
 0x249   : > { %v2063_v14 = vadd.f32 %v2062_v60, %v2061_v23 }
 0x24b   : > { %v2065_v17 = vadd.f32 %v2064_v15, %v2063_v14 }
 0x24d   : > { %v2066_v18 = vrot.slane %v2065_v17, 4 }
 0x24f   : > { %v2067_v19 = vadd.f32 %v2066_v18, %v2065_v17 }
 0x251   : > { %v2068_v20 = vrot.slane %v2067_v19, 2 }
 0x253   : > { %v2069_v21 = vadd.f32 %v2068_v20, %v2067_v19 }
 0x255   : > { %v2070_v22 = vrot.slane %v2069_v21, 1 }
 0x257   : > { %v2071_v24 = vadd.f32 %v2070_v22, %v2069_v21 }
 0x259   : > { %2074 = vst.msk [vmem:[%s214_s8 + $0x1] sm:$0x1] %vm2072_vm0, %v2071_v24 }
 0x25a PF: > { %s14_s16 = sadd.s32 1, %s2891_s16   ;;  %s3478_s12 = smov %s2883_s14 }
 0x25b   : > { %p11_p8 = scmp.ge.s32.totalorder %s14_s16, 6   ;;  %s3479_s13 = smov %s2887_s15 }
 0x25c   : > { %s3480_s14 = smov %s3483_s17  ;;  %s3481_s15 = smov %s3487_s18 }
 0x25d   :  { %13 = sbr.rel (!%p11_p8) target bundleno = 3 (0x3), region = 81 }

</bundles_post_ra>
